<compile_context>
chip_gen: v5e
topology: v5e:2x2
jax: 0.10.0
libtpu: 0.0.40
codegen_flags: <defaults>
</compile_context>

<pallas_src>
import functools
import math

import jax
import jax.numpy as jnp
from jax.experimental import pallas as pl
from jax.experimental.pallas import tpu as pltpu


# Safe on all generations: < v7x physical 64 MiB, explicitly above v5e's 16 MiB default.
_VMEM_LIMIT = 40 * 1024 * 1024
_LN_EPS = 1e-5  # torch.nn.LayerNorm default


# ----------------------------------------------------------------------------
# Helpers
# ----------------------------------------------------------------------------
def _gelu_tanh(x):
    # tanh-approximation GELU (EUP tanh, cheap) — within ~1e-3 of exact erf GELU.
    c = math.sqrt(2.0 / math.pi)
    return 0.5 * x * (1.0 + jnp.tanh(c * (x + 0.044715 * x * x * x)))


def _layernorm_val(x_f32, g, b):
    mu = jnp.mean(x_f32, axis=-1, keepdims=True)
    var = jnp.mean(jnp.square(x_f32 - mu), axis=-1, keepdims=True)
    return (x_f32 - mu) * jax.lax.rsqrt(var + _LN_EPS) * g + b


def _fit_lanes(dim, target):
    """Largest lane-dim tile <= target dividing dim: prefer mult-of-256, then 128, else full."""
    if dim <= target:
        return dim
    for align in (256, 128):
        t = (target // align) * align
        while t >= align:
            if dim % t == 0:
                return t
            t -= align
    return dim


def _fit_rows(dim, target):
    """Largest sublane-dim tile <= target dividing dim: prefer mult-of-16, then 8, else full."""
    if dim <= target:
        return dim
    for align in (16, 8):
        t = (target // align) * align
        while t >= align:
            if dim % t == 0:
                return t
            t -= align
    return dim


# ----------------------------------------------------------------------------
# Standalone LayerNorm (fallback only — normally LN is fused into the matmuls)
# ----------------------------------------------------------------------------
def _layernorm_kernel(x_ref, g_ref, b_ref, o_ref):
    x = x_ref[...].astype(jnp.float32)
    o_ref[...] = _layernorm_val(x, g_ref[...], b_ref[...]).astype(o_ref.dtype)


def layernorm(x, g, b, *, tm_target=512):
    m, c = x.shape
    tm = _fit_rows(m, tm_target)
    return pl.pallas_call(
        _layernorm_kernel,
        out_shape=jax.ShapeDtypeStruct((m, c), jnp.bfloat16),
        grid=(m // tm,),
        in_specs=[
            pl.BlockSpec((tm, c), lambda i: (i, 0)),
            pl.BlockSpec((1, c), lambda i: (0, 0)),
            pl.BlockSpec((1, c), lambda i: (0, 0)),
        ],
        out_specs=pl.BlockSpec((tm, c), lambda i: (i, 0)),
        compiler_params=pltpu.CompilerParams(dimension_semantics=("parallel",)),
    )(x, g, b)


# ----------------------------------------------------------------------------
# Fused tiled matmul:
#   y = [LN(x)] @ W (+ bias) (+ GELU) (+ [LN of] residual)
# ----------------------------------------------------------------------------
def _matmul_kernel(*refs, has_ln, has_bias, has_res, res_ln, activation,
                   transpose_rhs, use_acc):
    idx = 0
    x_ref = refs[idx]; idx += 1
    w_ref = refs[idx]; idx += 1
    if has_ln:
        lng_ref, lnb_ref = refs[idx], refs[idx + 1]; idx += 2
    if has_bias:
        bias_ref = refs[idx]; idx += 1
    if has_res:
        res_ref = refs[idx]; idx += 1
        if res_ln:
            rg_ref, rb_ref = refs[idx], refs[idx + 1]; idx += 2
    o_ref = refs[idx]; idx += 1
    acc_ref = refs[idx] if use_acc else None

    k_idx = pl.program_id(2)
    nk = pl.num_programs(2)

    # Prologue: optional fused LayerNorm (x tile spans the full K dimension).
    x = x_ref[...]
    if has_ln:
        x = _layernorm_val(x.astype(jnp.float32), lng_ref[...], lnb_ref[...]
                           ).astype(jnp.bfloat16)
    else:
        x = x.astype(jnp.bfloat16)
    w = w_ref[...].astype(jnp.bfloat16)

    if transpose_rhs:
        part = jax.lax.dot_general(x, w, (((1,), (1,)), ((), ())),
                                   preferred_element_type=jnp.float32)
    else:
        part = jnp.dot(x, w, preferred_element_type=jnp.float32)

    def epilogue(y):
        if has_bias:
            y = y + bias_ref[...]
        if activation == "gelu":
            y = _gelu_tanh(y)
        if has_res:
            r = res_ref[...].astype(jnp.float32)
            if res_ln:   # residual = LayerNorm(pre-LN x), recomputed here (tn == N == C)
                r = _layernorm_val(r, rg_ref[...], rb_ref[...])
            y = y + r
        o_ref[...] = y.astype(o_ref.dtype)

    if use_acc:
        @pl.when(k_idx == 0)
        def _init():
            acc_ref[...] = jnp.zeros_like(acc_ref)

        acc_ref[...] += part

        @pl.when(k_idx == nk - 1)
        def _finalize():
            epilogue(acc_ref[...])
    else:
        epilogue(part)


def linear(x, w, b=None, *, ln=None, activation=None, residual=None, residual_ln=None,
           transpose_rhs=False, out_dtype=jnp.bfloat16,
           tm_target=512, tn_target=1024, tk_target=1024):
    """x: (M, K). w: (K, N), or (N, K) if transpose_rhs.
    ln=(g,b): fuse LayerNorm of x into the prologue (needs tk == K).
    residual(+residual_ln): epilogue adds residual (optionally LayerNorm'ed, needs tn == N)."""
    m, kdim = x.shape
    if transpose_rhs:
        n, k2 = w.shape
    else:
        k2, n = w.shape
    assert k2 == kdim

    tm = _fit_rows(m, tm_target)
    tn = _fit_lanes(n, tn_target)
    tk = _fit_lanes(kdim, tk_target)

    # Fallbacks if fusion preconditions don't hold (not hit for GPT-2 sized configs).
    if ln is not None and tk != kdim:
        x = layernorm(x, *ln)
        ln = None
    if residual_ln is not None and tn != n:
        residual = layernorm(residual, *residual_ln)
        residual_ln = None

    nk = kdim // tk
    grid = (m // tm, n // tn, nk)

    inputs = [x, w]
    in_specs = [pl.BlockSpec((tm, tk), lambda i, j, k: (i, k))]
    if transpose_rhs:
        in_specs.append(pl.BlockSpec((tn, tk), lambda i, j, k: (j, k)))
    else:
        in_specs.append(pl.BlockSpec((tk, tn), lambda i, j, k: (k, j)))

    if ln is not None:
        g_ln, b_ln = ln
        inputs += [g_ln.reshape(1, kdim).astype(jnp.float32),
                   b_ln.reshape(1, kdim).astype(jnp.float32)]
        in_specs += [pl.BlockSpec((1, tk), lambda i, j, k: (0, 0))] * 2
    if b is not None:
        inputs.append(b.reshape(1, n).astype(jnp.float32))
        in_specs.append(pl.BlockSpec((1, tn), lambda i, j, k: (0, j)))
    if residual is not None:
        inputs.append(residual)
        in_specs.append(pl.BlockSpec((tm, tn), lambda i, j, k: (i, j)))
        if residual_ln is not None:
            rg, rb = residual_ln
            inputs += [rg.reshape(1, n).astype(jnp.float32),
                       rb.reshape(1, n).astype(jnp.float32)]
            in_specs += [pl.BlockSpec((1, tn), lambda i, j, k: (0, j))] * 2

    use_acc = nk > 1
    scratch = [pltpu.VMEM((tm, tn), jnp.float32)] if use_acc else []

    return pl.pallas_call(
        functools.partial(_matmul_kernel,
                          has_ln=ln is not None, has_bias=b is not None,
                          has_res=residual is not None,
                          res_ln=residual_ln is not None,
                          activation=activation, transpose_rhs=transpose_rhs,
                          use_acc=use_acc),
        out_shape=jax.ShapeDtypeStruct((m, n), out_dtype),
        grid=grid,
        in_specs=in_specs,
        out_specs=pl.BlockSpec((tm, tn), lambda i, j, k: (i, j)),
        scratch_shapes=scratch,
        compiler_params=pltpu.CompilerParams(
            dimension_semantics=("parallel", "parallel", "arbitrary"),
            vmem_limit_bytes=_VMEM_LIMIT),
    )(*inputs)


# ----------------------------------------------------------------------------
# Flash-style causal attention over a fused (B, T, 3C) QKV tensor
# ----------------------------------------------------------------------------
def _flash_attn_kernel(q_ref, k_ref, v_ref, o_ref, acc_ref, m_ref, l_ref,
                       *, n_head, dh, scale, tq):
    qi = pl.program_id(1)
    ki = pl.program_id(2)
    nk = pl.num_programs(2)

    @pl.when(ki == 0)
    def _init():
        acc_ref[...] = jnp.zeros_like(acc_ref)
        m_ref[...] = jnp.full(m_ref.shape, -1e30, dtype=jnp.float32)
        l_ref[...] = jnp.zeros(l_ref.shape, dtype=jnp.float32)

    def process(masked):
        q = q_ref[...]          # (tq, C)  bf16
        k = k_ref[...]          # (tq, C)  bf16
        v = v_ref[...]          # (tq, C)  bf16
        if masked:
            # diagonal block (tq == tkv, aligned): local col <= local row
            rows = jax.lax.broadcasted_iota(jnp.int32, (tq, tq), 0)
            cols = jax.lax.broadcasted_iota(jnp.int32, (tq, tq), 1)
            causal = cols <= rows
        for h in range(n_head):
            lo = h * dh
            qh = q[:, lo:lo + dh]
            kh = k[:, lo:lo + dh]
            vh = v[:, lo:lo + dh]
            s = jax.lax.dot_general(qh, kh, (((1,), (1,)), ((), ())),
                                    preferred_element_type=jnp.float32) * scale
            if masked:
                s = jnp.where(causal, s, -1e30)
            m_prev = m_ref[h]                                   # (tq, 1)
            l_prev = l_ref[h]
            m_new = jnp.maximum(m_prev, jnp.max(s, axis=-1, keepdims=True))
            alpha = jnp.exp(m_prev - m_new)
            p = jnp.exp(s - m_new)
            l_ref[h] = alpha * l_prev + jnp.sum(p, axis=-1, keepdims=True)
            m_ref[h] = m_new
            acc_ref[:, lo:lo + dh] = alpha * acc_ref[:, lo:lo + dh] + jnp.dot(
                p.astype(jnp.bfloat16), vh, preferred_element_type=jnp.float32)

    # Fully-below-diagonal blocks: no mask work at all.
    @pl.when(ki < qi)
    def _full():
        process(masked=False)

    # Diagonal block: masked path.
    @pl.when(ki == qi)
    def _diag():
        process(masked=True)

    # (blocks with ki > qi are skipped entirely; their K/V DMAs are aliased away
    #  by the clamped index_map so no HBM traffic is issued for them)

    @pl.when(ki == nk - 1)
    def _finalize():
        for h in range(n_head):
            lo = h * dh
            inv = pl.reciprocal(l_ref[h], approx=True)          # EUP, epilogue only
            o_ref[:, lo:lo + dh] = (acc_ref[:, lo:lo + dh] * inv).astype(o_ref.dtype)


def causal_attention(qkv, *, n_head, tq_target=512):
    """qkv: (B, T, 3C) bf16 with [Q | K | V] along the last dim. Returns (B, T, C) bf16."""
    b, t, c3 = qkv.shape
    c = c3 // 3
    dh = c // n_head
    scale = 1.0 / math.sqrt(dh)     # F.scaled_dot_product_attention default
    tq = _fit_rows(t, tq_target)    # tkv == tq (simplifies causal block logic)
    nq = t // tq

    q_spec = pl.BlockSpec((None, tq, c), lambda bi, qi, ki: (bi, qi, 0))
    # Clamp the KV block index above the diagonal: skipped iterations alias the
    # already-resident block, so Pallas issues no DMA for them (~2x less K/V HBM read).
    k_spec = pl.BlockSpec((None, tq, c), lambda bi, qi, ki: (bi, jnp.minimum(ki, qi), 1))
    v_spec = pl.BlockSpec((None, tq, c), lambda bi, qi, ki: (bi, jnp.minimum(ki, qi), 2))
    o_spec = pl.BlockSpec((None, tq, c), lambda bi, qi, ki: (bi, qi, 0))

    return pl.pallas_call(
        functools.partial(_flash_attn_kernel, n_head=n_head, dh=dh, scale=scale, tq=tq),
        out_shape=jax.ShapeDtypeStruct((b, t, c), jnp.bfloat16),
        grid=(b, nq, nq),
        in_specs=[q_spec, k_spec, v_spec],
        out_specs=o_spec,
        scratch_shapes=[
            pltpu.VMEM((tq, c), jnp.float32),          # lane-dense output accumulator
            pltpu.VMEM((n_head, tq, 1), jnp.float32),  # running max   (lane-padded; small)
            pltpu.VMEM((n_head, tq, 1), jnp.float32),  # running denom (lane-padded; small)
        ],
        compiler_params=pltpu.CompilerParams(
            dimension_semantics=("parallel", "parallel", "arbitrary"),
            vmem_limit_bytes=_VMEM_LIMIT),
    )(qkv, qkv, qkv)


# ----------------------------------------------------------------------------
# Parameter init (mirrors GPT._init_weights; weights stored bf16)
# ----------------------------------------------------------------------------
def init_params(key, *, vocab_size, block_size, n_layer, n_head, n_embd):
    std = n_embd ** -0.5
    proj_std = std * (2 * n_layer) ** -0.5   # SCALE_INIT layers (attn.c_proj, ff.c_proj)

    ks = iter(jax.random.split(key, 2 + 4 * n_layer))

    def normal(shape, s):
        return (jax.random.normal(next(ks), shape, jnp.float32) * s).astype(jnp.bfloat16)

    params = {
        "wte": normal((vocab_size, n_embd), std),        # tied with lm_head
        "wpe": normal((block_size, n_embd), std),
        "lnf_g": jnp.ones((1, n_embd), jnp.float32),
        "lnf_b": jnp.zeros((1, n_embd), jnp.float32),
        "blocks": [],
    }
    for _ in range(n_layer):
        blk = {
            "ln1_g": jnp.ones((1, n_embd), jnp.float32),
            "ln1_b": jnp.zeros((1, n_embd), jnp.float32),
            "ln2_g": jnp.ones((1, n_embd), jnp.float32),
            "ln2_b": jnp.zeros((1, n_embd), jnp.float32),
            # fused QKV weight: (C, 3C) = [Wq | Wk | Wv] along the output dim
            "wqkv": normal((n_embd, 3 * n_embd), std),
            "bqkv": jnp.zeros((3 * n_embd,), jnp.float32),
            "wo": normal((n_embd, n_embd), proj_std),
            "bo": jnp.zeros((n_embd,), jnp.float32),
            "w_fc": normal((n_embd, 4 * n_embd), std),
            "b_fc": jnp.zeros((4 * n_embd,), jnp.float32),
            "w_proj": normal((4 * n_embd, n_embd), proj_std),
            "b_proj": jnp.zeros((n_embd,), jnp.float32),
        }
        params["blocks"].append(blk)
    return params


# ----------------------------------------------------------------------------
# GPT forward (embedding gather / reshapes in JAX glue, heavy math in Pallas)
# ----------------------------------------------------------------------------
def gpt_forward(params, idx, *, n_head):
    b, t = idx.shape
    wte = params["wte"]
    wpe = params["wpe"]
    vocab, c = wte.shape

    # token + positional embedding (glue)
    x = (wte[idx] + wpe[:t][None, :, :]).astype(jnp.bfloat16)     # (B, T, C)
    xf = x.reshape(b * t, c)

    for blk in params["blocks"]:
        ln1 = (blk["ln1_g"], blk["ln1_b"])
        ln2 = (blk["ln2_g"], blk["ln2_b"])
        # qkv = [q|k|v](ln_1(x))  — LN fused into matmul prologue, one (M, 3C) matmul
        qkv = linear(xf, blk["wqkv"], blk["bqkv"], ln=ln1)
        # flash causal attention -> (B, T, C)
        att = causal_attention(qkv.reshape(b, t, 3 * c), n_head=n_head)
        # x = ln_1(x) + c_proj(att)  — post-LN residual (as in reference) recomputed in epilogue
        xf = linear(att.reshape(b * t, c), blk["wo"], blk["bo"],
                    residual=xf, residual_ln=ln1)
        # h = gelu(c_fc(ln_2(x)))  — LN fused into prologue, GELU fused into epilogue
        h = linear(xf, blk["w_fc"], blk["b_fc"], ln=ln2, activation="gelu")
        # x = ln_2(x) + c_proj(h)
        xf = linear(h, blk["w_proj"], blk["b_proj"], residual=xf, residual_ln=ln2)

    # logits = lm_head(ln_f(x)) with the tied (vocab, C) weight; LN fused, bf16 logits
    lnf = (params["lnf_g"], params["lnf_b"])
    pad = (-vocab) % 256
    w_head = wte if pad == 0 else jnp.pad(wte, ((0, pad), (0, 0)))
    logits = linear(xf, w_head, None, ln=lnf, transpose_rhs=True,
                    out_dtype=jnp.bfloat16, tm_target=1024)
    if pad:
        logits = logits[:, :vocab]
    return logits.reshape(b, t, vocab)
    # TODO(synk): cross-entropy loss branch (targets is not None) not exercised here.


# ----------------------------------------------------------------------------
if __name__ == "__main__":
    # Small config consistent with GPTConfig fields (n_embd multiple of 128 so the
    # fused-QKV lane-block layout is exercised as in the full-size model).
    cfg = dict(vocab_size=256, block_size=32, n_layer=2, n_head=2, n_embd=128)
    B, T = 2, 16

    root = jax.random.PRNGKey(0)
    k_params, k_idx = jax.random.split(root)

    params = init_params(k_params, **cfg)
    idx = jax.random.randint(k_idx, (B, T), 0, cfg["vocab_size"], dtype=jnp.int32)

    fwd = jax.jit(functools.partial(gpt_forward, n_head=cfg["n_head"]))
    logits = fwd(params, idx)
    jax.block_until_ready(logits)

    assert logits.shape == (B, T, cfg["vocab_size"]), logits.shape
    assert bool(jnp.all(jnp.isfinite(logits.astype(jnp.float32))))
    print("KERNEL_OK")
</pallas_src>

<mosaic_0001>
module attributes {stable_mosaic.version = 11 : i64} {
  func.func @_matmul_kernel(%arg0: i32, %arg1: i32, %arg2: i32, %arg3: memref<32x128xbf16, #tpu.memory_space<vmem>>, %arg4: memref<128x128xbf16, #tpu.memory_space<vmem>>, %arg5: memref<1x128xf32, #tpu.memory_space<vmem>>, %arg6: memref<32x128xbf16, #tpu.memory_space<vmem>>, %arg7: memref<1x128xf32, #tpu.memory_space<vmem>>, %arg8: memref<1x128xf32, #tpu.memory_space<vmem>>, %arg9: memref<32x128xbf16, #tpu.memory_space<vmem>>) attributes {dimension_semantics = [#tpu.dimension_semantics<parallel>, #tpu.dimension_semantics<parallel>, #tpu.dimension_semantics<arbitrary>], iteration_bounds = array<i64: 1, 1, 1>, scalar_prefetch = 0 : i64, scratch_operands = 0 : i64, tpu.core_type = #tpu.core_type<tc>, window_params = [{transform_indices = @transform_0, window_bounds = array<i64: 32, 128>}, {transform_indices = @transform_1, window_bounds = array<i64: 128, 128>}, {transform_indices = @transform_2, window_bounds = array<i64: 1, 128>}, {transform_indices = @transform_3, window_bounds = array<i64: 32, 128>}, {transform_indices = @transform_4, window_bounds = array<i64: 1, 128>}, {transform_indices = @transform_5, window_bounds = array<i64: 1, 128>}, {transform_indices = @transform_6, window_bounds = array<i64: 32, 128>}]} {
    %c0 = arith.constant 0 : index
    %c0_0 = arith.constant 0 : index
    %0 = vector.load %arg3[%c0, %c0_0] : memref<32x128xbf16, #tpu.memory_space<vmem>>, vector<32x128xbf16>
    %c0_1 = arith.constant 0 : index
    %c0_2 = arith.constant 0 : index
    %1 = vector.load %arg4[%c0_1, %c0_2] : memref<128x128xbf16, #tpu.memory_space<vmem>>, vector<128x128xbf16>
    %cst = arith.constant dense<0.000000e+00> : vector<32x128xf32>
    %2 = tpu.matmul %0, %1, %cst {dimension_numbers = #tpu.dot_dimension_numbers<[1], [0], [0], [1], [0, 0, 1, 1], [], []>} : vector<32x128xbf16>, vector<128x128xbf16>, vector<32x128xf32> -> vector<32x128xf32>
    %c0_3 = arith.constant 0 : index
    %c0_4 = arith.constant 0 : index
    %3 = vector.load %arg5[%c0_3, %c0_4] : memref<1x128xf32, #tpu.memory_space<vmem>>, vector<1x128xf32>
    %4 = vector.broadcast %3 : vector<1x128xf32> to vector<32x128xf32>
    %5 = arith.addf %2, %4 : vector<32x128xf32>
    %c0_5 = arith.constant 0 : index
    %c0_6 = arith.constant 0 : index
    %6 = vector.load %arg6[%c0_5, %c0_6] : memref<32x128xbf16, #tpu.memory_space<vmem>>, vector<32x128xbf16>
    %7 = arith.extf %6 : vector<32x128xbf16> to vector<32x128xf32>
    %c0_7 = arith.constant 0 : index
    %c0_8 = arith.constant 0 : index
    %8 = vector.load %arg7[%c0_7, %c0_8] : memref<1x128xf32, #tpu.memory_space<vmem>>, vector<1x128xf32>
    %c0_9 = arith.constant 0 : index
    %c0_10 = arith.constant 0 : index
    %9 = vector.load %arg8[%c0_9, %c0_10] : memref<1x128xf32, #tpu.memory_space<vmem>>, vector<1x128xf32>
    %cst_11 = arith.constant dense<0.000000e+00> : vector<32xf32>
    %10 = vector.multi_reduction <add>, %7, %cst_11 [1] : vector<32x128xf32> to vector<32xf32>
    %11 = vector.shape_cast %10 : vector<32xf32> to vector<32x1xf32>
    %cst_12 = arith.constant 1.280000e+02 : f32
    %12 = vector.broadcast %cst_12 : f32 to vector<32x1xf32>
    %13 = arith.divf %11, %12 : vector<32x1xf32>
    %14 = vector.broadcast %13 : vector<32x1xf32> to vector<32x128xf32>
    %15 = arith.subf %7, %14 : vector<32x128xf32>
    %16 = arith.mulf %15, %15 : vector<32x128xf32>
    %cst_13 = arith.constant dense<0.000000e+00> : vector<32xf32>
    %17 = vector.multi_reduction <add>, %16, %cst_13 [1] : vector<32x128xf32> to vector<32xf32>
    %18 = vector.shape_cast %17 : vector<32xf32> to vector<32x1xf32>
    %cst_14 = arith.constant 1.280000e+02 : f32
    %19 = vector.broadcast %cst_14 : f32 to vector<32x1xf32>
    %20 = arith.divf %18, %19 : vector<32x1xf32>
    %21 = vector.broadcast %13 : vector<32x1xf32> to vector<32x128xf32>
    %22 = arith.subf %7, %21 : vector<32x128xf32>
    %cst_15 = arith.constant 9.99999974E-6 : f32
    %23 = vector.broadcast %cst_15 : f32 to vector<32x1xf32>
    %24 = arith.addf %20, %23 : vector<32x1xf32>
    %25 = math.rsqrt %24 : vector<32x1xf32>
    %26 = vector.broadcast %25 : vector<32x1xf32> to vector<32x128xf32>
    %27 = arith.mulf %22, %26 : vector<32x128xf32>
    %28 = vector.broadcast %8 : vector<1x128xf32> to vector<32x128xf32>
    %29 = arith.mulf %27, %28 : vector<32x128xf32>
    %30 = vector.broadcast %9 : vector<1x128xf32> to vector<32x128xf32>
    %31 = arith.addf %29, %30 : vector<32x128xf32>
    %32 = arith.addf %5, %31 : vector<32x128xf32>
    %33 = arith.truncf %32 : vector<32x128xf32> to vector<32x128xbf16>
    %c0_16 = arith.constant 0 : index
    %c0_17 = arith.constant 0 : index
    %34 = vector.load %arg9[%c0_16, %c0_17] : memref<32x128xbf16, #tpu.memory_space<vmem>>, vector<32x128xbf16>
    tpu.vector_store %arg9[%c0_16, %c0_17], %33 {strides = array<i32>} : memref<32x128xbf16, #tpu.memory_space<vmem>>, vector<32x128xbf16>,
    return
  }
  func.func @transform_0(%arg0: i32, %arg1: i32, %arg2: i32) -> (i32, i32) {
    %c0_i32 = arith.constant 0 : i32
    return %arg0, %arg2 : i32, i32
  }
  func.func @transform_1(%arg0: i32, %arg1: i32, %arg2: i32) -> (i32, i32) {
    %c0_i32 = arith.constant 0 : i32
    return %arg2, %arg1 : i32, i32
  }
  func.func @transform_2(%arg0: i32, %arg1: i32, %arg2: i32) -> (i32, i32) {
    %c0_i32 = arith.constant 0 : i32
    %c0_i32_0 = arith.constant 0 : i32
    return %c0_i32, %arg1 : i32, i32
  }
  func.func @transform_3(%arg0: i32, %arg1: i32, %arg2: i32) -> (i32, i32) {
    %c0_i32 = arith.constant 0 : i32
    return %arg0, %arg1 : i32, i32
  }
  func.func @transform_4(%arg0: i32, %arg1: i32, %arg2: i32) -> (i32, i32) {
    %c0_i32 = arith.constant 0 : i32
    %c0_i32_0 = arith.constant 0 : i32
    return %c0_i32, %arg1 : i32, i32
  }
  func.func @transform_5(%arg0: i32, %arg1: i32, %arg2: i32) -> (i32, i32) {
    %c0_i32 = arith.constant 0 : i32
    %c0_i32_0 = arith.constant 0 : i32
    return %c0_i32, %arg1 : i32, i32
  }
  func.func @transform_6(%arg0: i32, %arg1: i32, %arg2: i32) -> (i32, i32) {
    %c0_i32 = arith.constant 0 : i32
    return %arg0, %arg1 : i32, i32
  }
}

module attributes {stable_mosaic.version = 11 : i64} {
  func.func @_matmul_kernel(%arg0: i32, %arg1: i32, %arg2: i32, %arg3: memref<32x128xbf16, #tpu.memory_space<vmem>>, %arg4: memref<128x512xbf16, #tpu.memory_space<vmem>>, %arg5: memref<1x128xf32, #tpu.memory_space<vmem>>, %arg6: memref<1x128xf32, #tpu.memory_space<vmem>>, %arg7: memref<1x512xf32, #tpu.memory_space<vmem>>, %arg8: memref<32x512xbf16, #tpu.memory_space<vmem>>) attributes {dimension_semantics = [#tpu.dimension_semantics<parallel>, #tpu.dimension_semantics<parallel>, #tpu.dimension_semantics<arbitrary>], iteration_bounds = array<i64: 1, 1, 1>, scalar_prefetch = 0 : i64, scratch_operands = 0 : i64, tpu.core_type = #tpu.core_type<tc>, window_params = [{transform_indices = @transform_0, window_bounds = array<i64: 32, 128>}, {transform_indices = @transform_1, window_bounds = array<i64: 128, 512>}, {pipeline_mode = #tpu.pipeline_mode<synchronous>, transform_indices = @transform_2, window_bounds = array<i64: 1, 128>}, {pipeline_mode = #tpu.pipeline_mode<synchronous>, transform_indices = @transform_3, window_bounds = array<i64: 1, 128>}, {transform_indices = @transform_4, window_bounds = array<i64: 1, 512>}, {transform_indices = @transform_5, window_bounds = array<i64: 32, 512>}]} {
    %c0 = arith.constant 0 : index
    %c0_0 = arith.constant 0 : index
    %0 = vector.load %arg3[%c0, %c0_0] : memref<32x128xbf16, #tpu.memory_space<vmem>>, vector<32x128xbf16>
    %1 = arith.extf %0 : vector<32x128xbf16> to vector<32x128xf32>
    %c0_1 = arith.constant 0 : index
    %c0_2 = arith.constant 0 : index
    %2 = vector.load %arg5[%c0_1, %c0_2] : memref<1x128xf32, #tpu.memory_space<vmem>>, vector<1x128xf32>
    %c0_3 = arith.constant 0 : index
    %c0_4 = arith.constant 0 : index
    %3 = vector.load %arg6[%c0_3, %c0_4] : memref<1x128xf32, #tpu.memory_space<vmem>>, vector<1x128xf32>
    %cst = arith.constant dense<0.000000e+00> : vector<32xf32>
    %4 = vector.multi_reduction <add>, %1, %cst [1] : vector<32x128xf32> to vector<32xf32>
    %5 = vector.shape_cast %4 : vector<32xf32> to vector<32x1xf32>
    %cst_5 = arith.constant 1.280000e+02 : f32
    %6 = vector.broadcast %cst_5 : f32 to vector<32x1xf32>
    %7 = arith.divf %5, %6 : vector<32x1xf32>
    %8 = vector.broadcast %7 : vector<32x1xf32> to vector<32x128xf32>
    %9 = arith.subf %1, %8 : vector<32x128xf32>
    %10 = arith.mulf %9, %9 : vector<32x128xf32>
    %cst_6 = arith.constant dense<0.000000e+00> : vector<32xf32>
    %11 = vector.multi_reduction <add>, %10, %cst_6 [1] : vector<32x128xf32> to vector<32xf32>
    %12 = vector.shape_cast %11 : vector<32xf32> to vector<32x1xf32>
    %cst_7 = arith.constant 1.280000e+02 : f32
    %13 = vector.broadcast %cst_7 : f32 to vector<32x1xf32>
    %14 = arith.divf %12, %13 : vector<32x1xf32>
    %15 = vector.broadcast %7 : vector<32x1xf32> to vector<32x128xf32>
    %16 = arith.subf %1, %15 : vector<32x128xf32>
    %cst_8 = arith.constant 9.99999974E-6 : f32
    %17 = vector.broadcast %cst_8 : f32 to vector<32x1xf32>
    %18 = arith.addf %14, %17 : vector<32x1xf32>
    %19 = math.rsqrt %18 : vector<32x1xf32>
    %20 = vector.broadcast %19 : vector<32x1xf32> to vector<32x128xf32>
    %21 = arith.mulf %16, %20 : vector<32x128xf32>
    %22 = vector.broadcast %2 : vector<1x128xf32> to vector<32x128xf32>
    %23 = arith.mulf %21, %22 : vector<32x128xf32>
    %24 = vector.broadcast %3 : vector<1x128xf32> to vector<32x128xf32>
    %25 = arith.addf %23, %24 : vector<32x128xf32>
    %26 = arith.truncf %25 : vector<32x128xf32> to vector<32x128xbf16>
    %c0_9 = arith.constant 0 : index
    %c0_10 = arith.constant 0 : index
    %27 = vector.load %arg4[%c0_9, %c0_10] : memref<128x512xbf16, #tpu.memory_space<vmem>>, vector<128x512xbf16>
    %cst_11 = arith.constant dense<0.000000e+00> : vector<32x512xf32>
    %28 = tpu.matmul %26, %27, %cst_11 {dimension_numbers = #tpu.dot_dimension_numbers<[1], [0], [0], [1], [0, 0, 1, 1], [], []>} : vector<32x128xbf16>, vector<128x512xbf16>, vector<32x512xf32> -> vector<32x512xf32>
    %c0_12 = arith.constant 0 : index
    %c0_13 = arith.constant 0 : index
    %29 = vector.load %arg7[%c0_12, %c0_13] : memref<1x512xf32, #tpu.memory_space<vmem>>, vector<1x512xf32>
    %30 = vector.broadcast %29 : vector<1x512xf32> to vector<32x512xf32>
    %31 = arith.addf %28, %30 : vector<32x512xf32>
    %cst_14 = arith.constant 5.000000e-01 : f32
    %32 = vector.broadcast %cst_14 : f32 to vector<32x512xf32>
    %33 = arith.mulf %32, %31 : vector<32x512xf32>
    %cst_15 = arith.constant 4.471500e-02 : f32
    %34 = vector.broadcast %cst_15 : f32 to vector<32x512xf32>
    %35 = arith.mulf %34, %31 : vector<32x512xf32>
    %36 = arith.mulf %35, %31 : vector<32x512xf32>
    %37 = arith.mulf %36, %31 : vector<32x512xf32>
    %38 = arith.addf %31, %37 : vector<32x512xf32>
    %cst_16 = arith.constant 0.797884583 : f32
    %39 = vector.broadcast %cst_16 : f32 to vector<32x512xf32>
    %40 = arith.mulf %39, %38 : vector<32x512xf32>
    %41 = math.tanh %40 : vector<32x512xf32>
    %cst_17 = arith.constant 1.000000e+00 : f32
    %42 = vector.broadcast %cst_17 : f32 to vector<32x512xf32>
    %43 = arith.addf %42, %41 : vector<32x512xf32>
    %44 = arith.mulf %33, %43 : vector<32x512xf32>
    %45 = arith.truncf %44 : vector<32x512xf32> to vector<32x512xbf16>
    %c0_18 = arith.constant 0 : index
    %c0_19 = arith.constant 0 : index
    %46 = vector.load %arg8[%c0_18, %c0_19] : memref<32x512xbf16, #tpu.memory_space<vmem>>, vector<32x512xbf16>
    tpu.vector_store %arg8[%c0_18, %c0_19], %45 {strides = array<i32>} : memref<32x512xbf16, #tpu.memory_space<vmem>>, vector<32x512xbf16>,
    return
  }
  func.func @transform_0(%arg0: i32, %arg1: i32, %arg2: i32) -> (i32, i32) {
    %c0_i32 = arith.constant 0 : i32
    return %arg0, %arg2 : i32, i32
  }
  func.func @transform_1(%arg0: i32, %arg1: i32, %arg2: i32) -> (i32, i32) {
    %c0_i32 = arith.constant 0 : i32
    return %arg2, %arg1 : i32, i32
  }
  func.func @transform_2(%arg0: i32, %arg1: i32, %arg2: i32) -> (i32, i32) {
    %c0_i32 = arith.constant 0 : i32
    %c0_i32_0 = arith.constant 0 : i32
    %c0_i32_1 = arith.constant 0 : i32
    return %c0_i32, %c0_i32_0 : i32, i32
  }
  func.func @transform_3(%arg0: i32, %arg1: i32, %arg2: i32) -> (i32, i32) {
    %c0_i32 = arith.constant 0 : i32
    %c0_i32_0 = arith.constant 0 : i32
    %c0_i32_1 = arith.constant 0 : i32
    return %c0_i32, %c0_i32_0 : i32, i32
  }
  func.func @transform_4(%arg0: i32, %arg1: i32, %arg2: i32) -> (i32, i32) {
    %c0_i32 = arith.constant 0 : i32
    %c0_i32_0 = arith.constant 0 : i32
    return %c0_i32, %arg1 : i32, i32
  }
  func.func @transform_5(%arg0: i32, %arg1: i32, %arg2: i32) -> (i32, i32) {
    %c0_i32 = arith.constant 0 : i32
    return %arg0, %arg1 : i32, i32
  }
}

module attributes {stable_mosaic.version = 11 : i64} {
  func.func @_matmul_kernel(%arg0: i32, %arg1: i32, %arg2: i32, %arg3: memref<32x128xbf16, #tpu.memory_space<vmem>>, %arg4: memref<128x384xbf16, #tpu.memory_space<vmem>>, %arg5: memref<1x128xf32, #tpu.memory_space<vmem>>, %arg6: memref<1x128xf32, #tpu.memory_space<vmem>>, %arg7: memref<1x384xf32, #tpu.memory_space<vmem>>, %arg8: memref<32x384xbf16, #tpu.memory_space<vmem>>) attributes {dimension_semantics = [#tpu.dimension_semantics<parallel>, #tpu.dimension_semantics<parallel>, #tpu.dimension_semantics<arbitrary>], iteration_bounds = array<i64: 1, 1, 1>, scalar_prefetch = 0 : i64, scratch_operands = 0 : i64, tpu.core_type = #tpu.core_type<tc>, window_params = [{transform_indices = @transform_0, window_bounds = array<i64: 32, 128>}, {transform_indices = @transform_1, window_bounds = array<i64: 128, 384>}, {pipeline_mode = #tpu.pipeline_mode<synchronous>, transform_indices = @transform_2, window_bounds = array<i64: 1, 128>}, {pipeline_mode = #tpu.pipeline_mode<synchronous>, transform_indices = @transform_3, window_bounds = array<i64: 1, 128>}, {transform_indices = @transform_4, window_bounds = array<i64: 1, 384>}, {transform_indices = @transform_5, window_bounds = array<i64: 32, 384>}]} {
    %c0 = arith.constant 0 : index
    %c0_0 = arith.constant 0 : index
    %0 = vector.load %arg3[%c0, %c0_0] : memref<32x128xbf16, #tpu.memory_space<vmem>>, vector<32x128xbf16>
    %1 = arith.extf %0 : vector<32x128xbf16> to vector<32x128xf32>
    %c0_1 = arith.constant 0 : index
    %c0_2 = arith.constant 0 : index
    %2 = vector.load %arg5[%c0_1, %c0_2] : memref<1x128xf32, #tpu.memory_space<vmem>>, vector<1x128xf32>
    %c0_3 = arith.constant 0 : index
    %c0_4 = arith.constant 0 : index
    %3 = vector.load %arg6[%c0_3, %c0_4] : memref<1x128xf32, #tpu.memory_space<vmem>>, vector<1x128xf32>
    %cst = arith.constant dense<0.000000e+00> : vector<32xf32>
    %4 = vector.multi_reduction <add>, %1, %cst [1] : vector<32x128xf32> to vector<32xf32>
    %5 = vector.shape_cast %4 : vector<32xf32> to vector<32x1xf32>
    %cst_5 = arith.constant 1.280000e+02 : f32
    %6 = vector.broadcast %cst_5 : f32 to vector<32x1xf32>
    %7 = arith.divf %5, %6 : vector<32x1xf32>
    %8 = vector.broadcast %7 : vector<32x1xf32> to vector<32x128xf32>
    %9 = arith.subf %1, %8 : vector<32x128xf32>
    %10 = arith.mulf %9, %9 : vector<32x128xf32>
    %cst_6 = arith.constant dense<0.000000e+00> : vector<32xf32>
    %11 = vector.multi_reduction <add>, %10, %cst_6 [1] : vector<32x128xf32> to vector<32xf32>
    %12 = vector.shape_cast %11 : vector<32xf32> to vector<32x1xf32>
    %cst_7 = arith.constant 1.280000e+02 : f32
    %13 = vector.broadcast %cst_7 : f32 to vector<32x1xf32>
    %14 = arith.divf %12, %13 : vector<32x1xf32>
    %15 = vector.broadcast %7 : vector<32x1xf32> to vector<32x128xf32>
    %16 = arith.subf %1, %15 : vector<32x128xf32>
    %cst_8 = arith.constant 9.99999974E-6 : f32
    %17 = vector.broadcast %cst_8 : f32 to vector<32x1xf32>
    %18 = arith.addf %14, %17 : vector<32x1xf32>
    %19 = math.rsqrt %18 : vector<32x1xf32>
    %20 = vector.broadcast %19 : vector<32x1xf32> to vector<32x128xf32>
    %21 = arith.mulf %16, %20 : vector<32x128xf32>
    %22 = vector.broadcast %2 : vector<1x128xf32> to vector<32x128xf32>
    %23 = arith.mulf %21, %22 : vector<32x128xf32>
    %24 = vector.broadcast %3 : vector<1x128xf32> to vector<32x128xf32>
    %25 = arith.addf %23, %24 : vector<32x128xf32>
    %26 = arith.truncf %25 : vector<32x128xf32> to vector<32x128xbf16>
    %c0_9 = arith.constant 0 : index
    %c0_10 = arith.constant 0 : index
    %27 = vector.load %arg4[%c0_9, %c0_10] : memref<128x384xbf16, #tpu.memory_space<vmem>>, vector<128x384xbf16>
    %cst_11 = arith.constant dense<0.000000e+00> : vector<32x384xf32>
    %28 = tpu.matmul %26, %27, %cst_11 {dimension_numbers = #tpu.dot_dimension_numbers<[1], [0], [0], [1], [0, 0, 1, 1], [], []>} : vector<32x128xbf16>, vector<128x384xbf16>, vector<32x384xf32> -> vector<32x384xf32>
    %c0_12 = arith.constant 0 : index
    %c0_13 = arith.constant 0 : index
    %29 = vector.load %arg7[%c0_12, %c0_13] : memref<1x384xf32, #tpu.memory_space<vmem>>, vector<1x384xf32>
    %30 = vector.broadcast %29 : vector<1x384xf32> to vector<32x384xf32>
    %31 = arith.addf %28, %30 : vector<32x384xf32>
    %32 = arith.truncf %31 : vector<32x384xf32> to vector<32x384xbf16>
    %c0_14 = arith.constant 0 : index
    %c0_15 = arith.constant 0 : index
    %33 = vector.load %arg8[%c0_14, %c0_15] : memref<32x384xbf16, #tpu.memory_space<vmem>>, vector<32x384xbf16>
    tpu.vector_store %arg8[%c0_14, %c0_15], %32 {strides = array<i32>} : memref<32x384xbf16, #tpu.memory_space<vmem>>, vector<32x384xbf16>,
    return
  }
  func.func @transform_0(%arg0: i32, %arg1: i32, %arg2: i32) -> (i32, i32) {
    %c0_i32 = arith.constant 0 : i32
    return %arg0, %arg2 : i32, i32
  }
  func.func @transform_1(%arg0: i32, %arg1: i32, %arg2: i32) -> (i32, i32) {
    %c0_i32 = arith.constant 0 : i32
    return %arg2, %arg1 : i32, i32
  }
  func.func @transform_2(%arg0: i32, %arg1: i32, %arg2: i32) -> (i32, i32) {
    %c0_i32 = arith.constant 0 : i32
    %c0_i32_0 = arith.constant 0 : i32
    %c0_i32_1 = arith.constant 0 : i32
    return %c0_i32, %c0_i32_0 : i32, i32
  }
  func.func @transform_3(%arg0: i32, %arg1: i32, %arg2: i32) -> (i32, i32) {
    %c0_i32 = arith.constant 0 : i32
    %c0_i32_0 = arith.constant 0 : i32
    %c0_i32_1 = arith.constant 0 : i32
    return %c0_i32, %c0_i32_0 : i32, i32
  }
  func.func @transform_4(%arg0: i32, %arg1: i32, %arg2: i32) -> (i32, i32) {
    %c0_i32 = arith.constant 0 : i32
    %c0_i32_0 = arith.constant 0 : i32
    return %c0_i32, %arg1 : i32, i32
  }
  func.func @transform_5(%arg0: i32, %arg1: i32, %arg2: i32) -> (i32, i32) {
    %c0_i32 = arith.constant 0 : i32
    return %arg0, %arg1 : i32, i32
  }
}

module attributes {stable_mosaic.version = 11 : i64} {
  func.func @_flash_attn_kernel(%arg0: i32, %arg1: i32, %arg2: i32, %arg3: memref<1x16x128xbf16, #tpu.memory_space<vmem>>, %arg4: memref<1x16x128xbf16, #tpu.memory_space<vmem>>, %arg5: memref<1x16x128xbf16, #tpu.memory_space<vmem>>, %arg6: memref<1x16x128xbf16, #tpu.memory_space<vmem>>, %arg7: memref<16x128xf32, #tpu.memory_space<vmem>>, %arg8: memref<2x16x1xf32, #tpu.memory_space<vmem>>, %arg9: memref<2x16x1xf32, #tpu.memory_space<vmem>>) attributes {dimension_semantics = [#tpu.dimension_semantics<parallel>, #tpu.dimension_semantics<parallel>, #tpu.dimension_semantics<arbitrary>], iteration_bounds = array<i64: 2, 1, 1>, scalar_prefetch = 0 : i64, scratch_operands = 3 : i64, tpu.core_type = #tpu.core_type<tc>, window_params = [{transform_indices = @transform_0, window_bounds = array<i64: 1, 16, 128>}, {transform_indices = @transform_1, window_bounds = array<i64: 1, 16, 128>}, {transform_indices = @transform_2, window_bounds = array<i64: 1, 16, 128>}, {transform_indices = @transform_3, window_bounds = array<i64: 1, 16, 128>}]} {
    %c0_i32 = arith.constant 0 : i32
    %0 = arith.cmpi eq, %arg2, %c0_i32 : i32
    %1 = arith.extui %0 : i1 to i32
    %c0_i32_0 = arith.constant 0 : i32
    %2 = arith.cmpi ne, %1, %c0_i32_0 : i32
    scf.if %2 {
      %cst = arith.constant 0.000000e+00 : f32
      %12 = vector.broadcast %cst : f32 to vector<16x128xf32>
      %c0 = arith.constant 0 : index
      %c0_5 = arith.constant 0 : index
      %13 = vector.load %arg7[%c0, %c0_5] : memref<16x128xf32, #tpu.memory_space<vmem>>, vector<16x128xf32>
      tpu.vector_store %arg7[%c0, %c0_5], %12 {strides = array<i32>} : memref<16x128xf32, #tpu.memory_space<vmem>>, vector<16x128xf32>,
      %cst_6 = arith.constant -1.000000e+30 : f32
      %14 = vector.broadcast %cst_6 : f32 to vector<2x16x1xf32>
      %c0_7 = arith.constant 0 : index
      %c0_8 = arith.constant 0 : index
      %c0_9 = arith.constant 0 : index
      %15 = vector.load %arg8[%c0_7, %c0_8, %c0_9] : memref<2x16x1xf32, #tpu.memory_space<vmem>>, vector<2x16x1xf32>
      tpu.vector_store %arg8[%c0_7, %c0_8, %c0_9], %14 {strides = array<i32>} : memref<2x16x1xf32, #tpu.memory_space<vmem>>, vector<2x16x1xf32>,
      %cst_10 = arith.constant 0.000000e+00 : f32
      %16 = vector.broadcast %cst_10 : f32 to vector<2x16x1xf32>
      %c0_11 = arith.constant 0 : index
      %c0_12 = arith.constant 0 : index
      %c0_13 = arith.constant 0 : index
      %17 = vector.load %arg9[%c0_11, %c0_12, %c0_13] : memref<2x16x1xf32, #tpu.memory_space<vmem>>, vector<2x16x1xf32>
      tpu.vector_store %arg9[%c0_11, %c0_12, %c0_13], %16 {strides = array<i32>} : memref<2x16x1xf32, #tpu.memory_space<vmem>>, vector<2x16x1xf32>,
    } else {
    }
    %3 = arith.cmpi slt, %arg2, %arg1 : i32
    %4 = arith.extui %3 : i1 to i32
    %c0_i32_1 = arith.constant 0 : i32
    %5 = arith.cmpi ne, %4, %c0_i32_1 : i32
    scf.if %5 {
      %c0 = arith.constant 0 : index
      %c0_5 = arith.constant 0 : index
      %c0_6 = arith.constant 0 : index
      %12 = vector.load %arg3[%c0, %c0_5, %c0_6] : memref<1x16x128xbf16, #tpu.memory_space<vmem>>, vector<1x16x128xbf16>
      %13 = vector.shape_cast %12 : vector<1x16x128xbf16> to vector<16x128xbf16>
      %c0_7 = arith.constant 0 : index
      %c0_8 = arith.constant 0 : index
      %c0_9 = arith.constant 0 : index
      %14 = vector.load %arg4[%c0_7, %c0_8, %c0_9] : memref<1x16x128xbf16, #tpu.memory_space<vmem>>, vector<1x16x128xbf16>
      %15 = vector.shape_cast %14 : vector<1x16x128xbf16> to vector<16x128xbf16>
      %c0_10 = arith.constant 0 : index
      %c0_11 = arith.constant 0 : index
      %c0_12 = arith.constant 0 : index
      %16 = vector.load %arg5[%c0_10, %c0_11, %c0_12] : memref<1x16x128xbf16, #tpu.memory_space<vmem>>, vector<1x16x128xbf16>
      %17 = vector.shape_cast %16 : vector<1x16x128xbf16> to vector<16x128xbf16>
      %18 = vector.extract_strided_slice %13 {offsets = [0, 0], sizes = [16, 64], strides = [1, 1]} : vector<16x128xbf16> to vector<16x64xbf16>
      %19 = vector.extract_strided_slice %15 {offsets = [0, 0], sizes = [16, 64], strides = [1, 1]} : vector<16x128xbf16> to vector<16x64xbf16>
      %20 = vector.extract_strided_slice %17 {offsets = [0, 0], sizes = [16, 64], strides = [1, 1]} : vector<16x128xbf16> to vector<16x64xbf16>
      %cst = arith.constant dense<0.000000e+00> : vector<16x16xf32>
      %21 = tpu.matmul %18, %19, %cst {dimension_numbers = #tpu.dot_dimension_numbers<[1], [1], [0], [0], [0, 0, 1, 0], [], []>} : vector<16x64xbf16>, vector<16x64xbf16>, vector<16x16xf32> -> vector<16x16xf32>
      %cst_13 = arith.constant 1.250000e-01 : f32
      %22 = vector.broadcast %cst_13 : f32 to vector<16x16xf32>
      %23 = arith.mulf %21, %22 : vector<16x16xf32>
      %c0_14 = arith.constant 0 : index
      %c0_15 = arith.constant 0 : index
      %c0_16 = arith.constant 0 : index
      %24 = vector.load %arg8[%c0_14, %c0_15, %c0_16] : memref<2x16x1xf32, #tpu.memory_space<vmem>>, vector<1x16x1xf32>
      %25 = vector.shape_cast %24 : vector<1x16x1xf32> to vector<16x1xf32>
      %c0_17 = arith.constant 0 : index
      %c0_18 = arith.constant 0 : index
      %c0_19 = arith.constant 0 : index
      %26 = vector.load %arg9[%c0_17, %c0_18, %c0_19] : memref<2x16x1xf32, #tpu.memory_space<vmem>>, vector<1x16x1xf32>
      %27 = vector.shape_cast %26 : vector<1x16x1xf32> to vector<16x1xf32>
      %cst_20 = arith.constant dense<0xFF800000> : vector<16xf32>
      %28 = vector.multi_reduction <maximumf>, %23, %cst_20 [1] : vector<16x16xf32> to vector<16xf32>
      %29 = vector.shape_cast %28 : vector<16xf32> to vector<16x1xf32>
      %30 = arith.maximumf %25, %29 : vector<16x1xf32>
      %31 = arith.subf %25, %30 : vector<16x1xf32>
      %32 = math.exp %31 : vector<16x1xf32>
      %33 = vector.broadcast %30 : vector<16x1xf32> to vector<16x16xf32>
      %34 = arith.subf %23, %33 : vector<16x16xf32>
      %35 = math.exp %34 : vector<16x16xf32>
      %36 = arith.mulf %32, %27 : vector<16x1xf32>
      %cst_21 = arith.constant dense<0.000000e+00> : vector<16xf32>
      %37 = vector.multi_reduction <add>, %35, %cst_21 [1] : vector<16x16xf32> to vector<16xf32>
      %38 = vector.shape_cast %37 : vector<16xf32> to vector<16x1xf32>
      %39 = arith.addf %36, %38 : vector<16x1xf32>
      %c0_22 = arith.constant 0 : index
      %c0_23 = arith.constant 0 : index
      %c0_24 = arith.constant 0 : index
      %40 = vector.load %arg9[%c0_22, %c0_23, %c0_24] : memref<2x16x1xf32, #tpu.memory_space<vmem>>, vector<1x16x1xf32>
      %41 = vector.shape_cast %40 : vector<1x16x1xf32> to vector<16x1xf32>
      %42 = vector.shape_cast %39 : vector<16x1xf32> to vector<1x16x1xf32>
      tpu.vector_store %arg9[%c0_22, %c0_23, %c0_24], %42 {strides = array<i32>} : memref<2x16x1xf32, #tpu.memory_space<vmem>>, vector<1x16x1xf32>,
      %c0_25 = arith.constant 0 : index
      %c0_26 = arith.constant 0 : index
      %c0_27 = arith.constant 0 : index
      %43 = vector.load %arg8[%c0_25, %c0_26, %c0_27] : memref<2x16x1xf32, #tpu.memory_space<vmem>>, vector<1x16x1xf32>
      %44 = vector.shape_cast %43 : vector<1x16x1xf32> to vector<16x1xf32>
      %45 = vector.shape_cast %30 : vector<16x1xf32> to vector<1x16x1xf32>
      tpu.vector_store %arg8[%c0_25, %c0_26, %c0_27], %45 {strides = array<i32>} : memref<2x16x1xf32, #tpu.memory_space<vmem>>, vector<1x16x1xf32>,
      %c0_28 = arith.constant 0 : index
      %c0_29 = arith.constant 0 : index
      %46 = vector.load %arg7[%c0_28, %c0_29] : memref<16x128xf32, #tpu.memory_space<vmem>>, vector<16x64xf32>
      %47 = vector.broadcast %32 : vector<16x1xf32> to vector<16x64xf32>
      %48 = arith.mulf %47, %46 : vector<16x64xf32>
      %49 = arith.truncf %35 : vector<16x16xf32> to vector<16x16xbf16>
      %cst_30 = arith.constant dense<0.000000e+00> : vector<16x64xf32>
      %50 = tpu.matmul %49, %20, %cst_30 {dimension_numbers = #tpu.dot_dimension_numbers<[1], [0], [0], [1], [0, 0, 1, 1], [], []>} : vector<16x16xbf16>, vector<16x64xbf16>, vector<16x64xf32> -> vector<16x64xf32>
      %51 = arith.addf %48, %50 : vector<16x64xf32>
      %c0_31 = arith.constant 0 : index
      %c0_32 = arith.constant 0 : index
      %52 = vector.load %arg7[%c0_31, %c0_32] : memref<16x128xf32, #tpu.memory_space<vmem>>, vector<16x64xf32>
      tpu.vector_store %arg7[%c0_31, %c0_32], %51 {strides = array<i32>} : memref<16x128xf32, #tpu.memory_space<vmem>>, vector<16x64xf32>,
      %53 = vector.extract_strided_slice %13 {offsets = [0, 64], sizes = [16, 64], strides = [1, 1]} : vector<16x128xbf16> to vector<16x64xbf16>
      %54 = vector.extract_strided_slice %15 {offsets = [0, 64], sizes = [16, 64], strides = [1, 1]} : vector<16x128xbf16> to vector<16x64xbf16>
      %55 = vector.extract_strided_slice %17 {offsets = [0, 64], sizes = [16, 64], strides = [1, 1]} : vector<16x128xbf16> to vector<16x64xbf16>
      %cst_33 = arith.constant dense<0.000000e+00> : vector<16x16xf32>
      %56 = tpu.matmul %53, %54, %cst_33 {dimension_numbers = #tpu.dot_dimension_numbers<[1], [1], [0], [0], [0, 0, 1, 0], [], []>} : vector<16x64xbf16>, vector<16x64xbf16>, vector<16x16xf32> -> vector<16x16xf32>
      %cst_34 = arith.constant 1.250000e-01 : f32
      %57 = vector.broadcast %cst_34 : f32 to vector<16x16xf32>
      %58 = arith.mulf %56, %57 : vector<16x16xf32>
      %c1 = arith.constant 1 : index
      %c0_35 = arith.constant 0 : index
      %c0_36 = arith.constant 0 : index
      %59 = vector.load %arg8[%c1, %c0_35, %c0_36] : memref<2x16x1xf32, #tpu.memory_space<vmem>>, vector<1x16x1xf32>
      %60 = vector.shape_cast %59 : vector<1x16x1xf32> to vector<16x1xf32>
      %c1_37 = arith.constant 1 : index
      %c0_38 = arith.constant 0 : index
      %c0_39 = arith.constant 0 : index
      %61 = vector.load %arg9[%c1_37, %c0_38, %c0_39] : memref<2x16x1xf32, #tpu.memory_space<vmem>>, vector<1x16x1xf32>
      %62 = vector.shape_cast %61 : vector<1x16x1xf32> to vector<16x1xf32>
      %cst_40 = arith.constant dense<0xFF800000> : vector<16xf32>
      %63 = vector.multi_reduction <maximumf>, %58, %cst_40 [1] : vector<16x16xf32> to vector<16xf32>
      %64 = vector.shape_cast %63 : vector<16xf32> to vector<16x1xf32>
      %65 = arith.maximumf %60, %64 : vector<16x1xf32>
      %66 = arith.subf %60, %65 : vector<16x1xf32>
      %67 = math.exp %66 : vector<16x1xf32>
      %68 = vector.broadcast %65 : vector<16x1xf32> to vector<16x16xf32>
      %69 = arith.subf %58, %68 : vector<16x16xf32>
      %70 = math.exp %69 : vector<16x16xf32>
      %71 = arith.mulf %67, %62 : vector<16x1xf32>
      %cst_41 = arith.constant dense<0.000000e+00> : vector<16xf32>
      %72 = vector.multi_reduction <add>, %70, %cst_41 [1] : vector<16x16xf32> to vector<16xf32>
      %73 = vector.shape_cast %72 : vector<16xf32> to vector<16x1xf32>
      %74 = arith.addf %71, %73 : vector<16x1xf32>
      %c1_42 = arith.constant 1 : index
      %c0_43 = arith.constant 0 : index
      %c0_44 = arith.constant 0 : index
      %75 = vector.load %arg9[%c1_42, %c0_43, %c0_44] : memref<2x16x1xf32, #tpu.memory_space<vmem>>, vector<1x16x1xf32>
      %76 = vector.shape_cast %75 : vector<1x16x1xf32> to vector<16x1xf32>
      %77 = vector.shape_cast %74 : vector<16x1xf32> to vector<1x16x1xf32>
      tpu.vector_store %arg9[%c1_42, %c0_43, %c0_44], %77 {strides = array<i32>} : memref<2x16x1xf32, #tpu.memory_space<vmem>>, vector<1x16x1xf32>,
      %c1_45 = arith.constant 1 : index
      %c0_46 = arith.constant 0 : index
      %c0_47 = arith.constant 0 : index
      %78 = vector.load %arg8[%c1_45, %c0_46, %c0_47] : memref<2x16x1xf32, #tpu.memory_space<vmem>>, vector<1x16x1xf32>
      %79 = vector.shape_cast %78 : vector<1x16x1xf32> to vector<16x1xf32>
      %80 = vector.shape_cast %65 : vector<16x1xf32> to vector<1x16x1xf32>
      tpu.vector_store %arg8[%c1_45, %c0_46, %c0_47], %80 {strides = array<i32>} : memref<2x16x1xf32, #tpu.memory_space<vmem>>, vector<1x16x1xf32>,
      %c0_48 = arith.constant 0 : index
      %c64 = arith.constant 64 : index
      %81 = vector.load %arg7[%c0_48, %c64] : memref<16x128xf32, #tpu.memory_space<vmem>>, vector<16x64xf32>
      %82 = vector.broadcast %67 : vector<16x1xf32> to vector<16x64xf32>
      %83 = arith.mulf %82, %81 : vector<16x64xf32>
      %84 = arith.truncf %70 : vector<16x16xf32> to vector<16x16xbf16>
      %cst_49 = arith.constant dense<0.000000e+00> : vector<16x64xf32>
      %85 = tpu.matmul %84, %55, %cst_49 {dimension_numbers = #tpu.dot_dimension_numbers<[1], [0], [0], [1], [0, 0, 1, 1], [], []>} : vector<16x16xbf16>, vector<16x64xbf16>, vector<16x64xf32> -> vector<16x64xf32>
      %86 = arith.addf %83, %85 : vector<16x64xf32>
      %c0_50 = arith.constant 0 : index
      %c64_51 = arith.constant 64 : index
      %87 = vector.load %arg7[%c0_50, %c64_51] : memref<16x128xf32, #tpu.memory_space<vmem>>, vector<16x64xf32>
      tpu.vector_store %arg7[%c0_50, %c64_51], %86 {strides = array<i32>} : memref<16x128xf32, #tpu.memory_space<vmem>>, vector<16x64xf32>,
    } else {
    }
    %6 = arith.cmpi eq, %arg2, %arg1 : i32
    %7 = arith.extui %6 : i1 to i32
    %c0_i32_2 = arith.constant 0 : i32
    %8 = arith.cmpi ne, %7, %c0_i32_2 : i32
    scf.if %8 {
      %c0 = arith.constant 0 : index
      %c0_5 = arith.constant 0 : index
      %c0_6 = arith.constant 0 : index
      %12 = vector.load %arg3[%c0, %c0_5, %c0_6] : memref<1x16x128xbf16, #tpu.memory_space<vmem>>, vector<1x16x128xbf16>
      %13 = vector.shape_cast %12 : vector<1x16x128xbf16> to vector<16x128xbf16>
      %c0_7 = arith.constant 0 : index
      %c0_8 = arith.constant 0 : index
      %c0_9 = arith.constant 0 : index
      %14 = vector.load %arg4[%c0_7, %c0_8, %c0_9] : memref<1x16x128xbf16, #tpu.memory_space<vmem>>, vector<1x16x128xbf16>
      %15 = vector.shape_cast %14 : vector<1x16x128xbf16> to vector<16x128xbf16>
      %c0_10 = arith.constant 0 : index
      %c0_11 = arith.constant 0 : index
      %c0_12 = arith.constant 0 : index
      %16 = vector.load %arg5[%c0_10, %c0_11, %c0_12] : memref<1x16x128xbf16, #tpu.memory_space<vmem>>, vector<1x16x128xbf16>
      %17 = vector.shape_cast %16 : vector<1x16x128xbf16> to vector<16x128xbf16>
      %18 = tpu.iota {dimensions = array<i32: 0>} : vector<16x16xi32>
      %19 = tpu.iota {dimensions = array<i32: 1>} : vector<16x16xi32>
      %20 = arith.cmpi sle, %19, %18 : vector<16x16xi32>
      %21 = vector.extract_strided_slice %13 {offsets = [0, 0], sizes = [16, 64], strides = [1, 1]} : vector<16x128xbf16> to vector<16x64xbf16>
      %22 = vector.extract_strided_slice %15 {offsets = [0, 0], sizes = [16, 64], strides = [1, 1]} : vector<16x128xbf16> to vector<16x64xbf16>
      %23 = vector.extract_strided_slice %17 {offsets = [0, 0], sizes = [16, 64], strides = [1, 1]} : vector<16x128xbf16> to vector<16x64xbf16>
      %cst = arith.constant dense<0.000000e+00> : vector<16x16xf32>
      %24 = tpu.matmul %21, %22, %cst {dimension_numbers = #tpu.dot_dimension_numbers<[1], [1], [0], [0], [0, 0, 1, 0], [], []>} : vector<16x64xbf16>, vector<16x64xbf16>, vector<16x16xf32> -> vector<16x16xf32>
      %cst_13 = arith.constant 1.250000e-01 : f32
      %25 = vector.broadcast %cst_13 : f32 to vector<16x16xf32>
      %26 = arith.mulf %24, %25 : vector<16x16xf32>
      %cst_14 = arith.constant -1.000000e+30 : f32
      %27 = vector.broadcast %cst_14 : f32 to vector<16x16xf32>
      %28 = arith.select %20, %26, %27 : vector<16x16xi1>, vector<16x16xf32>
      %c0_15 = arith.constant 0 : index
      %c0_16 = arith.constant 0 : index
      %c0_17 = arith.constant 0 : index
      %29 = vector.load %arg8[%c0_15, %c0_16, %c0_17] : memref<2x16x1xf32, #tpu.memory_space<vmem>>, vector<1x16x1xf32>
      %30 = vector.shape_cast %29 : vector<1x16x1xf32> to vector<16x1xf32>
      %c0_18 = arith.constant 0 : index
      %c0_19 = arith.constant 0 : index
      %c0_20 = arith.constant 0 : index
      %31 = vector.load %arg9[%c0_18, %c0_19, %c0_20] : memref<2x16x1xf32, #tpu.memory_space<vmem>>, vector<1x16x1xf32>
      %32 = vector.shape_cast %31 : vector<1x16x1xf32> to vector<16x1xf32>
      %cst_21 = arith.constant dense<0xFF800000> : vector<16xf32>
      %33 = vector.multi_reduction <maximumf>, %28, %cst_21 [1] : vector<16x16xf32> to vector<16xf32>
      %34 = vector.shape_cast %33 : vector<16xf32> to vector<16x1xf32>
      %35 = arith.maximumf %30, %34 : vector<16x1xf32>
      %36 = arith.subf %30, %35 : vector<16x1xf32>
      %37 = math.exp %36 : vector<16x1xf32>
      %38 = vector.broadcast %35 : vector<16x1xf32> to vector<16x16xf32>
      %39 = arith.subf %28, %38 : vector<16x16xf32>
      %40 = math.exp %39 : vector<16x16xf32>
      %41 = arith.mulf %37, %32 : vector<16x1xf32>
      %cst_22 = arith.constant dense<0.000000e+00> : vector<16xf32>
      %42 = vector.multi_reduction <add>, %40, %cst_22 [1] : vector<16x16xf32> to vector<16xf32>
      %43 = vector.shape_cast %42 : vector<16xf32> to vector<16x1xf32>
      %44 = arith.addf %41, %43 : vector<16x1xf32>
      %c0_23 = arith.constant 0 : index
      %c0_24 = arith.constant 0 : index
      %c0_25 = arith.constant 0 : index
      %45 = vector.load %arg9[%c0_23, %c0_24, %c0_25] : memref<2x16x1xf32, #tpu.memory_space<vmem>>, vector<1x16x1xf32>
      %46 = vector.shape_cast %45 : vector<1x16x1xf32> to vector<16x1xf32>
      %47 = vector.shape_cast %44 : vector<16x1xf32> to vector<1x16x1xf32>
      tpu.vector_store %arg9[%c0_23, %c0_24, %c0_25], %47 {strides = array<i32>} : memref<2x16x1xf32, #tpu.memory_space<vmem>>, vector<1x16x1xf32>,
      %c0_26 = arith.constant 0 : index
      %c0_27 = arith.constant 0 : index
      %c0_28 = arith.constant 0 : index
      %48 = vector.load %arg8[%c0_26, %c0_27, %c0_28] : memref<2x16x1xf32, #tpu.memory_space<vmem>>, vector<1x16x1xf32>
      %49 = vector.shape_cast %48 : vector<1x16x1xf32> to vector<16x1xf32>
      %50 = vector.shape_cast %35 : vector<16x1xf32> to vector<1x16x1xf32>
      tpu.vector_store %arg8[%c0_26, %c0_27, %c0_28], %50 {strides = array<i32>} : memref<2x16x1xf32, #tpu.memory_space<vmem>>, vector<1x16x1xf32>,
      %c0_29 = arith.constant 0 : index
      %c0_30 = arith.constant 0 : index
      %51 = vector.load %arg7[%c0_29, %c0_30] : memref<16x128xf32, #tpu.memory_space<vmem>>, vector<16x64xf32>
      %52 = vector.broadcast %37 : vector<16x1xf32> to vector<16x64xf32>
      %53 = arith.mulf %52, %51 : vector<16x64xf32>
      %54 = arith.truncf %40 : vector<16x16xf32> to vector<16x16xbf16>
      %cst_31 = arith.constant dense<0.000000e+00> : vector<16x64xf32>
      %55 = tpu.matmul %54, %23, %cst_31 {dimension_numbers = #tpu.dot_dimension_numbers<[1], [0], [0], [1], [0, 0, 1, 1], [], []>} : vector<16x16xbf16>, vector<16x64xbf16>, vector<16x64xf32> -> vector<16x64xf32>
      %56 = arith.addf %53, %55 : vector<16x64xf32>
      %c0_32 = arith.constant 0 : index
      %c0_33 = arith.constant 0 : index
      %57 = vector.load %arg7[%c0_32, %c0_33] : memref<16x128xf32, #tpu.memory_space<vmem>>, vector<16x64xf32>
      tpu.vector_store %arg7[%c0_32, %c0_33], %56 {strides = array<i32>} : memref<16x128xf32, #tpu.memory_space<vmem>>, vector<16x64xf32>,
      %58 = vector.extract_strided_slice %13 {offsets = [0, 64], sizes = [16, 64], strides = [1, 1]} : vector<16x128xbf16> to vector<16x64xbf16>
      %59 = vector.extract_strided_slice %15 {offsets = [0, 64], sizes = [16, 64], strides = [1, 1]} : vector<16x128xbf16> to vector<16x64xbf16>
      %60 = vector.extract_strided_slice %17 {offsets = [0, 64], sizes = [16, 64], strides = [1, 1]} : vector<16x128xbf16> to vector<16x64xbf16>
      %cst_34 = arith.constant dense<0.000000e+00> : vector<16x16xf32>
      %61 = tpu.matmul %58, %59, %cst_34 {dimension_numbers = #tpu.dot_dimension_numbers<[1], [1], [0], [0], [0, 0, 1, 0], [], []>} : vector<16x64xbf16>, vector<16x64xbf16>, vector<16x16xf32> -> vector<16x16xf32>
      %cst_35 = arith.constant 1.250000e-01 : f32
      %62 = vector.broadcast %cst_35 : f32 to vector<16x16xf32>
      %63 = arith.mulf %61, %62 : vector<16x16xf32>
      %cst_36 = arith.constant -1.000000e+30 : f32
      %64 = vector.broadcast %cst_36 : f32 to vector<16x16xf32>
      %65 = arith.select %20, %63, %64 : vector<16x16xi1>, vector<16x16xf32>
      %c1 = arith.constant 1 : index
      %c0_37 = arith.constant 0 : index
      %c0_38 = arith.constant 0 : index
      %66 = vector.load %arg8[%c1, %c0_37, %c0_38] : memref<2x16x1xf32, #tpu.memory_space<vmem>>, vector<1x16x1xf32>
      %67 = vector.shape_cast %66 : vector<1x16x1xf32> to vector<16x1xf32>
      %c1_39 = arith.constant 1 : index
      %c0_40 = arith.constant 0 : index
      %c0_41 = arith.constant 0 : index
      %68 = vector.load %arg9[%c1_39, %c0_40, %c0_41] : memref<2x16x1xf32, #tpu.memory_space<vmem>>, vector<1x16x1xf32>
      %69 = vector.shape_cast %68 : vector<1x16x1xf32> to vector<16x1xf32>
      %cst_42 = arith.constant dense<0xFF800000> : vector<16xf32>
      %70 = vector.multi_reduction <maximumf>, %65, %cst_42 [1] : vector<16x16xf32> to vector<16xf32>
      %71 = vector.shape_cast %70 : vector<16xf32> to vector<16x1xf32>
      %72 = arith.maximumf %67, %71 : vector<16x1xf32>
      %73 = arith.subf %67, %72 : vector<16x1xf32>
      %74 = math.exp %73 : vector<16x1xf32>
      %75 = vector.broadcast %72 : vector<16x1xf32> to vector<16x16xf32>
      %76 = arith.subf %65, %75 : vector<16x16xf32>
      %77 = math.exp %76 : vector<16x16xf32>
      %78 = arith.mulf %74, %69 : vector<16x1xf32>
      %cst_43 = arith.constant dense<0.000000e+00> : vector<16xf32>
      %79 = vector.multi_reduction <add>, %77, %cst_43 [1] : vector<16x16xf32> to vector<16xf32>
      %80 = vector.shape_cast %79 : vector<16xf32> to vector<16x1xf32>
      %81 = arith.addf %78, %80 : vector<16x1xf32>
      %c1_44 = arith.constant 1 : index
      %c0_45 = arith.constant 0 : index
      %c0_46 = arith.constant 0 : index
      %82 = vector.load %arg9[%c1_44, %c0_45, %c0_46] : memref<2x16x1xf32, #tpu.memory_space<vmem>>, vector<1x16x1xf32>
      %83 = vector.shape_cast %82 : vector<1x16x1xf32> to vector<16x1xf32>
      %84 = vector.shape_cast %81 : vector<16x1xf32> to vector<1x16x1xf32>
      tpu.vector_store %arg9[%c1_44, %c0_45, %c0_46], %84 {strides = array<i32>} : memref<2x16x1xf32, #tpu.memory_space<vmem>>, vector<1x16x1xf32>,
      %c1_47 = arith.constant 1 : index
      %c0_48 = arith.constant 0 : index
      %c0_49 = arith.constant 0 : index
      %85 = vector.load %arg8[%c1_47, %c0_48, %c0_49] : memref<2x16x1xf32, #tpu.memory_space<vmem>>, vector<1x16x1xf32>
      %86 = vector.shape_cast %85 : vector<1x16x1xf32> to vector<16x1xf32>
      %87 = vector.shape_cast %72 : vector<16x1xf32> to vector<1x16x1xf32>
      tpu.vector_store %arg8[%c1_47, %c0_48, %c0_49], %87 {strides = array<i32>} : memref<2x16x1xf32, #tpu.memory_space<vmem>>, vector<1x16x1xf32>,
      %c0_50 = arith.constant 0 : index
      %c64 = arith.constant 64 : index
      %88 = vector.load %arg7[%c0_50, %c64] : memref<16x128xf32, #tpu.memory_space<vmem>>, vector<16x64xf32>
      %89 = vector.broadcast %74 : vector<16x1xf32> to vector<16x64xf32>
      %90 = arith.mulf %89, %88 : vector<16x64xf32>
      %91 = arith.truncf %77 : vector<16x16xf32> to vector<16x16xbf16>
      %cst_51 = arith.constant dense<0.000000e+00> : vector<16x64xf32>
      %92 = tpu.matmul %91, %60, %cst_51 {dimension_numbers = #tpu.dot_dimension_numbers<[1], [0], [0], [1], [0, 0, 1, 1], [], []>} : vector<16x16xbf16>, vector<16x64xbf16>, vector<16x64xf32> -> vector<16x64xf32>
      %93 = arith.addf %90, %92 : vector<16x64xf32>
      %c0_52 = arith.constant 0 : index
      %c64_53 = arith.constant 64 : index
      %94 = vector.load %arg7[%c0_52, %c64_53] : memref<16x128xf32, #tpu.memory_space<vmem>>, vector<16x64xf32>
      tpu.vector_store %arg7[%c0_52, %c64_53], %93 {strides = array<i32>} : memref<16x128xf32, #tpu.memory_space<vmem>>, vector<16x64xf32>,
    } else {
    }
    %c0_i32_3 = arith.constant 0 : i32
    %9 = arith.cmpi eq, %arg2, %c0_i32_3 : i32
    %10 = arith.extui %9 : i1 to i32
    %c0_i32_4 = arith.constant 0 : i32
    %11 = arith.cmpi ne, %10, %c0_i32_4 : i32
    scf.if %11 {
      %c0 = arith.constant 0 : index
      %c0_5 = arith.constant 0 : index
      %c0_6 = arith.constant 0 : index
      %12 = vector.load %arg9[%c0, %c0_5, %c0_6] : memref<2x16x1xf32, #tpu.memory_space<vmem>>, vector<1x16x1xf32>
      %13 = vector.shape_cast %12 : vector<1x16x1xf32> to vector<16x1xf32>
      %14 = tpu.reciprocal %13 {approx = true} : vector<16x1xf32> -> vector<16x1xf32>
      %c0_7 = arith.constant 0 : index
      %c0_8 = arith.constant 0 : index
      %15 = vector.load %arg7[%c0_7, %c0_8] : memref<16x128xf32, #tpu.memory_space<vmem>>, vector<16x64xf32>
      %16 = vector.broadcast %14 : vector<16x1xf32> to vector<16x64xf32>
      %17 = arith.mulf %15, %16 : vector<16x64xf32>
      %18 = arith.truncf %17 : vector<16x64xf32> to vector<16x64xbf16>
      %c0_9 = arith.constant 0 : index
      %c0_10 = arith.constant 0 : index
      %c0_11 = arith.constant 0 : index
      %19 = vector.load %arg6[%c0_9, %c0_10, %c0_11] : memref<1x16x128xbf16, #tpu.memory_space<vmem>>, vector<1x16x64xbf16>
      %20 = vector.shape_cast %19 : vector<1x16x64xbf16> to vector<16x64xbf16>
      %21 = vector.shape_cast %18 : vector<16x64xbf16> to vector<1x16x64xbf16>
      tpu.vector_store %arg6[%c0_9, %c0_10, %c0_11], %21 {strides = array<i32>} : memref<1x16x128xbf16, #tpu.memory_space<vmem>>, vector<1x16x64xbf16>,
      %c1 = arith.constant 1 : index
      %c0_12 = arith.constant 0 : index
      %c0_13 = arith.constant 0 : index
      %22 = vector.load %arg9[%c1, %c0_12, %c0_13] : memref<2x16x1xf32, #tpu.memory_space<vmem>>, vector<1x16x1xf32>
      %23 = vector.shape_cast %22 : vector<1x16x1xf32> to vector<16x1xf32>
      %24 = tpu.reciprocal %23 {approx = true} : vector<16x1xf32> -> vector<16x1xf32>
      %c0_14 = arith.constant 0 : index
      %c64 = arith.constant 64 : index
      %25 = vector.load %arg7[%c0_14, %c64] : memref<16x128xf32, #tpu.memory_space<vmem>>, vector<16x64xf32>
      %26 = vector.broadcast %24 : vector<16x1xf32> to vector<16x64xf32>
      %27 = arith.mulf %25, %26 : vector<16x64xf32>
      %28 = arith.truncf %27 : vector<16x64xf32> to vector<16x64xbf16>
      %c0_15 = arith.constant 0 : index
      %c0_16 = arith.constant 0 : index
      %c64_17 = arith.constant 64 : index
      %29 = vector.load %arg6[%c0_15, %c0_16, %c64_17] : memref<1x16x128xbf16, #tpu.memory_space<vmem>>, vector<1x16x64xbf16>
      %30 = vector.shape_cast %29 : vector<1x16x64xbf16> to vector<16x64xbf16>
      %31 = vector.shape_cast %28 : vector<16x64xbf16> to vector<1x16x64xbf16>
      tpu.vector_store %arg6[%c0_15, %c0_16, %c64_17], %31 {strides = array<i32>} : memref<1x16x128xbf16, #tpu.memory_space<vmem>>, vector<1x16x64xbf16>,
    } else {
    }
    return
  }
  func.func @transform_0(%arg0: i32, %arg1: i32, %arg2: i32) -> (i32, i32, i32) {
    %c0_i32 = arith.constant 0 : i32
    %c0_i32_0 = arith.constant 0 : i32
    return %arg0, %arg1, %c0_i32 : i32, i32, i32
  }
  func.func @transform_1(%arg0: i32, %arg1: i32, %arg2: i32) -> (i32, i32, i32) {
    %0 = arith.minsi %arg2, %arg1 : i32
    %c1_i32 = arith.constant 1 : i32
    %c0_i32 = arith.constant 0 : i32
    return %arg0, %0, %c1_i32 : i32, i32, i32
  }
  func.func @transform_2(%arg0: i32, %arg1: i32, %arg2: i32) -> (i32, i32, i32) {
    %0 = arith.minsi %arg2, %arg1 : i32
    %c2_i32 = arith.constant 2 : i32
    %c0_i32 = arith.constant 0 : i32
    return %arg0, %0, %c2_i32 : i32, i32, i32
  }
  func.func @transform_3(%arg0: i32, %arg1: i32, %arg2: i32) -> (i32, i32, i32) {
    %c0_i32 = arith.constant 0 : i32
    %c0_i32_0 = arith.constant 0 : i32
    return %arg0, %arg1, %c0_i32 : i32, i32, i32
  }
}

module attributes {stable_mosaic.version = 11 : i64} {
  func.func @_matmul_kernel(%arg0: i32, %arg1: i32, %arg2: i32, %arg3: memref<32x128xbf16, #tpu.memory_space<vmem>>, %arg4: memref<256x128xbf16, #tpu.memory_space<vmem>>, %arg5: memref<1x128xf32, #tpu.memory_space<vmem>>, %arg6: memref<1x128xf32, #tpu.memory_space<vmem>>, %arg7: memref<32x256xbf16, #tpu.memory_space<vmem>>) attributes {dimension_semantics = [#tpu.dimension_semantics<parallel>, #tpu.dimension_semantics<parallel>, #tpu.dimension_semantics<arbitrary>], iteration_bounds = array<i64: 1, 1, 1>, scalar_prefetch = 0 : i64, scratch_operands = 0 : i64, tpu.core_type = #tpu.core_type<tc>, window_params = [{transform_indices = @transform_0, window_bounds = array<i64: 32, 128>}, {transform_indices = @transform_1, window_bounds = array<i64: 256, 128>}, {pipeline_mode = #tpu.pipeline_mode<synchronous>, transform_indices = @transform_2, window_bounds = array<i64: 1, 128>}, {pipeline_mode = #tpu.pipeline_mode<synchronous>, transform_indices = @transform_3, window_bounds = array<i64: 1, 128>}, {transform_indices = @transform_4, window_bounds = array<i64: 32, 256>}]} {
    %c0 = arith.constant 0 : index
    %c0_0 = arith.constant 0 : index
    %0 = vector.load %arg3[%c0, %c0_0] : memref<32x128xbf16, #tpu.memory_space<vmem>>, vector<32x128xbf16>
    %1 = arith.extf %0 : vector<32x128xbf16> to vector<32x128xf32>
    %c0_1 = arith.constant 0 : index
    %c0_2 = arith.constant 0 : index
    %2 = vector.load %arg5[%c0_1, %c0_2] : memref<1x128xf32, #tpu.memory_space<vmem>>, vector<1x128xf32>
    %c0_3 = arith.constant 0 : index
    %c0_4 = arith.constant 0 : index
    %3 = vector.load %arg6[%c0_3, %c0_4] : memref<1x128xf32, #tpu.memory_space<vmem>>, vector<1x128xf32>
    %cst = arith.constant dense<0.000000e+00> : vector<32xf32>
    %4 = vector.multi_reduction <add>, %1, %cst [1] : vector<32x128xf32> to vector<32xf32>
    %5 = vector.shape_cast %4 : vector<32xf32> to vector<32x1xf32>
    %cst_5 = arith.constant 1.280000e+02 : f32
    %6 = vector.broadcast %cst_5 : f32 to vector<32x1xf32>
    %7 = arith.divf %5, %6 : vector<32x1xf32>
    %8 = vector.broadcast %7 : vector<32x1xf32> to vector<32x128xf32>
    %9 = arith.subf %1, %8 : vector<32x128xf32>
    %10 = arith.mulf %9, %9 : vector<32x128xf32>
    %cst_6 = arith.constant dense<0.000000e+00> : vector<32xf32>
    %11 = vector.multi_reduction <add>, %10, %cst_6 [1] : vector<32x128xf32> to vector<32xf32>
    %12 = vector.shape_cast %11 : vector<32xf32> to vector<32x1xf32>
    %cst_7 = arith.constant 1.280000e+02 : f32
    %13 = vector.broadcast %cst_7 : f32 to vector<32x1xf32>
    %14 = arith.divf %12, %13 : vector<32x1xf32>
    %15 = vector.broadcast %7 : vector<32x1xf32> to vector<32x128xf32>
    %16 = arith.subf %1, %15 : vector<32x128xf32>
    %cst_8 = arith.constant 9.99999974E-6 : f32
    %17 = vector.broadcast %cst_8 : f32 to vector<32x1xf32>
    %18 = arith.addf %14, %17 : vector<32x1xf32>
    %19 = math.rsqrt %18 : vector<32x1xf32>
    %20 = vector.broadcast %19 : vector<32x1xf32> to vector<32x128xf32>
    %21 = arith.mulf %16, %20 : vector<32x128xf32>
    %22 = vector.broadcast %2 : vector<1x128xf32> to vector<32x128xf32>
    %23 = arith.mulf %21, %22 : vector<32x128xf32>
    %24 = vector.broadcast %3 : vector<1x128xf32> to vector<32x128xf32>
    %25 = arith.addf %23, %24 : vector<32x128xf32>
    %26 = arith.truncf %25 : vector<32x128xf32> to vector<32x128xbf16>
    %c0_9 = arith.constant 0 : index
    %c0_10 = arith.constant 0 : index
    %27 = vector.load %arg4[%c0_9, %c0_10] : memref<256x128xbf16, #tpu.memory_space<vmem>>, vector<256x128xbf16>
    %cst_11 = arith.constant dense<0.000000e+00> : vector<32x256xf32>
    %28 = tpu.matmul %26, %27, %cst_11 {dimension_numbers = #tpu.dot_dimension_numbers<[1], [1], [0], [0], [0, 0, 1, 0], [], []>} : vector<32x128xbf16>, vector<256x128xbf16>, vector<32x256xf32> -> vector<32x256xf32>
    %29 = arith.truncf %28 : vector<32x256xf32> to vector<32x256xbf16>
    %c0_12 = arith.constant 0 : index
    %c0_13 = arith.constant 0 : index
    %30 = vector.load %arg7[%c0_12, %c0_13] : memref<32x256xbf16, #tpu.memory_space<vmem>>, vector<32x256xbf16>
    tpu.vector_store %arg7[%c0_12, %c0_13], %29 {strides = array<i32>} : memref<32x256xbf16, #tpu.memory_space<vmem>>, vector<32x256xbf16>,
    return
  }
  func.func @transform_0(%arg0: i32, %arg1: i32, %arg2: i32) -> (i32, i32) {
    %c0_i32 = arith.constant 0 : i32
    return %arg0, %arg2 : i32, i32
  }
  func.func @transform_1(%arg0: i32, %arg1: i32, %arg2: i32) -> (i32, i32) {
    %c0_i32 = arith.constant 0 : i32
    return %arg1, %arg2 : i32, i32
  }
  func.func @transform_2(%arg0: i32, %arg1: i32, %arg2: i32) -> (i32, i32) {
    %c0_i32 = arith.constant 0 : i32
    %c0_i32_0 = arith.constant 0 : i32
    %c0_i32_1 = arith.constant 0 : i32
    return %c0_i32, %c0_i32_0 : i32, i32
  }
  func.func @transform_3(%arg0: i32, %arg1: i32, %arg2: i32) -> (i32, i32) {
    %c0_i32 = arith.constant 0 : i32
    %c0_i32_0 = arith.constant 0 : i32
    %c0_i32_1 = arith.constant 0 : i32
    return %c0_i32, %c0_i32_0 : i32, i32
  }
  func.func @transform_4(%arg0: i32, %arg1: i32, %arg2: i32) -> (i32, i32) {
    %c0_i32 = arith.constant 0 : i32
    return %arg0, %arg1 : i32, i32
  }
}

module attributes {stable_mosaic.version = 11 : i64} {
  func.func @_matmul_kernel(%arg0: i32, %arg1: i32, %arg2: i32, %arg3: memref<32x512xbf16, #tpu.memory_space<vmem>>, %arg4: memref<512x128xbf16, #tpu.memory_space<vmem>>, %arg5: memref<1x128xf32, #tpu.memory_space<vmem>>, %arg6: memref<32x128xbf16, #tpu.memory_space<vmem>>, %arg7: memref<1x128xf32, #tpu.memory_space<vmem>>, %arg8: memref<1x128xf32, #tpu.memory_space<vmem>>, %arg9: memref<32x128xbf16, #tpu.memory_space<vmem>>) attributes {dimension_semantics = [#tpu.dimension_semantics<parallel>, #tpu.dimension_semantics<parallel>, #tpu.dimension_semantics<arbitrary>], iteration_bounds = array<i64: 1, 1, 1>, scalar_prefetch = 0 : i64, scratch_operands = 0 : i64, tpu.core_type = #tpu.core_type<tc>, window_params = [{transform_indices = @transform_0, window_bounds = array<i64: 32, 512>}, {transform_indices = @transform_1, window_bounds = array<i64: 512, 128>}, {transform_indices = @transform_2, window_bounds = array<i64: 1, 128>}, {transform_indices = @transform_3, window_bounds = array<i64: 32, 128>}, {transform_indices = @transform_4, window_bounds = array<i64: 1, 128>}, {transform_indices = @transform_5, window_bounds = array<i64: 1, 128>}, {transform_indices = @transform_6, window_bounds = array<i64: 32, 128>}]} {
    %c0 = arith.constant 0 : index
    %c0_0 = arith.constant 0 : index
    %0 = vector.load %arg3[%c0, %c0_0] : memref<32x512xbf16, #tpu.memory_space<vmem>>, vector<32x512xbf16>
    %c0_1 = arith.constant 0 : index
    %c0_2 = arith.constant 0 : index
    %1 = vector.load %arg4[%c0_1, %c0_2] : memref<512x128xbf16, #tpu.memory_space<vmem>>, vector<512x128xbf16>
    %cst = arith.constant dense<0.000000e+00> : vector<32x128xf32>
    %2 = tpu.matmul %0, %1, %cst {dimension_numbers = #tpu.dot_dimension_numbers<[1], [0], [0], [1], [0, 0, 1, 1], [], []>} : vector<32x512xbf16>, vector<512x128xbf16>, vector<32x128xf32> -> vector<32x128xf32>
    %c0_3 = arith.constant 0 : index
    %c0_4 = arith.constant 0 : index
    %3 = vector.load %arg5[%c0_3, %c0_4] : memref<1x128xf32, #tpu.memory_space<vmem>>, vector<1x128xf32>
    %4 = vector.broadcast %3 : vector<1x128xf32> to vector<32x128xf32>
    %5 = arith.addf %2, %4 : vector<32x128xf32>
    %c0_5 = arith.constant 0 : index
    %c0_6 = arith.constant 0 : index
    %6 = vector.load %arg6[%c0_5, %c0_6] : memref<32x128xbf16, #tpu.memory_space<vmem>>, vector<32x128xbf16>
    %7 = arith.extf %6 : vector<32x128xbf16> to vector<32x128xf32>
    %c0_7 = arith.constant 0 : index
    %c0_8 = arith.constant 0 : index
    %8 = vector.load %arg7[%c0_7, %c0_8] : memref<1x128xf32, #tpu.memory_space<vmem>>, vector<1x128xf32>
    %c0_9 = arith.constant 0 : index
    %c0_10 = arith.constant 0 : index
    %9 = vector.load %arg8[%c0_9, %c0_10] : memref<1x128xf32, #tpu.memory_space<vmem>>, vector<1x128xf32>
    %cst_11 = arith.constant dense<0.000000e+00> : vector<32xf32>
    %10 = vector.multi_reduction <add>, %7, %cst_11 [1] : vector<32x128xf32> to vector<32xf32>
    %11 = vector.shape_cast %10 : vector<32xf32> to vector<32x1xf32>
    %cst_12 = arith.constant 1.280000e+02 : f32
    %12 = vector.broadcast %cst_12 : f32 to vector<32x1xf32>
    %13 = arith.divf %11, %12 : vector<32x1xf32>
    %14 = vector.broadcast %13 : vector<32x1xf32> to vector<32x128xf32>
    %15 = arith.subf %7, %14 : vector<32x128xf32>
    %16 = arith.mulf %15, %15 : vector<32x128xf32>
    %cst_13 = arith.constant dense<0.000000e+00> : vector<32xf32>
    %17 = vector.multi_reduction <add>, %16, %cst_13 [1] : vector<32x128xf32> to vector<32xf32>
    %18 = vector.shape_cast %17 : vector<32xf32> to vector<32x1xf32>
    %cst_14 = arith.constant 1.280000e+02 : f32
    %19 = vector.broadcast %cst_14 : f32 to vector<32x1xf32>
    %20 = arith.divf %18, %19 : vector<32x1xf32>
    %21 = vector.broadcast %13 : vector<32x1xf32> to vector<32x128xf32>
    %22 = arith.subf %7, %21 : vector<32x128xf32>
    %cst_15 = arith.constant 9.99999974E-6 : f32
    %23 = vector.broadcast %cst_15 : f32 to vector<32x1xf32>
    %24 = arith.addf %20, %23 : vector<32x1xf32>
    %25 = math.rsqrt %24 : vector<32x1xf32>
    %26 = vector.broadcast %25 : vector<32x1xf32> to vector<32x128xf32>
    %27 = arith.mulf %22, %26 : vector<32x128xf32>
    %28 = vector.broadcast %8 : vector<1x128xf32> to vector<32x128xf32>
    %29 = arith.mulf %27, %28 : vector<32x128xf32>
    %30 = vector.broadcast %9 : vector<1x128xf32> to vector<32x128xf32>
    %31 = arith.addf %29, %30 : vector<32x128xf32>
    %32 = arith.addf %5, %31 : vector<32x128xf32>
    %33 = arith.truncf %32 : vector<32x128xf32> to vector<32x128xbf16>
    %c0_16 = arith.constant 0 : index
    %c0_17 = arith.constant 0 : index
    %34 = vector.load %arg9[%c0_16, %c0_17] : memref<32x128xbf16, #tpu.memory_space<vmem>>, vector<32x128xbf16>
    tpu.vector_store %arg9[%c0_16, %c0_17], %33 {strides = array<i32>} : memref<32x128xbf16, #tpu.memory_space<vmem>>, vector<32x128xbf16>,
    return
  }
  func.func @transform_0(%arg0: i32, %arg1: i32, %arg2: i32) -> (i32, i32) {
    %c0_i32 = arith.constant 0 : i32
    return %arg0, %arg2 : i32, i32
  }
  func.func @transform_1(%arg0: i32, %arg1: i32, %arg2: i32) -> (i32, i32) {
    %c0_i32 = arith.constant 0 : i32
    return %arg2, %arg1 : i32, i32
  }
  func.func @transform_2(%arg0: i32, %arg1: i32, %arg2: i32) -> (i32, i32) {
    %c0_i32 = arith.constant 0 : i32
    %c0_i32_0 = arith.constant 0 : i32
    return %c0_i32, %arg1 : i32, i32
  }
  func.func @transform_3(%arg0: i32, %arg1: i32, %arg2: i32) -> (i32, i32) {
    %c0_i32 = arith.constant 0 : i32
    return %arg0, %arg1 : i32, i32
  }
  func.func @transform_4(%arg0: i32, %arg1: i32, %arg2: i32) -> (i32, i32) {
    %c0_i32 = arith.constant 0 : i32
    %c0_i32_0 = arith.constant 0 : i32
    return %c0_i32, %arg1 : i32, i32
  }
  func.func @transform_5(%arg0: i32, %arg1: i32, %arg2: i32) -> (i32, i32) {
    %c0_i32 = arith.constant 0 : i32
    %c0_i32_0 = arith.constant 0 : i32
    return %c0_i32, %arg1 : i32, i32
  }
  func.func @transform_6(%arg0: i32, %arg1: i32, %arg2: i32) -> (i32, i32) {
    %c0_i32 = arith.constant 0 : i32
    return %arg0, %arg1 : i32, i32
  }
}

</mosaic_0001>

<bundles_post_ra>
// kernel: gpt_forward.13
= control target key start
LH: loop header
LB: loop body
LE: loop exit
PB: predicated region body
PF: predicated region fallthrough
CT: control target
= control target key end

     0   :  { %11 = vsyncpa [#allocation3], 0  ;;  %s391_s24 = smov [#allocation2]   ;;  %s392_s26 = smov 64   ;;  %s486_s0 = inlined_call_operand.vmem [shape: bf16[32,128], index: 0, kind: input, shape index: {}]   ;;  %s487_s1 = inlined_call_operand.hbm [shape: bf16[128,128], index: 1, kind: input, shape index: {}]   ;;  %s488_s2 = inlined_call_operand.vmem [shape: f32[1,128], index: 2, kind: input, shape index: {}]   ;;  %s489_s3 = inlined_call_operand.vmem [shape: bf16[32,128], index: 3, kind: input, shape index: {}]   ;;  %s490_s4 = inlined_call_operand.vmem [shape: f32[1,128], index: 4, kind: input, shape index: {}]   ;;  %s491_s5 = inlined_call_operand.vmem [shape: f32[1,128], index: 5, kind: input, shape index: {}]   ;;  %s492_s6 = inlined_call_operand.vmem [shape: bf16[32,128], index: 6, kind: output, shape index: {}]  }
   0x1   :  { %s18_s23 = sshll.u32 %s487_s1, 4  ;;  %s20_s25 = sshll.u32 %s391_s24, 4  ;;  %s19_s23 = int_to_ptr.hbm [resolvable:$true] %s18_s23  ;;  %s21_s25 = int_to_ptr.vmem [resolvable:$true] %s20_s25 }
   0x2   :  { %s393_s27 = smov 4  }
   0x3   :  { %26 = dma.hbm_to_vmem [thread:$0]  %s19_s23, 1024, %s21_s25, [#allocation3], %s392_s26, %s392_s26, %s393_s27  }
   0x4   :  { %389 = dma.done.wait [#allocation3], 1024  }
   0x5   :  { %390 = vsyncadd [#allocation3], 4294966272  ;;  %v338_v0 = vld [vmem:[%s489_s3 + $0x8] sm:$0xff]   ;;  %v321_v1 = vld [vmem:[%s489_s3] sm:$0xff]   ;;  %v394_v12 = vmov 128.0  }
   0x6   :  { %v319_v2 = vld [vmem:[#allocation2 + $0x38] sm:$0xff]  ;;  %v326_v3 = vunpack.c.l.bf16 %v338_v0  ;;  %v322_v4 = vunpack.c.l.bf16 %v321_v1  ;;  %v318_v5 = vld [vmem:[#allocation2 + $0x30] sm:$0xff]  ;;  %v317_v6 = vld [vmem:[#allocation2 + $0x28] sm:$0xff]  ;;  %v327_v7 = vunpack.c.h.bf16 %v338_v0  ;;  %v323_v8 = vunpack.c.h.bf16 %v321_v1 }
   0x7   :  { %123 = vmatpush.bf16.msra.mxu0 %v319_v2  ;;  %340 = vmatpush.bf16.msra.mxu1 %v319_v2  ;;  %v316_v9 = vld [vmem:[#allocation2 + $0x20] sm:$0xff]  ;;  %v315_v10 = vld [vmem:[#allocation2 + $0x18] sm:$0xff]  ;;  %v314_v11 = vld [vmem:[#allocation2 + $0x10] sm:$0xff]  ;;  %355 = vrcp.f32 %v394_v12 }
   0x8   :  { %156 = vadd.xlane.f32.xlu1 %v326_v3  ;;  %152 = vadd.xlane.f32.xlu0 %v322_v4  ;;  %v313_v13 = vld [vmem:[#allocation2 + $0x8] sm:$0xff]  ;;  %v312_v14 = vld [vmem:[#allocation2] sm:$0xff] }
   0x9   :  { %v310_v16 = vld [vmem:[%s486_s0] sm:$0xff]  ;;  %v311_v17 = vld [vmem:[%s486_s0 + $0x8] sm:$0xff] }
   0xa   :  { %v353_v12 = vld [vmem:[%s490_s4] ss:$0 sm:$0xff] }
   0xb   :  { %124 = vmatpush.bf16.msra.mxu0 %v318_v5  ;;  %341 = vmatpush.bf16.msra.mxu1 %v318_v5 }
   0xd   :  { %v356_v15 = vpop.eup %355 }
   0xe   :  { %v161_v18 = vmul.f32 128.0, %v356_v15  ;;  %vm165_vm0 = vweird.f32 %v356_v15 }
   0xf   :  { %125 = vmatpush.bf16.msra.mxu0 %v317_v6  ;;  %342 = vmatpush.bf16.msra.mxu1 %v317_v6 }
  0x10   :  { %158 = vadd.xlane.f32.xlu1 %v327_v7  ;;  %154 = vadd.xlane.f32.xlu0 %v323_v8  ;;  %v162_v19 = vsub.f32 1.0, %v161_v18 }
  0x12   :  { %v163_v20 = vmul.f32 %v356_v15, %v162_v19  ;;  %v352_v19 = vld [vmem:[%s488_s2] ss:$0 sm:$0xff] }
  0x13   :  { %126 = vmatpush.bf16.msra.mxu0 %v316_v9  ;;  %343 = vmatpush.bf16.msra.mxu1 %v316_v9 }
  0x14   :  { %v164_v21 = vadd.f32 %v356_v15, %v163_v20  ;;  %v354_v20 = vld [vmem:[%s491_s5] ss:$0 sm:$0xff] }
  0x16   :  { %v166_v22 = vsel %vm165_vm0, %v356_v15, %v164_v21 }
  0x17   :  { %127 = vmatpush.bf16.msra.mxu0 %v315_v10  ;;  %344 = vmatpush.bf16.msra.mxu1 %v315_v10 }
  0x1b   :  { %128 = vmatpush.bf16.msra.mxu0 %v314_v11  ;;  %345 = vmatpush.bf16.msra.mxu1 %v314_v11 }
  0x1f   :  { %129 = vmatpush.bf16.msra.mxu0 %v313_v13  ;;  %346 = vmatpush.bf16.msra.mxu1 %v313_v13 }
  0x23   :  { %130 = vmatpush.bf16.msra.mxu0 %v312_v14  ;;  %347 = vmatpush.bf16.msra.mxu1 %v312_v14 }
  0x26   :  { %131 = vmatmul.bf16.vlgmr.msra.gmra.mxu0 %v310_v16  ;;  %136 = vmatmul.bf16.vlgmr.msra.gmra.mxu1 %v311_v17 }
  0x7b   :  { %v157_v23 = vpop.xlane.xlu1 %156  ;;  %v153_v24 = vpop.xlane.xlu0 %152 }
  0x7c   :  { %v169_v25 = vmul.f32 %v166_v22, %v157_v23  ;;  %v167_v26 = vmul.f32 %v166_v22, %v153_v24 }
  0x7e   :  { %v445_v27 = vsub.f32 %v326_v3, %v169_v25  ;;  %v447_v28 = vsub.f32 %v322_v4, %v167_v26 }
  0x80   :  { %v177_v29 = vmul.f32 %v445_v27, %v445_v27  ;;  %v175_v30 = vmul.f32 %v447_v28, %v447_v28 }
  0x82   :  { %183 = vadd.xlane.f32.xlu0 %v177_v29  ;;  %179 = vadd.xlane.f32.xlu2 %v175_v30 }
  0x83   :  { %v159_v31 = vpop.xlane.xlu1 %158  ;;  %v155_v32 = vpop.xlane.xlu0 %154 }
  0x84   :  { %v170_v33 = vmul.f32 %v166_v22, %v159_v31  ;;  %v168_v34 = vmul.f32 %v166_v22, %v155_v32 }
  0x86   :  { %v453_v35 = vsub.f32 %v327_v7, %v170_v33  ;;  %v455_v36 = vsub.f32 %v323_v8, %v168_v34 }
  0x88   :  { %v178_v37 = vmul.f32 %v453_v35, %v453_v35  ;;  %v176_v38 = vmul.f32 %v455_v36, %v455_v36 }
  0x8a   :  { %185 = vadd.xlane.f32.xlu1 %v178_v37  ;;  %181 = vadd.xlane.f32.xlu2 %v176_v38 }
  0xa3   :  { %v137_v5 = vpop.f32.mrf.mxu1  ;;  %v132_v9 = vpop.f32.mrf.mxu0 }
  0xa4   :  { %v133_v32 = vadd.f32 %v352_v19, %v132_v9 }
  0xab   :  { %v134_v30 = vpop.f32.mrf.mxu0 }
  0xf5   :  { %v180_v39 = vpop.xlane.xlu2 %179  ;;  %v184_v40 = vpop.xlane.xlu0 %183 }
  0xf6   :  { %v187_v41 = vmul.f32 %v180_v39, %v166_v22  ;;  %v189_v42 = vmul.f32 %v184_v40, %v166_v22  ;;  %v135_v39 = vadd.f32 %v352_v19, %v134_v30 }
  0xf8   :  { %v191_v43 = vadd.f32 1e-05, %v187_v41  ;;  %v193_v44 = vadd.f32 1e-05, %v189_v42 }
  0xfa   :  { %357 = vrsqrt.f32 %v191_v43  ;;  %vm201_vm3 = vweird.f32 %v191_v43  ;;  %vm221_vm5 = vweird.f32 %v193_v44 }
  0xfb   :  { %359 = vrsqrt.f32 %v193_v44 }
  0xfd   :  { %v186_v45 = vpop.xlane.xlu1 %185  ;;  %v182_v46 = vpop.xlane.xlu2 %181 }
  0xfe   :  { %v190_v47 = vmul.f32 %v186_v45, %v166_v22  ;;  %v188_v48 = vmul.f32 %v182_v46, %v166_v22 }
 0x100   :  { %v358_v49 = vpop.eup %357  ;;  %v194_v50 = vadd.f32 1e-05, %v190_v47  ;;  %v192_v51 = vadd.f32 1e-05, %v188_v48 }
 0x101   :  { %v360_v52 = vpop.eup %359  ;;  %v196_v53 = vmul.f32 %v358_v49, %v191_v43  ;;  %vm202_vm1 = vweird.f32 %v358_v49 }
 0x102   :  { %v216_v54 = vmul.f32 %v360_v52, %v193_v44  ;;  %361 = vrsqrt.f32 %v194_v50  ;;  %vm222_vm2 = vweird.f32 %v360_v52  ;;  %vm461_vm4 = vmor %vm201_vm3, %vm202_vm1  ;;  %vm231_vm9 = vweird.f32 %v194_v50 }
 0x103   :  { %v197_v55 = vmul.f32 %v358_v49, %v196_v53  ;;  %363 = vrsqrt.f32 %v192_v51  ;;  %vm223_vm6 = vmor %vm221_vm5, %vm222_vm2  ;;  %vm211_vm11 = vweird.f32 %v192_v51 }
 0x104   :  { %v217_v56 = vmul.f32 %v360_v52, %v216_v54 }
 0x105   :  { %v198_v57 = vmul.f32 0.5, %v197_v55 }
 0x106   :  { %v218_v58 = vmul.f32 0.5, %v217_v56 }
 0x107   :  { %v199_v59 = vsub.f32 1.5, %v198_v57 }
 0x108   :  { %v362_v60 = vpop.eup %361  ;;  %v219_v61 = vsub.f32 1.5, %v218_v58 }
 0x109   :  { %v364_v62 = vpop.eup %363  ;;  %v200_v63 = vmul.f32 %v358_v49, %v199_v59  ;;  %v226_v0 = vmul.f32 %v362_v60, %v194_v50  ;;  %vm232_vm7 = vweird.f32 %v362_v60 }
 0x10a   :  { %v220_v2 = vmul.f32 %v360_v52, %v219_v61  ;;  %v206_v3 = vmul.f32 %v364_v62, %v192_v51  ;;  %vm212_vm8 = vweird.f32 %v364_v62  ;;  %vm233_vm10 = vmor %vm231_vm9, %vm232_vm7 }
 0x10b   :  { %v227_v4 = vmul.f32 %v362_v60, %v226_v0  ;;  %v204_v6 = vsel %vm461_vm4, %v358_v49, %v200_v63  ;;  %vm213_vm12 = vmor %vm211_vm11, %vm212_vm8 }
 0x10c   :  { %v224_v7 = vsel %vm223_vm6, %v360_v52, %v220_v2  ;;  %v207_v8 = vmul.f32 %v364_v62, %v206_v3  ;;  %v235_v15 = vmul.f32 %v204_v6, %v447_v28  ;;  %v138_v28 = vadd.f32 %v352_v19, %v137_v5 }
 0x10d   :  { %v228_v10 = vmul.f32 0.5, %v227_v4  ;;  %v237_v13 = vmul.f32 %v224_v7, %v445_v27  ;;  %v139_v27 = vpop.f32.mrf.mxu1 }
 0x10e   :  { %v208_v11 = vmul.f32 0.5, %v207_v8  ;;  %v242_v23 = vmul.f32 %v353_v12, %v235_v15  ;;  %v140_v37 = vadd.f32 %v352_v19, %v139_v27 }
 0x10f   :  { %v229_v14 = vsub.f32 1.5, %v228_v10  ;;  %v244_v21 = vmul.f32 %v353_v12, %v237_v13 }
 0x110   :  { %v209_v16 = vsub.f32 1.5, %v208_v11  ;;  %v249_v33 = vadd.f32 %v354_v20, %v242_v23 }
 0x111   :  { %v230_v17 = vmul.f32 %v362_v60, %v229_v14  ;;  %v251_v29 = vadd.f32 %v354_v20, %v244_v21 }
 0x112   :  { %v210_v18 = vmul.f32 %v364_v62, %v209_v16  ;;  %v253_v43 = vadd.f32 %v249_v33, %v133_v32 }
 0x113   :  { %v234_v22 = vsel %vm233_vm10, %v362_v60, %v230_v17  ;;  %v255_v41 = vadd.f32 %v251_v29, %v138_v28 }
 0x114   :  { %v214_v24 = vsel %vm213_vm12, %v364_v62, %v210_v18  ;;  %v238_v25 = vmul.f32 %v234_v22, %v453_v35 }
 0x115   :  { %v236_v26 = vmul.f32 %v214_v24, %v455_v36 }
 0x116   :  { %v245_v31 = vmul.f32 %v353_v12, %v238_v25 }
 0x117   :  { %v243_v34 = vmul.f32 %v353_v12, %v236_v26 }
 0x118   :  { %v252_v38 = vadd.f32 %v354_v20, %v245_v31 }
 0x119   :  { %v250_v40 = vadd.f32 %v354_v20, %v243_v34 }
 0x11a   :  { %v256_v42 = vadd.f32 %v252_v38, %v140_v37 }
 0x11b   :  { %v254_v44 = vadd.f32 %v250_v40, %v135_v39 }
 0x11c   :  { %v336_v45 = vpack.c.bf16 %v256_v42, %v255_v41 }
 0x11d   :  { %v331_v35 = vpack.c.bf16 %v254_v44, %v253_v43 }
 0x11e   :  { %339 = vst [vmem:[%s492_s6 + $0x8] sm:$0xff] %v336_v45  }
 0x11f   :  { %332 = vst [vmem:[%s492_s6] sm:$0xff] %v331_v35  }
 0x120   :  { %269 = vsyncpa [#allocation3], 1 }

// kernel: gpt_forward.11
= control target key start
LH: loop header
LB: loop body
LE: loop exit
PB: predicated region body
PF: predicated region fallthrough
CT: control target
= control target key end

     0   :  { %10 = vsyncpa [#allocation3], 0  ;;  %s574_s21 = smov [#allocation2]   ;;  %s575_s23 = smov 192   ;;  %s680_s0 = inlined_call_operand.vmem [shape: bf16[32,128], index: 0, kind: input, shape index: {}]   ;;  %s681_s1 = inlined_call_operand.hbm [shape: bf16[128,384], index: 1, kind: input, shape index: {}]   ;;  %s682_s2 = inlined_call_operand.vmem [shape: f32[1,128], index: 2, kind: input, shape index: {}]   ;;  %s683_s3 = inlined_call_operand.vmem [shape: f32[1,128], index: 3, kind: input, shape index: {}]   ;;  %s684_s4 = inlined_call_operand.vmem [shape: f32[1,384], index: 4, kind: input, shape index: {}]   ;;  %s685_s5 = inlined_call_operand.vmem [shape: bf16[32,384], index: 5, kind: output, shape index: {}]  }
   0x1   :  { %s17_s20 = sshll.u32 %s681_s1, 4  ;;  %s19_s22 = sshll.u32 %s574_s21, 4  ;;  %s18_s20 = int_to_ptr.hbm [resolvable:$true] %s17_s20  ;;  %s20_s22 = int_to_ptr.vmem [resolvable:$true] %s19_s22 }
   0x2   :  { %s576_s24 = smov 12  }
   0x3   :  { %25 = dma.hbm_to_vmem [thread:$0]  %s18_s20, 3072, %s20_s22, [#allocation3], %s575_s23, %s575_s23, %s576_s24  }
   0x4   :  { %572 = dma.done.wait [#allocation3], 3072  }
   0x5   :  { %573 = vsyncadd [#allocation3], 4294964224  ;;  %v523_v0 = vld [vmem:[%s680_s0 + $0x8] sm:$0xff]   ;;  %v516_v1 = vld [vmem:[%s680_s0] sm:$0xff]   ;;  %v577_v6 = vmov 128.0  }
   0x6   :  { %v521_v2 = vunpack.c.l.bf16 %v523_v0  ;;  %v517_v3 = vunpack.c.l.bf16 %v516_v1  ;;  %v522_v4 = vunpack.c.h.bf16 %v523_v0  ;;  %v518_v5 = vunpack.c.h.bf16 %v516_v1  ;;  %v481_v29 = vld [vmem:[#allocation2 + $0xa8] sm:$0xf]  ;;  %v513_v30 = vld [vmem:[#allocation2 + $0xb0] sm:$0xf0]  ;;  %v512_v31 = vld [vmem:[#allocation2 + $0xac] sm:$0xf] }
   0x7   :  { %538 = vrcp.f32 %v577_v6  ;;  %v482_v32 = vor.u32 %v513_v30, %v481_v29  ;;  %v483_v33 = vld [vmem:[#allocation2 + $0xb4] sm:$0xf0]  ;;  %v489_v34 = vld [vmem:[#allocation2 + $0xb0] sm:$0xf]  ;;  %v514_v35 = vld [vmem:[#allocation2 + $0xb8] sm:$0xf0] }
   0x8   :  { %50 = vadd.xlane.f32.xlu1 %v521_v2  ;;  %46 = vadd.xlane.f32.xlu0 %v517_v3  ;;  %v486_v36 = vor.u32 %v512_v31, %v483_v33  ;;  %v490_v37 = vor.u32 %v514_v35, %v489_v34  ;;  %v469_v38 = vld [vmem:[#allocation2 + $0x90] sm:$0xf]  ;;  %v510_v39 = vld [vmem:[#allocation2 + $0x98] sm:$0xf0]  ;;  %v509_v40 = vld [vmem:[#allocation2 + $0x94] sm:$0xf] }
   0x9   :  { %317 = vmatpush.bf16.msra.mxu0 %v482_v32  ;;  %524 = vmatpush.bf16.msra.mxu3 %v482_v32  ;;  %v470_v41 = vor.u32 %v510_v39, %v469_v38  ;;  %v471_v42 = vld [vmem:[#allocation2 + $0x9c] sm:$0xf0]  ;;  %v477_v43 = vld [vmem:[#allocation2 + $0x98] sm:$0xf]  ;;  %v511_v44 = vld [vmem:[#allocation2 + $0xa0] sm:$0xf0] }
   0xa   :  { %336 = vmatpush.bf16.msra.mxu1 %v486_v36  ;;  %355 = vmatpush.bf16.msra.mxu2 %v490_v37  ;;  %v474_v45 = vor.u32 %v509_v40, %v471_v42  ;;  %v478_v46 = vor.u32 %v511_v44, %v477_v43  ;;  %v457_v47 = vld [vmem:[#allocation2 + $0x78] sm:$0xf]  ;;  %v507_v48 = vld [vmem:[#allocation2 + $0x80] sm:$0xf0]  ;;  %v506_v49 = vld [vmem:[#allocation2 + $0x7c] sm:$0xf] }
   0xb   :  { %v458_v50 = vor.u32 %v507_v48, %v457_v47  ;;  %v459_v51 = vld [vmem:[#allocation2 + $0x84] sm:$0xf0]  ;;  %v465_v52 = vld [vmem:[#allocation2 + $0x80] sm:$0xf]  ;;  %v508_v53 = vld [vmem:[#allocation2 + $0x88] sm:$0xf0] }
   0xc   :  { %v462_v54 = vor.u32 %v506_v49, %v459_v51  ;;  %v466_v55 = vor.u32 %v508_v53, %v465_v52  ;;  %v445_v56 = vld [vmem:[#allocation2 + $0x60] sm:$0xf]  ;;  %v504_v57 = vld [vmem:[#allocation2 + $0x68] sm:$0xf0]  ;;  %v503_v58 = vld [vmem:[#allocation2 + $0x64] sm:$0xf] }
   0xd   :  { %v539_v7 = vpop.eup %538  ;;  %318 = vmatpush.bf16.msra.mxu0 %v470_v41  ;;  %525 = vmatpush.bf16.msra.mxu3 %v470_v41  ;;  %v446_v59 = vor.u32 %v504_v57, %v445_v56  ;;  %v447_v60 = vld [vmem:[#allocation2 + $0x6c] sm:$0xf0]  ;;  %v453_v61 = vld [vmem:[#allocation2 + $0x68] sm:$0xf]  ;;  %v505_v62 = vld [vmem:[#allocation2 + $0x70] sm:$0xf0] }
   0xe   :  { %v55_v8 = vmul.f32 128.0, %v539_v7  ;;  %vm59_vm0 = vweird.f32 %v539_v7  ;;  %337 = vmatpush.bf16.msra.mxu1 %v474_v45  ;;  %356 = vmatpush.bf16.msra.mxu2 %v478_v46  ;;  %v450_v63 = vor.u32 %v503_v58, %v447_v60  ;;  %v454_v0 = vor.u32 %v505_v62, %v453_v61  ;;  %v433_v1 = vld [vmem:[#allocation2 + $0x48] sm:$0xf]  ;;  %v441_v6 = vld [vmem:[#allocation2 + $0x50] sm:$0xf] }
   0xf   :  { %v417_v29 = vld [vmem:[#allocation2 + $0x20] sm:$0xf]  ;;  %v496_v30 = vld [vmem:[#allocation2 + $0x28] sm:$0xf0]  ;;  %v491_v37 = vld [vmem:[#allocation2 + $0x4] sm:$0xf] }
  0x10   :  { %52 = vadd.xlane.f32.xlu1 %v522_v4  ;;  %48 = vadd.xlane.f32.xlu0 %v518_v5  ;;  %v56_v9 = vsub.f32 1.0, %v55_v8  ;;  %v418_v34 = vor.u32 %v496_v30, %v417_v29  ;;  %v397_v35 = vld [vmem:[#allocation2] sm:$0xf]  ;;  %v492_v36 = vld [vmem:[#allocation2 + $0x8] sm:$0xf0] }
  0x11   :  { %319 = vmatpush.bf16.msra.mxu0 %v458_v50  ;;  %526 = vmatpush.bf16.msra.mxu3 %v458_v50  ;;  %v398_v40 = vor.u32 %v492_v36, %v397_v35  ;;  %v399_v41 = vld [vmem:[#allocation2 + $0xc] sm:$0xf0]  ;;  %v405_v42 = vld [vmem:[#allocation2 + $0x8] sm:$0xf]  ;;  %v493_v43 = vld [vmem:[#allocation2 + $0x10] sm:$0xf0] }
  0x12   :  { %v57_v10 = vmul.f32 %v539_v7, %v56_v9  ;;  %338 = vmatpush.bf16.msra.mxu1 %v462_v54  ;;  %357 = vmatpush.bf16.msra.mxu2 %v466_v55  ;;  %v402_v44 = vor.u32 %v491_v37, %v399_v41  ;;  %v406_v45 = vor.u32 %v493_v43, %v405_v42 }
  0x14   :  { %v58_v11 = vadd.f32 %v539_v7, %v57_v10  ;;  %v421_v10 = vld [vmem:[#allocation2 + $0x30] sm:$0xf] }
  0x15   :  { %320 = vmatpush.bf16.msra.mxu0 %v446_v59  ;;  %527 = vmatpush.bf16.msra.mxu3 %v446_v59 }
  0x16   :  { %v617_v12 = vsel %vm59_vm0, %v539_v7, %v58_v11  ;;  %339 = vmatpush.bf16.msra.mxu1 %v450_v63  ;;  %358 = vmatpush.bf16.msra.mxu2 %v454_v0  ;;  %v502_v7 = vld [vmem:[#allocation2 + $0x58] sm:$0xf0] }
  0x17   :  { %v442_v9 = vor.u32 %v502_v7, %v441_v6  ;;  %v498_v11 = vld [vmem:[#allocation2 + $0x38] sm:$0xf0] }
  0x1a   :  { %359 = vmatpush.bf16.msra.mxu2 %v442_v9 }
  0x7b   :  { %v51_v13 = vpop.xlane.xlu1 %50  ;;  %v47_v14 = vpop.xlane.xlu0 %46 }
  0x7c   :  { %v63_v15 = vmul.f32 %v617_v12, %v51_v13  ;;  %v61_v16 = vmul.f32 %v617_v12, %v47_v14  ;;  %v497_v13 = vld [vmem:[#allocation2 + $0x34] sm:$0xf]  ;;  %v422_v14 = vor.u32 %v498_v11, %v421_v10 }
  0x7e   :  { %v621_v17 = vsub.f32 %v521_v2, %v63_v15  ;;  %v623_v18 = vsub.f32 %v517_v3, %v61_v16  ;;  %v501_v2 = vld [vmem:[#allocation2 + $0x50] sm:$0xf0]  ;;  %v500_v3 = vld [vmem:[#allocation2 + $0x4c] sm:$0xf]  ;;  %v423_v15 = vld [vmem:[#allocation2 + $0x3c] sm:$0xf0] }
  0x7f   :  { %v429_v16 = vld [vmem:[#allocation2 + $0x38] sm:$0xf] }
  0x80   :  { %v71_v19 = vmul.f32 %v621_v17, %v621_v17  ;;  %v69_v20 = vmul.f32 %v623_v18, %v623_v18 }
  0x82   :  { %77 = vadd.xlane.f32.xlu0 %v71_v19  ;;  %73 = vadd.xlane.f32.xlu2 %v69_v20  ;;  %v499_v19 = vld [vmem:[#allocation2 + $0x40] sm:$0xf0]  ;;  %v426_v20 = vor.u32 %v497_v13, %v423_v15  ;;  %v536_v15 = vld [vmem:[%s682_s2] ss:$0 sm:$0xff] }
  0x83   :  { %v53_v21 = vpop.xlane.xlu1 %52  ;;  %v49_v22 = vpop.xlane.xlu0 %48 }
  0x84   :  { %v64_v23 = vmul.f32 %v617_v12, %v53_v21  ;;  %v62_v24 = vmul.f32 %v617_v12, %v49_v22  ;;  %v430_v21 = vor.u32 %v499_v19, %v429_v16  ;;  %v409_v22 = vld [vmem:[#allocation2 + $0x18] sm:$0xf] }
  0x86   :  { %v631_v25 = vsub.f32 %v522_v4, %v64_v23  ;;  %v633_v26 = vsub.f32 %v518_v5, %v62_v24  ;;  %v434_v4 = vor.u32 %v501_v2, %v433_v1  ;;  %v435_v5 = vld [vmem:[#allocation2 + $0x54] sm:$0xf0]  ;;  %360 = vmatpush.bf16.msra.mxu2 %v430_v21  ;;  %v495_v23 = vld [vmem:[#allocation2 + $0x20] sm:$0xf0]  ;;  %v494_v24 = vld [vmem:[#allocation2 + $0x1c] sm:$0xf] }
  0x87   :  { %v438_v8 = vor.u32 %v500_v3, %v435_v5 }
  0x88   :  { %v72_v27 = vmul.f32 %v631_v25, %v631_v25  ;;  %v70_v28 = vmul.f32 %v633_v26, %v633_v26  ;;  %321 = vmatpush.bf16.msra.mxu0 %v434_v4  ;;  %528 = vmatpush.bf16.msra.mxu3 %v434_v4 }
  0x89   :  { %340 = vmatpush.bf16.msra.mxu1 %v438_v8 }
  0x8a   :  { %79 = vadd.xlane.f32.xlu1 %v72_v27  ;;  %75 = vadd.xlane.f32.xlu2 %v70_v28  ;;  %v410_v27 = vor.u32 %v495_v23, %v409_v22  ;;  %v411_v28 = vld [vmem:[#allocation2 + $0x24] sm:$0xf0] }
  0x8b   :  { %v414_v33 = vor.u32 %v494_v24, %v411_v28  ;;  %361 = vmatpush.bf16.msra.mxu2 %v418_v34 }
  0x8c   :  { %322 = vmatpush.bf16.msra.mxu0 %v422_v14  ;;  %529 = vmatpush.bf16.msra.mxu3 %v422_v14 }
  0x8d   :  { %341 = vmatpush.bf16.msra.mxu1 %v426_v20 }
  0x8f   :  { %362 = vmatpush.bf16.msra.mxu2 %v406_v45 }
  0x90   :  { %323 = vmatpush.bf16.msra.mxu0 %v410_v27  ;;  %530 = vmatpush.bf16.msra.mxu3 %v410_v27 }
  0x91   :  { %342 = vmatpush.bf16.msra.mxu1 %v414_v33 }
  0x94   :  { %324 = vmatpush.bf16.msra.mxu0 %v398_v40  ;;  %531 = vmatpush.bf16.msra.mxu3 %v398_v40 }
  0x95   :  { %343 = vmatpush.bf16.msra.mxu1 %v402_v44 }
  0xf5   :  { %v74_v31 = vpop.xlane.xlu2 %73  ;;  %v78_v32 = vpop.xlane.xlu0 %77 }
  0xf6   :  { %v81_v38 = vmul.f32 %v74_v31, %v617_v12  ;;  %v83_v39 = vmul.f32 %v78_v32, %v617_v12 }
  0xf8   :  { %v85_v46 = vadd.f32 1e-05, %v81_v38  ;;  %v87_v47 = vadd.f32 1e-05, %v83_v39 }
  0xfa   :  { %540 = vrsqrt.f32 %v85_v46  ;;  %vm115_vm1 = vweird.f32 %v87_v47  ;;  %vm95_vm5 = vweird.f32 %v85_v46 }
  0xfb   :  { %542 = vrsqrt.f32 %v87_v47 }
  0xfd   :  { %v80_v48 = vpop.xlane.xlu1 %79  ;;  %v76_v49 = vpop.xlane.xlu2 %75 }
  0xfe   :  { %v84_v50 = vmul.f32 %v80_v48, %v617_v12  ;;  %v82_v51 = vmul.f32 %v76_v49, %v617_v12 }
 0x100   :  { %v541_v52 = vpop.eup %540  ;;  %v88_v53 = vadd.f32 1e-05, %v84_v50  ;;  %v86_v54 = vadd.f32 1e-05, %v82_v51 }
 0x101   :  { %v543_v55 = vpop.eup %542  ;;  %v90_v56 = vmul.f32 %v541_v52, %v85_v46  ;;  %vm96_vm3 = vweird.f32 %v541_v52 }
 0x102   :  { %v110_v57 = vmul.f32 %v543_v55, %v87_v47  ;;  %544 = vrsqrt.f32 %v88_v53  ;;  %vm116_vm2 = vweird.f32 %v543_v55  ;;  %vm97_vm6 = vmor %vm95_vm5, %vm96_vm3  ;;  %vm125_vm7 = vweird.f32 %v88_v53 }
 0x103   :  { %v91_v58 = vmul.f32 %v541_v52, %v90_v56  ;;  %546 = vrsqrt.f32 %v86_v54  ;;  %vm117_vm4 = vmor %vm115_vm1, %vm116_vm2  ;;  %vm105_vm11 = vweird.f32 %v86_v54 }
 0x104   :  { %v111_v59 = vmul.f32 %v543_v55, %v110_v57 }
 0x105   :  { %v92_v60 = vmul.f32 0.5, %v91_v58 }
 0x106   :  { %v112_v61 = vmul.f32 0.5, %v111_v59 }
 0x107   :  { %v93_v62 = vsub.f32 1.5, %v92_v60 }
 0x108   :  { %v545_v63 = vpop.eup %544  ;;  %v113_v0 = vsub.f32 1.5, %v112_v61 }
 0x109   :  { %v547_v1 = vpop.eup %546  ;;  %v120_v2 = vmul.f32 %v545_v63, %v88_v53  ;;  %v94_v12 = vmul.f32 %v541_v52, %v93_v62  ;;  %vm126_vm8 = vweird.f32 %v545_v63 }
 0x10a   :  { %v114_v3 = vmul.f32 %v543_v55, %v113_v0  ;;  %v100_v4 = vmul.f32 %v547_v1, %v86_v54  ;;  %vm127_vm9 = vmor %vm125_vm7, %vm126_vm8  ;;  %vm106_vm10 = vweird.f32 %v547_v1 }
 0x10b   :  { %v121_v5 = vmul.f32 %v545_v63, %v120_v2  ;;  %v98_v9 = vsel %vm97_vm6, %v541_v52, %v94_v12  ;;  %vm107_vm12 = vmor %vm105_vm11, %vm106_vm10 }
 0x10c   :  { %v101_v6 = vmul.f32 %v547_v1, %v100_v4  ;;  %v118_v7 = vsel %vm117_vm4, %v543_v55, %v114_v3  ;;  %v129_v16 = vmul.f32 %v98_v9, %v623_v18 }
 0x10d   :  { %v122_v8 = vmul.f32 0.5, %v121_v5  ;;  %v131_v13 = vmul.f32 %v118_v7, %v621_v17  ;;  %v537_v17 = vld [vmem:[%s683_s3] ss:$0 sm:$0xff] }
 0x10e   :  { %v102_v10 = vmul.f32 0.5, %v101_v6  ;;  %v136_v28 = vmul.f32 %v536_v15, %v129_v16 }
 0x10f   :  { %v123_v11 = vsub.f32 1.5, %v122_v8  ;;  %v138_v24 = vmul.f32 %v536_v15, %v131_v13 }
 0x110   :  { %v103_v14 = vsub.f32 1.5, %v102_v10  ;;  %v143_v32 = vadd.f32 %v537_v17, %v136_v28 }
 0x111   :  { %v124_v19 = vmul.f32 %v545_v63, %v123_v11  ;;  %v145_v31 = vadd.f32 %v537_v17, %v138_v24 }
 0x112   :  { %v104_v20 = vmul.f32 %v547_v1, %v103_v14 }
 0x113   :  { %v128_v21 = vsel %vm127_vm9, %v545_v63, %v124_v19 }
 0x114   :  { %v132_v22 = vmul.f32 %v128_v21, %v631_v25  ;;  %v108_v23 = vsel %vm107_vm12, %v547_v1, %v104_v20  ;;  %v181_v25 = vld [vmem:[%s684_s4] sm:$0x7] }
 0x115   :  { %v130_v27 = vmul.f32 %v108_v23, %v633_v26  ;;  %v183_v26 = vperm.slane %v181_v25, 0  ;;  %v184_v36 = vperm.slane %v181_v25, 1  ;;  %v185_v42 = vperm.slane %v181_v25, 2 }
 0x116   :  { %v139_v29 = vmul.f32 %v536_v15, %v132_v22 }
 0x117   :  { %v137_v30 = vmul.f32 %v536_v15, %v130_v27 }
 0x118   :  { %v146_v18 = vadd.f32 %v537_v17, %v139_v29 }
 0x119   :  { %v144_v33 = vadd.f32 %v537_v17, %v137_v30 }
 0x11a   :  { %v148_v34 = vpack.c.bf16 %v146_v18, %v145_v31 }
 0x11b   :  { %v147_v35 = vpack.c.bf16 %v144_v33, %v143_v32 }
 0x11c   :  { %330 = vmatmul.bf16.vlgmr.msra.gmra.mxu3 %v148_v34 }
 0x11d   :  { %325 = vmatmul.bf16.vlgmr.msra.gmra.mxu0 %v147_v35  ;;  %344 = vmatmul.bf16.vlgmr.msra.gmra.mxu1 %v147_v35 }
 0x11e   :  { %363 = vmatmul.bf16.vlgmr.msra.gmra.mxu2 %v147_v35 }
 0x12d   :  { %349 = vmatmul.bf16.gmra.mxu1 %v148_v34 }
 0x12e   :  { %368 = vmatmul.bf16.gmra.mxu2 %v148_v34 }
 0x19a   :  { %v326_v37 = vpop.f32.mrf.mxu0  ;;  %v345_v38 = vpop.f32.mrf.mxu1 }
 0x19b   :  { %v327_v39 = vadd.f32 %v326_v37, %v183_v26  ;;  %v346_v40 = vadd.f32 %v345_v38, %v184_v36 }
 0x19d   :  { %v374_v41 = vpack.c.bf16 %v346_v40, %v327_v39 }
 0x19f   :  { %382 = vst [vmem:[%s685_s5] sm:$0xff] %v374_v41  ;;  %v331_v51 = vpop.f32.mrf.mxu3 }
 0x1a0   :  { %v332_v55 = vadd.f32 %v331_v51, %v183_v26 }
 0x1a1   :  { %v364_v43 = vpop.f32.mrf.mxu2 }
 0x1a2   :  { %v365_v44 = vadd.f32 %v364_v43, %v185_v42  ;;  %v328_v45 = vpop.f32.mrf.mxu0  ;;  %v347_v46 = vpop.f32.mrf.mxu1 }
 0x1a3   :  { %v329_v47 = vadd.f32 %v328_v45, %v183_v26  ;;  %v348_v48 = vadd.f32 %v347_v46, %v184_v36 }
 0x1a4   :  { %v375_v49 = vpack.c.bf16 %v365_v44, %v365_v44 }
 0x1a5   :  { %v376_v50 = vpack.c.bf16 %v348_v48, %v329_v47 }
 0x1a6   :  { %383 = vst [vmem:[%s685_s5 + $0x8] sm:$0xf] %v375_v49 }
 0x1a7   :  { %384 = vst [vmem:[%s685_s5 + $0xc] sm:$0xff] %v376_v50  ;;  %v333_v59 = vpop.f32.mrf.mxu3 }
 0x1a8   :  { %v334_v63 = vadd.f32 %v333_v59, %v183_v26 }
 0x1a9   :  { %v366_v52 = vpop.f32.mrf.mxu2 }
 0x1aa   :  { %v367_v53 = vadd.f32 %v366_v52, %v185_v42  ;;  %v350_v54 = vpop.f32.mrf.mxu1 }
 0x1ab   :  { %v351_v56 = vadd.f32 %v350_v54, %v184_v36 }
 0x1ac   :  { %v377_v57 = vpack.c.bf16 %v367_v53, %v367_v53 }
 0x1ad   :  { %v378_v58 = vpack.c.bf16 %v351_v56, %v332_v55 }
 0x1ae   :  { %385 = vst [vmem:[%s685_s5 + $0x14] sm:$0xf] %v377_v57 }
 0x1af   :  { %386 = vst [vmem:[%s685_s5 + $0x18] sm:$0xff] %v378_v58 }
 0x1b1   :  { %v369_v60 = vpop.f32.mrf.mxu2 }
 0x1b2   :  { %v370_v61 = vadd.f32 %v369_v60, %v185_v42  ;;  %v352_v62 = vpop.f32.mrf.mxu1 }
 0x1b3   :  { %v353_v0 = vadd.f32 %v352_v62, %v184_v36 }
 0x1b4   :  { %v379_v1 = vpack.c.bf16 %v370_v61, %v370_v61 }
 0x1b5   :  { %v380_v2 = vpack.c.bf16 %v353_v0, %v334_v63 }
 0x1b6   :  { %387 = vst [vmem:[%s685_s5 + $0x20] sm:$0xf] %v379_v1 }
 0x1b7   :  { %388 = vst [vmem:[%s685_s5 + $0x24] sm:$0xff] %v380_v2 }
 0x1b9   :  { %v371_v12 = vpop.f32.mrf.mxu2 }
 0x1ba   :  { %v372_v3 = vadd.f32 %v371_v12, %v185_v42 }
 0x1bc   :  { %v381_v4 = vpack.c.bf16 %v372_v3, %v372_v3 }
 0x1be   :  { %389 = vst [vmem:[%s685_s5 + $0x2c] sm:$0xf] %v381_v4 }
 0x1bf   :  { %394 = vsyncpa [#allocation3], 1 }

// kernel: gpt_forward.14
= control target key start
LH: loop header
LB: loop body
LE: loop exit
PB: predicated region body
PF: predicated region fallthrough
CT: control target
= control target key end

     0   :  { %10 = vsyncpa [#allocation3], 0  ;;  %s835_s21 = smov [#allocation2]   ;;  %s836_s23 = smov 256   ;;  %s1035_s0 = inlined_call_operand.vmem [shape: bf16[32,128], index: 0, kind: input, shape index: {}]   ;;  %s1036_s1 = inlined_call_operand.hbm [shape: bf16[128,512], index: 1, kind: input, shape index: {}]   ;;  %s1037_s2 = inlined_call_operand.vmem [shape: f32[1,128], index: 2, kind: input, shape index: {}]   ;;  %s1038_s3 = inlined_call_operand.vmem [shape: f32[1,128], index: 3, kind: input, shape index: {}]   ;;  %s1039_s4 = inlined_call_operand.vmem [shape: f32[1,512], index: 4, kind: input, shape index: {}]   ;;  %s1040_s5 = inlined_call_operand.vmem [shape: bf16[32,512], index: 5, kind: output, shape index: {}]  }
   0x1   :  { %s17_s20 = sshll.u32 %s1036_s1, 4  ;;  %s19_s22 = sshll.u32 %s835_s21, 4  ;;  %s18_s20 = int_to_ptr.hbm [resolvable:$true] %s17_s20  ;;  %s20_s22 = int_to_ptr.vmem [resolvable:$true] %s19_s22 }
   0x2   :  { %s837_s24 = smov 16  }
   0x3   :  { %25 = dma.hbm_to_vmem [thread:$0]  %s18_s20, 4096, %s20_s22, [#allocation3], %s836_s23, %s836_s23, %s837_s24  }
   0x4   :  { %833 = dma.done.wait [#allocation3], 4096  }
   0x5   :  { %834 = vsyncadd [#allocation3], 4294963200  ;;  %v760_v0 = vld [vmem:[%s1035_s0 + $0x8] sm:$0xff]   ;;  %v753_v1 = vld [vmem:[%s1035_s0] sm:$0xff]   ;;  %v838_v6 = vmov 128.0  }
   0x6   :  { %v758_v2 = vunpack.c.l.bf16 %v760_v0  ;;  %v754_v3 = vunpack.c.l.bf16 %v753_v1  ;;  %v759_v4 = vunpack.c.h.bf16 %v760_v0  ;;  %v755_v5 = vunpack.c.h.bf16 %v753_v1  ;;  %v706_v29 = vld [vmem:[#allocation2 + $0xe0] sm:$0xf]  ;;  %v750_v30 = vld [vmem:[#allocation2 + $0xec] sm:$0xf0]  ;;  %v748_v31 = vld [vmem:[#allocation2 + $0xe4] sm:$0xf] }
   0x7   :  { %767 = vrcp.f32 %v838_v6  ;;  %v707_v32 = vor.u32 %v750_v30, %v706_v29  ;;  %v708_v33 = vld [vmem:[#allocation2 + $0xf0] sm:$0xf0]  ;;  %v714_v34 = vld [vmem:[#allocation2 + $0xe8] sm:$0xf]  ;;  %v751_v35 = vld [vmem:[#allocation2 + $0xf4] sm:$0xf0] }
   0x8   :  { %50 = vadd.xlane.f32.xlu1 %v758_v2  ;;  %46 = vadd.xlane.f32.xlu0 %v754_v3  ;;  %v711_v36 = vor.u32 %v748_v31, %v708_v33  ;;  %v715_v37 = vor.u32 %v751_v35, %v714_v34  ;;  %v749_v38 = vld [vmem:[#allocation2 + $0xec] sm:$0xf]  ;;  %v716_v39 = vld [vmem:[#allocation2 + $0xf8] sm:$0xf0]  ;;  %v690_v41 = vld [vmem:[#allocation2 + $0xc0] sm:$0xf] }
   0x9   :  { %351 = vmatpush.bf16.msra.mxu0 %v707_v32  ;;  %v719_v40 = vor.u32 %v749_v38, %v716_v39  ;;  %v746_v42 = vld [vmem:[#allocation2 + $0xcc] sm:$0xf0]  ;;  %v744_v43 = vld [vmem:[#allocation2 + $0xc4] sm:$0xf]  ;;  %v692_v45 = vld [vmem:[#allocation2 + $0xd0] sm:$0xf0] }
   0xa   :  { %370 = vmatpush.bf16.msra.mxu1 %v711_v36  ;;  %389 = vmatpush.bf16.msra.mxu2 %v715_v37  ;;  %v691_v44 = vor.u32 %v746_v42, %v690_v41  ;;  %v698_v46 = vld [vmem:[#allocation2 + $0xc8] sm:$0xf]  ;;  %v747_v47 = vld [vmem:[#allocation2 + $0xd4] sm:$0xf0]  ;;  %v695_v48 = vor.u32 %v744_v43, %v692_v45  ;;  %v745_v50 = vld [vmem:[#allocation2 + $0xcc] sm:$0xf] }
   0xb   :  { %408 = vmatpush.bf16.msra.mxu3 %v719_v40  ;;  %v699_v49 = vor.u32 %v747_v47, %v698_v46  ;;  %v700_v51 = vld [vmem:[#allocation2 + $0xd8] sm:$0xf0]  ;;  %v674_v53 = vld [vmem:[#allocation2 + $0xa0] sm:$0xf]  ;;  %v742_v54 = vld [vmem:[#allocation2 + $0xac] sm:$0xf0] }
   0xc   :  { %v703_v52 = vor.u32 %v745_v50, %v700_v51  ;;  %v740_v55 = vld [vmem:[#allocation2 + $0xa4] sm:$0xf]  ;;  %v675_v56 = vor.u32 %v742_v54, %v674_v53  ;;  %v676_v57 = vld [vmem:[#allocation2 + $0xb0] sm:$0xf0]  ;;  %v682_v58 = vld [vmem:[#allocation2 + $0xa8] sm:$0xf] }
   0xd   :  { %v768_v7 = vpop.eup %767  ;;  %352 = vmatpush.bf16.msra.mxu0 %v691_v44  ;;  %v743_v59 = vld [vmem:[#allocation2 + $0xb4] sm:$0xf0]  ;;  %v679_v60 = vor.u32 %v740_v55, %v676_v57  ;;  %v741_v62 = vld [vmem:[#allocation2 + $0xac] sm:$0xf]  ;;  %v684_v63 = vld [vmem:[#allocation2 + $0xb8] sm:$0xf0] }
   0xe   :  { %v55_v8 = vmul.f32 128.0, %v768_v7  ;;  %vm59_vm0 = vweird.f32 %v768_v7  ;;  %371 = vmatpush.bf16.msra.mxu1 %v695_v48  ;;  %390 = vmatpush.bf16.msra.mxu2 %v699_v49  ;;  %v683_v61 = vor.u32 %v743_v59, %v682_v58  ;;  %v687_v0 = vor.u32 %v741_v62, %v684_v63  ;;  %v658_v1 = vld [vmem:[#allocation2 + $0x80] sm:$0xf]  ;;  %v666_v6 = vld [vmem:[#allocation2 + $0x88] sm:$0xf] }
   0xf   :  { %409 = vmatpush.bf16.msra.mxu3 %v703_v52  ;;  %v626_v30 = vld [vmem:[#allocation2 + $0x40] sm:$0xf]  ;;  %v730_v31 = vld [vmem:[#allocation2 + $0x4c] sm:$0xf0]  ;;  %v728_v32 = vld [vmem:[#allocation2 + $0x44] sm:$0xf] }
  0x10   :  { %52 = vadd.xlane.f32.xlu1 %v759_v4  ;;  %48 = vadd.xlane.f32.xlu0 %v755_v5  ;;  %v56_v9 = vsub.f32 1.0, %v55_v8  ;;  %v627_v33 = vor.u32 %v730_v31, %v626_v30  ;;  %v628_v34 = vld [vmem:[#allocation2 + $0x50] sm:$0xf0]  ;;  %v634_v35 = vld [vmem:[#allocation2 + $0x48] sm:$0xf] }
  0x11   :  { %353 = vmatpush.bf16.msra.mxu0 %v675_v56  ;;  %v731_v36 = vld [vmem:[#allocation2 + $0x54] sm:$0xf0]  ;;  %v631_v37 = vor.u32 %v728_v32, %v628_v34  ;;  %v729_v39 = vld [vmem:[#allocation2 + $0x4c] sm:$0xf]  ;;  %v636_v40 = vld [vmem:[#allocation2 + $0x58] sm:$0xf0] }
  0x12   :  { %v57_v10 = vmul.f32 %v768_v7, %v56_v9  ;;  %372 = vmatpush.bf16.msra.mxu1 %v679_v60  ;;  %391 = vmatpush.bf16.msra.mxu2 %v683_v61  ;;  %v635_v38 = vor.u32 %v731_v36, %v634_v35  ;;  %v639_v41 = vor.u32 %v729_v39, %v636_v40  ;;  %v610_v42 = vld [vmem:[#allocation2 + $0x20] sm:$0xf]  ;;  %v726_v43 = vld [vmem:[#allocation2 + $0x2c] sm:$0xf0]  ;;  %v724_v44 = vld [vmem:[#allocation2 + $0x24] sm:$0xf] }
  0x13   :  { %410 = vmatpush.bf16.msra.mxu3 %v687_v0  ;;  %v611_v45 = vor.u32 %v726_v43, %v610_v42  ;;  %v612_v46 = vld [vmem:[#allocation2 + $0x30] sm:$0xf0]  ;;  %v618_v47 = vld [vmem:[#allocation2 + $0x28] sm:$0xf]  ;;  %v727_v48 = vld [vmem:[#allocation2 + $0x34] sm:$0xf0] }
  0x14   :  { %v58_v11 = vadd.f32 %v768_v7, %v57_v10  ;;  %v737_v10 = vld [vmem:[#allocation2 + $0x8c] sm:$0xf]  ;;  %v615_v50 = vor.u32 %v724_v44, %v612_v46  ;;  %v619_v51 = vor.u32 %v727_v48, %v618_v47  ;;  %v620_v53 = vld [vmem:[#allocation2 + $0x38] sm:$0xf0]  ;;  %v594_v54 = vld [vmem:[#allocation2] sm:$0xf] }
  0x15   :  { %v725_v52 = vld [vmem:[#allocation2 + $0x2c] sm:$0xf]  ;;  %v722_v58 = vld [vmem:[#allocation2 + $0xc] sm:$0xf0]  ;;  %v720_v59 = vld [vmem:[#allocation2 + $0x4] sm:$0xf] }
  0x16   :  { %v878_v12 = vsel %vm59_vm0, %v768_v7, %v58_v11  ;;  %v739_v7 = vld [vmem:[#allocation2 + $0x94] sm:$0xf0]  ;;  %v668_v11 = vld [vmem:[#allocation2 + $0x98] sm:$0xf0]  ;;  %v623_v57 = vor.u32 %v725_v52, %v620_v53  ;;  %v596_v60 = vld [vmem:[#allocation2 + $0x10] sm:$0xf0]  ;;  %v595_v61 = vor.u32 %v722_v58, %v594_v54 }
  0x17   :  { %v667_v9 = vor.u32 %v739_v7, %v666_v6  ;;  %v599_v62 = vor.u32 %v720_v59, %v596_v60  ;;  %v602_v63 = vld [vmem:[#allocation2 + $0x8] sm:$0xf]  ;;  %v723_v0 = vld [vmem:[#allocation2 + $0x14] sm:$0xf0]  ;;  %v181_v60 = vld [vmem:[%s1039_s4] sm:$0xf] }
  0x19   :  { %392 = vmatpush.bf16.msra.mxu2 %v667_v9 }
  0x7b   :  { %v51_v13 = vpop.xlane.xlu1 %50  ;;  %v47_v14 = vpop.xlane.xlu0 %46 }
  0x7c   :  { %v63_v15 = vmul.f32 %v878_v12, %v51_v13  ;;  %v61_v16 = vmul.f32 %v878_v12, %v47_v14  ;;  %v671_v13 = vor.u32 %v737_v10, %v668_v11  ;;  %v642_v14 = vld [vmem:[#allocation2 + $0x60] sm:$0xf] }
  0x7e   :  { %v882_v17 = vsub.f32 %v758_v2, %v63_v15  ;;  %v884_v18 = vsub.f32 %v754_v3, %v61_v16  ;;  %v738_v2 = vld [vmem:[#allocation2 + $0x8c] sm:$0xf0]  ;;  %v736_v3 = vld [vmem:[#allocation2 + $0x84] sm:$0xf]  ;;  %411 = vmatpush.bf16.msra.mxu3 %v671_v13 }
  0x7f   :  { %v734_v15 = vld [vmem:[#allocation2 + $0x6c] sm:$0xf0]  ;;  %v732_v16 = vld [vmem:[#allocation2 + $0x64] sm:$0xf] }
  0x80   :  { %v71_v19 = vmul.f32 %v882_v17, %v882_v17  ;;  %v69_v20 = vmul.f32 %v884_v18, %v884_v18 }
  0x82   :  { %77 = vadd.xlane.f32.xlu0 %v71_v19  ;;  %73 = vadd.xlane.f32.xlu2 %v69_v20  ;;  %v643_v19 = vor.u32 %v734_v15, %v642_v14  ;;  %v644_v20 = vld [vmem:[#allocation2 + $0x70] sm:$0xf0] }
  0x83   :  { %v53_v21 = vpop.xlane.xlu1 %52  ;;  %v49_v22 = vpop.xlane.xlu0 %48 }
  0x84   :  { %v64_v23 = vmul.f32 %v878_v12, %v53_v21  ;;  %v62_v24 = vmul.f32 %v878_v12, %v49_v22  ;;  %v650_v21 = vld [vmem:[#allocation2 + $0x68] sm:$0xf]  ;;  %v735_v22 = vld [vmem:[#allocation2 + $0x74] sm:$0xf0] }
  0x86   :  { %v892_v25 = vsub.f32 %v759_v4, %v64_v23  ;;  %v894_v26 = vsub.f32 %v755_v5, %v62_v24  ;;  %v659_v4 = vor.u32 %v738_v2, %v658_v1  ;;  %v660_v5 = vld [vmem:[#allocation2 + $0x90] sm:$0xf0]  ;;  %v647_v23 = vor.u32 %v732_v16, %v644_v20  ;;  %v721_v1 = vld [vmem:[#allocation2 + $0xc] sm:$0xf] }
  0x87   :  { %v663_v8 = vor.u32 %v736_v3, %v660_v5  ;;  %v651_v24 = vor.u32 %v735_v22, %v650_v21  ;;  %v603_v3 = vor.u32 %v723_v0, %v602_v63 }
  0x88   :  { %v72_v27 = vmul.f32 %v892_v25, %v892_v25  ;;  %v70_v28 = vmul.f32 %v894_v26, %v894_v26  ;;  %354 = vmatpush.bf16.msra.mxu0 %v659_v4  ;;  %v604_v4 = vld [vmem:[#allocation2 + $0x18] sm:$0xf0] }
  0x89   :  { %373 = vmatpush.bf16.msra.mxu1 %v663_v8  ;;  %393 = vmatpush.bf16.msra.mxu2 %v651_v24  ;;  %v607_v6 = vor.u32 %v721_v1, %v604_v4  ;;  %v925_v4 = vperm.slane %v181_v60, 3 }
  0x8a   :  { %79 = vadd.xlane.f32.xlu1 %v72_v27  ;;  %75 = vadd.xlane.f32.xlu2 %v70_v28  ;;  %v733_v27 = vld [vmem:[#allocation2 + $0x6c] sm:$0xf]  ;;  %v652_v28 = vld [vmem:[#allocation2 + $0x78] sm:$0xf0] }
  0x8b   :  { %v655_v29 = vor.u32 %v733_v27, %v652_v28 }
  0x8c   :  { %355 = vmatpush.bf16.msra.mxu0 %v643_v19 }
  0x8d   :  { %374 = vmatpush.bf16.msra.mxu1 %v647_v23  ;;  %412 = vmatpush.bf16.msra.mxu3 %v655_v29 }
  0x8e   :  { %394 = vmatpush.bf16.msra.mxu2 %v635_v38  ;;  %v765_v38 = vld [vmem:[%s1037_s2] ss:$0 sm:$0xff] }
  0x90   :  { %356 = vmatpush.bf16.msra.mxu0 %v627_v33 }
  0x91   :  { %375 = vmatpush.bf16.msra.mxu1 %v631_v37  ;;  %413 = vmatpush.bf16.msra.mxu3 %v639_v41 }
  0x92   :  { %395 = vmatpush.bf16.msra.mxu2 %v619_v51 }
  0x94   :  { %357 = vmatpush.bf16.msra.mxu0 %v611_v45  ;;  %v766_v45 = vld [vmem:[%s1038_s3] ss:$0 sm:$0xff] }
  0x95   :  { %376 = vmatpush.bf16.msra.mxu1 %v615_v50  ;;  %414 = vmatpush.bf16.msra.mxu3 %v623_v57 }
  0x96   :  { %396 = vmatpush.bf16.msra.mxu2 %v603_v3  ;;  %v923_v3 = vperm.slane %v181_v60, 2 }
  0x98   :  { %358 = vmatpush.bf16.msra.mxu0 %v595_v61  ;;  %v917_v61 = vperm.slane %v181_v60, 0 }
  0x99   :  { %377 = vmatpush.bf16.msra.mxu1 %v599_v62  ;;  %415 = vmatpush.bf16.msra.mxu3 %v607_v6  ;;  %v919_v62 = vperm.slane %v181_v60, 1 }
  0xf5   :  { %v74_v49 = vpop.xlane.xlu2 %73  ;;  %v78_v56 = vpop.xlane.xlu0 %77 }
  0xf6   :  { %v81_v55 = vmul.f32 %v74_v49, %v878_v12  ;;  %v83_v5 = vmul.f32 %v78_v56, %v878_v12 }
  0xf8   :  { %v85_v2 = vadd.f32 1e-05, %v81_v55  ;;  %v87_v7 = vadd.f32 1e-05, %v83_v5 }
  0xfa   :  { %769 = vrsqrt.f32 %v85_v2  ;;  %vm95_vm2 = vweird.f32 %v85_v2  ;;  %vm115_vm9 = vweird.f32 %v87_v7 }
  0xfb   :  { %771 = vrsqrt.f32 %v87_v7 }
  0xfd   :  { %v80_v8 = vpop.xlane.xlu1 %79  ;;  %v76_v9 = vpop.xlane.xlu2 %75 }
  0xfe   :  { %v84_v10 = vmul.f32 %v80_v8, %v878_v12  ;;  %v82_v11 = vmul.f32 %v76_v9, %v878_v12 }
 0x100   :  { %v770_v13 = vpop.eup %769  ;;  %v88_v14 = vadd.f32 1e-05, %v84_v10  ;;  %v86_v15 = vadd.f32 1e-05, %v82_v11 }
 0x101   :  { %v90_v16 = vmul.f32 %v770_v13, %v85_v2  ;;  %v772_v21 = vpop.eup %771  ;;  %vm96_vm1 = vweird.f32 %v770_v13 }
 0x102   :  { %773 = vrsqrt.f32 %v88_v14  ;;  %v110_v29 = vmul.f32 %v772_v21, %v87_v7  ;;  %vm97_vm3 = vmor %vm95_vm2, %vm96_vm1  ;;  %vm105_vm5 = vweird.f32 %v86_v15  ;;  %vm125_vm7 = vweird.f32 %v88_v14 }
 0x103   :  { %v91_v19 = vmul.f32 %v770_v13, %v90_v16  ;;  %775 = vrsqrt.f32 %v86_v15  ;;  %vm116_vm10 = vweird.f32 %v772_v21 }
 0x104   :  { %v111_v33 = vmul.f32 %v772_v21, %v110_v29  ;;  %vm117_vm12 = vmor %vm115_vm9, %vm116_vm10 }
 0x105   :  { %v92_v20 = vmul.f32 0.5, %v91_v19 }
 0x106   :  { %v112_v39 = vmul.f32 0.5, %v111_v33 }
 0x107   :  { %v93_v22 = vsub.f32 1.5, %v92_v20 }
 0x108   :  { %v774_v23 = vpop.eup %773  ;;  %v113_v46 = vsub.f32 1.5, %v112_v39 }
 0x109   :  { %v776_v24 = vpop.eup %775  ;;  %v120_v27 = vmul.f32 %v774_v23, %v88_v14  ;;  %v94_v28 = vmul.f32 %v770_v13, %v93_v22  ;;  %vm126_vm8 = vweird.f32 %v774_v23 }
 0x10a   :  { %v100_v30 = vmul.f32 %v776_v24, %v86_v15  ;;  %vm106_vm4 = vweird.f32 %v776_v24  ;;  %vm127_vm11 = vmor %vm125_vm7, %vm126_vm8  ;;  %v114_v50 = vmul.f32 %v772_v21, %v113_v46 }
 0x10b   :  { %v121_v12 = vmul.f32 %v774_v23, %v120_v27  ;;  %v98_v32 = vsel %vm97_vm3, %v770_v13, %v94_v28  ;;  %vm107_vm6 = vmor %vm105_vm5, %vm106_vm4 }
 0x10c   :  { %v101_v31 = vmul.f32 %v776_v24, %v100_v30  ;;  %v129_v37 = vmul.f32 %v98_v32, %v884_v18 }
 0x10d   :  { %v122_v35 = vmul.f32 0.5, %v121_v12 }
 0x10e   :  { %v102_v34 = vmul.f32 0.5, %v101_v31  ;;  %v136_v44 = vmul.f32 %v765_v38, %v129_v37 }
 0x10f   :  { %v123_v41 = vsub.f32 1.5, %v122_v35 }
 0x110   :  { %v103_v36 = vsub.f32 1.5, %v102_v34  ;;  %v143_v48 = vadd.f32 %v766_v45, %v136_v44 }
 0x111   :  { %v124_v47 = vmul.f32 %v774_v23, %v123_v41 }
 0x112   :  { %v104_v40 = vmul.f32 %v776_v24, %v103_v36 }
 0x113   :  { %v128_v52 = vsel %vm127_vm11, %v774_v23, %v124_v47 }
 0x114   :  { %v108_v42 = vsel %vm107_vm6, %v776_v24, %v104_v40  ;;  %v132_v53 = vmul.f32 %v128_v52, %v892_v25 }
 0x115   :  { %v130_v43 = vmul.f32 %v108_v42, %v894_v26  ;;  %v118_v26 = vsel %vm117_vm12, %v772_v21, %v114_v50 }
 0x116   :  { %v131_v54 = vmul.f32 %v118_v26, %v882_v17  ;;  %v139_v55 = vmul.f32 %v765_v38, %v132_v53 }
 0x117   :  { %v137_v18 = vmul.f32 %v765_v38, %v130_v43 }
 0x118   :  { %v138_v56 = vmul.f32 %v765_v38, %v131_v54  ;;  %v146_v57 = vadd.f32 %v766_v45, %v139_v55 }
 0x119   :  { %v144_v49 = vadd.f32 %v766_v45, %v137_v18 }
 0x11a   :  { %v145_v58 = vadd.f32 %v766_v45, %v138_v56 }
 0x11b   :  { %v147_v51 = vpack.c.bf16 %v144_v49, %v143_v48 }
 0x11c   :  { %v148_v59 = vpack.c.bf16 %v146_v57, %v145_v58 }
 0x11d   :  { %359 = vmatmul.bf16.vlgmr.msra.gmra.mxu0 %v147_v51  ;;  %378 = vmatmul.bf16.vlgmr.msra.gmra.mxu1 %v147_v51 }
 0x11e   :  { %397 = vmatmul.bf16.vlgmr.msra.gmra.mxu2 %v147_v51  ;;  %416 = vmatmul.bf16.vlgmr.msra.gmra.mxu3 %v147_v51 }
 0x12d   :  { %364 = vmatmul.bf16.gmra.mxu0 %v148_v59  ;;  %383 = vmatmul.bf16.gmra.mxu1 %v148_v59 }
 0x12e   :  { %402 = vmatmul.bf16.gmra.mxu2 %v148_v59  ;;  %421 = vmatmul.bf16.gmra.mxu3 %v148_v59 }
 0x19a   :  { %v360_v25 = vpop.f32.mrf.mxu0  ;;  %v379_v63 = vpop.f32.mrf.mxu1 }
 0x19b   :  { %v361_v17 = vadd.f32 %v360_v25, %v917_v61  ;;  %v380_v0 = vadd.f32 %v379_v63, %v919_v62 }
 0x19d   :  { %v443_v1 = vmul.f32 0.044715, %v361_v17  ;;  %v444_v2 = vmul.f32 0.044715, %v380_v0  ;;  %v427_v42 = vmul.f32 0.5, %v361_v17  ;;  %v428_v43 = vmul.f32 0.5, %v380_v0 }
 0x19f   :  { %v459_v5 = vmul.f32 %v443_v1, %v361_v17  ;;  %v460_v6 = vmul.f32 %v444_v2, %v380_v0 }
 0x1a1   :  { %v475_v7 = vmul.f32 %v459_v5, %v361_v17  ;;  %v476_v8 = vmul.f32 %v460_v6, %v380_v0  ;;  %v398_v9 = vpop.f32.mrf.mxu2  ;;  %v417_v10 = vpop.f32.mrf.mxu3 }
 0x1a2   :  { %v399_v11 = vadd.f32 %v398_v9, %v923_v3  ;;  %v418_v13 = vadd.f32 %v417_v10, %v925_v4  ;;  %v362_v14 = vpop.f32.mrf.mxu0  ;;  %v381_v15 = vpop.f32.mrf.mxu1 }
 0x1a3   :  { %v491_v16 = vadd.f32 %v475_v7, %v361_v17  ;;  %v492_v19 = vadd.f32 %v476_v8, %v380_v0  ;;  %v363_v20 = vadd.f32 %v362_v14, %v917_v61  ;;  %v382_v21 = vadd.f32 %v381_v15, %v919_v62 }
 0x1a4   :  { %v445_v22 = vmul.f32 0.044715, %v399_v11  ;;  %v446_v23 = vmul.f32 0.044715, %v418_v13  ;;  %v429_v51 = vmul.f32 0.5, %v399_v11  ;;  %v430_v1 = vmul.f32 0.5, %v418_v13 }
 0x1a5   :  { %v507_v24 = vmul.f32 0.7978846, %v491_v16  ;;  %v508_v27 = vmul.f32 0.7978846, %v492_v19  ;;  %v447_v30 = vmul.f32 0.044715, %v363_v20 }
 0x1a6   :  { %v461_v28 = vmul.f32 %v445_v22, %v399_v11  ;;  %v462_v29 = vmul.f32 %v446_v23, %v418_v13  ;;  %v448_v12 = vmul.f32 0.044715, %v382_v21  ;;  %v431_v15 = vmul.f32 0.5, %v363_v20 }
 0x1a7   :  { %777 = vtanh.f32 %v507_v24  ;;  %v463_v33 = vmul.f32 %v447_v30, %v363_v20  ;;  %v432_v16 = vmul.f32 0.5, %v382_v21 }
 0x1a8   :  { %779 = vtanh.f32 %v508_v27  ;;  %v477_v31 = vmul.f32 %v461_v28, %v399_v11  ;;  %v478_v32 = vmul.f32 %v462_v29, %v418_v13  ;;  %v464_v34 = vmul.f32 %v448_v12, %v382_v21 }
 0x1a9   :  { %v400_v35 = vpop.f32.mrf.mxu2  ;;  %v419_v36 = vpop.f32.mrf.mxu3  ;;  %v479_v39 = vmul.f32 %v463_v33, %v363_v20 }
 0x1aa   :  { %v493_v37 = vadd.f32 %v477_v31, %v399_v11  ;;  %v494_v38 = vadd.f32 %v478_v32, %v418_v13  ;;  %v932_v40 = vadd.f32 %v400_v35, %v923_v3  ;;  %v365_v41 = vpop.f32.mrf.mxu0  ;;  %v480_v44 = vmul.f32 %v464_v34, %v382_v21  ;;  %v384_v46 = vpop.f32.mrf.mxu1 }
 0x1ab   :  { %v935_v45 = vadd.f32 %v419_v36, %v925_v4  ;;  %v495_v48 = vadd.f32 %v479_v39, %v363_v20  ;;  %v938_v49 = vadd.f32 %v365_v41, %v917_v61  ;;  %v943_v57 = vadd.f32 %v384_v46, %v919_v62 }
 0x1ac   :  { %v509_v18 = vmul.f32 0.7978846, %v493_v37  ;;  %v510_v47 = vmul.f32 0.7978846, %v494_v38  ;;  %v496_v52 = vadd.f32 %v480_v44, %v382_v21  ;;  %v449_v26 = vmul.f32 0.044715, %v932_v40 }
 0x1ad   :  { %v778_v50 = vpop.eup %777  ;;  %v450_v53 = vmul.f32 0.044715, %v935_v45  ;;  %v511_v56 = vmul.f32 0.7978846, %v495_v48  ;;  %v451_v17 = vmul.f32 0.044715, %v938_v49 }
 0x1ae   :  { %v780_v54 = vpop.eup %779  ;;  %v539_v55 = vadd.f32 1.0, %v778_v50  ;;  %781 = vtanh.f32 %v509_v18  ;;  %v512_v59 = vmul.f32 0.7978846, %v496_v52  ;;  %v465_v60 = vmul.f32 %v449_v26, %v932_v40 }
 0x1af   :  { %v540_v58 = vadd.f32 1.0, %v780_v54  ;;  %783 = vtanh.f32 %v510_v47  ;;  %v466_v63 = vmul.f32 %v450_v53, %v935_v45  ;;  %v467_v8 = vmul.f32 %v451_v17, %v938_v49 }
 0x1b0   :  { %v555_v25 = vmul.f32 %v539_v55, %v427_v42  ;;  %785 = vtanh.f32 %v511_v56  ;;  %v481_v2 = vmul.f32 %v465_v60, %v932_v40  ;;  %v452_v9 = vmul.f32 0.044715, %v943_v57 }
 0x1b1   :  { %v556_v0 = vmul.f32 %v540_v58, %v428_v43  ;;  %787 = vtanh.f32 %v512_v59  ;;  %v403_v5 = vpop.f32.mrf.mxu2  ;;  %v422_v6 = vpop.f32.mrf.mxu3  ;;  %v482_v7 = vmul.f32 %v466_v63, %v935_v45  ;;  %v483_v23 = vmul.f32 %v467_v8, %v938_v49 }
 0x1b2   :  { %v953_v10 = vadd.f32 %v403_v5, %v923_v3  ;;  %v367_v11 = vpop.f32.mrf.mxu0  ;;  %v497_v13 = vadd.f32 %v481_v2, %v932_v40  ;;  %v468_v24 = vmul.f32 %v452_v9, %v943_v57  ;;  %v960_v27 = vadd.f32 %v422_v6, %v925_v4  ;;  %v386_v18 = vpop.f32.mrf.mxu1 }
 0x1b3   :  { %v571_v14 = vpack.c.bf16 %v556_v0, %v555_v25  ;;  %v498_v22 = vadd.f32 %v482_v7, %v935_v45  ;;  %v967_v30 = vadd.f32 %v367_v11, %v917_v61  ;;  %v499_v33 = vadd.f32 %v483_v23, %v938_v49 }
 0x1b4   :  { %v782_v19 = vpop.eup %781  ;;  %v513_v20 = vmul.f32 0.7978846, %v497_v13  ;;  %v453_v21 = vmul.f32 0.044715, %v953_v10  ;;  %v484_v34 = vmul.f32 %v468_v24, %v943_v57  ;;  %v454_v46 = vmul.f32 0.044715, %v960_v27 }
 0x1b5   :  { %v784_v28 = vpop.eup %783  ;;  %579 = vst [vmem:[%s1040_s5] sm:$0xff] %v571_v14  ;;  %v541_v29 = vadd.f32 1.0, %v782_v19  ;;  %v514_v32 = vmul.f32 0.7978846, %v498_v22  ;;  %v515_v42 = vmul.f32 0.7978846, %v499_v33  ;;  %v433_v56 = vmul.f32 0.5, %v932_v40 }
 0x1b6   :  { %v786_v12 = vpop.eup %785  ;;  %v542_v31 = vadd.f32 1.0, %v784_v28  ;;  %789 = vtanh.f32 %v513_v20  ;;  %v469_v38 = vmul.f32 %v453_v21, %v953_v10  ;;  %v500_v61 = vadd.f32 %v484_v34, %v943_v57 }
 0x1b7   :  { %v788_v35 = vpop.eup %787  ;;  %v557_v36 = vmul.f32 %v541_v29, %v429_v51  ;;  %v543_v37 = vadd.f32 1.0, %v786_v12  ;;  %791 = vtanh.f32 %v514_v32  ;;  %v470_v26 = vmul.f32 %v454_v46, %v960_v27 }
 0x1b8   :  { %v558_v39 = vmul.f32 %v542_v31, %v430_v1  ;;  %v544_v41 = vadd.f32 1.0, %v788_v35  ;;  %v485_v44 = vmul.f32 %v469_v38, %v953_v10  ;;  %793 = vtanh.f32 %v515_v42 }
 0x1b9   :  { %v559_v43 = vmul.f32 %v543_v37, %v431_v15  ;;  %v405_v47 = vpop.f32.mrf.mxu2  ;;  %v516_v51 = vmul.f32 0.7978846, %v500_v61  ;;  %v455_v53 = vmul.f32 0.044715, %v967_v30  ;;  %v424_v54 = vpop.f32.mrf.mxu3  ;;  %v983_v58 = vadd.f32 %v386_v18, %v919_v62 }
 0x1ba   :  { %v572_v48 = vpack.c.bf16 %v558_v39, %v557_v36  ;;  %v560_v50 = vmul.f32 %v544_v41, %v432_v16  ;;  %v501_v52 = vadd.f32 %v485_v44, %v953_v10  ;;  %v986_v59 = vadd.f32 %v405_v47, %v923_v3 }
 0x1bb   :  { %795 = vtanh.f32 %v516_v51  ;;  %v486_v63 = vmul.f32 %v470_v26, %v960_v27  ;;  %v471_v17 = vmul.f32 %v455_v53, %v967_v30  ;;  %v434_v40 = vmul.f32 0.5, %v935_v45 }
 0x1bc   :  { %580 = vst [vmem:[%s1040_s5 + $0x8] sm:$0xff] %v572_v48  ;;  %v573_v55 = vpack.c.bf16 %v560_v50, %v559_v43  ;;  %v790_v60 = vpop.eup %789  ;;  %v517_v25 = vmul.f32 0.7978846, %v501_v52  ;;  %v456_v62 = vmul.f32 0.044715, %v983_v58  ;;  %v996_v3 = vadd.f32 %v424_v54, %v925_v4 }
 0x1bd   :  { %v792_v0 = vpop.eup %791  ;;  %v545_v1 = vadd.f32 1.0, %v790_v60  ;;  %v502_v5 = vadd.f32 %v486_v63, %v960_v27  ;;  %v487_v6 = vmul.f32 %v471_v17, %v967_v30  ;;  %v435_v9 = vmul.f32 0.5, %v938_v49 }
 0x1be   :  { %581 = vst [vmem:[%s1040_s5 + $0x10] sm:$0xff] %v573_v55  ;;  %v546_v2 = vadd.f32 1.0, %v792_v0  ;;  %797 = vtanh.f32 %v517_v25  ;;  %v794_v7 = vpop.eup %793  ;;  %v472_v11 = vmul.f32 %v456_v62, %v983_v58  ;;  %v457_v14 = vmul.f32 0.044715, %v986_v59 }
 0x1bf   :  { %v561_v8 = vmul.f32 %v545_v1, %v433_v56  ;;  %v547_v15 = vadd.f32 1.0, %v794_v7  ;;  %v518_v16 = vmul.f32 0.7978846, %v502_v5  ;;  %v503_v4 = vadd.f32 %v487_v6, %v967_v30 }
 0x1c0   :  { %v562_v45 = vmul.f32 %v546_v2, %v434_v40  ;;  %v436_v13 = vmul.f32 0.5, %v943_v57  ;;  %v488_v19 = vmul.f32 %v472_v11, %v983_v58  ;;  %v473_v22 = vmul.f32 %v457_v14, %v986_v59 }
 0x1c1   :  { %v458_v23 = vmul.f32 0.044715, %v996_v3  ;;  %v796_v24 = vpop.eup %795  ;;  %v563_v49 = vmul.f32 %v547_v15, %v435_v9  ;;  %799 = vtanh.f32 %v518_v16  ;;  %v519_v29 = vmul.f32 0.7978846, %v503_v4 }
 0x1c2   :  { %v574_v28 = vpack.c.bf16 %v562_v45, %v561_v8  ;;  %v548_v20 = vadd.f32 1.0, %v796_v24  ;;  %v504_v21 = vadd.f32 %v488_v19, %v983_v58  ;;  %v489_v12 = vmul.f32 %v473_v22, %v986_v59 }
 0x1c3   :  { %v474_v31 = vmul.f32 %v458_v23, %v996_v3  ;;  %801 = vtanh.f32 %v519_v29  ;;  %v437_v38 = vmul.f32 0.5, %v953_v10  ;;  %v438_v61 = vmul.f32 0.5, %v960_v27 }
 0x1c4   :  { %v798_v32 = vpop.eup %797  ;;  %582 = vst [vmem:[%s1040_s5 + $0x18] sm:$0xff] %v574_v28  ;;  %v564_v57 = vmul.f32 %v548_v20, %v436_v13  ;;  %v520_v34 = vmul.f32 0.7978846, %v504_v21  ;;  %v505_v35 = vadd.f32 %v489_v12, %v986_v59  ;;  %v439_v10 = vmul.f32 0.5, %v967_v30 }
 0x1c5   :  { %v549_v33 = vadd.f32 1.0, %v798_v32  ;;  %v490_v36 = vmul.f32 %v474_v31, %v996_v3  ;;  %v440_v26 = vmul.f32 0.5, %v983_v58  ;;  %v441_v56 = vmul.f32 0.5, %v986_v59 }
 0x1c6   :  { %v575_v37 = vpack.c.bf16 %v564_v57, %v563_v49  ;;  %803 = vtanh.f32 %v520_v34  ;;  %v521_v39 = vmul.f32 0.7978846, %v505_v35  ;;  %v442_v30 = vmul.f32 0.5, %v996_v3 }
 0x1c7   :  { %v800_v41 = vpop.eup %799  ;;  %v506_v42 = vadd.f32 %v490_v36, %v996_v3  ;;  %v565_v43 = vmul.f32 %v549_v33, %v437_v38 }
 0x1c8   :  { %583 = vst [vmem:[%s1040_s5 + $0x20] sm:$0xff] %v575_v37  ;;  %v550_v44 = vadd.f32 1.0, %v800_v41  ;;  %805 = vtanh.f32 %v521_v39 }
 0x1c9   :  { %v802_v46 = vpop.eup %801  ;;  %v522_v18 = vmul.f32 0.7978846, %v506_v42 }
 0x1ca   :  { %v566_v47 = vmul.f32 %v550_v44, %v438_v61  ;;  %v551_v48 = vadd.f32 1.0, %v802_v46 }
 0x1cb   :  { %807 = vtanh.f32 %v522_v18 }
 0x1cc   :  { %v804_v50 = vpop.eup %803  ;;  %v576_v51 = vpack.c.bf16 %v566_v47, %v565_v43  ;;  %v567_v52 = vmul.f32 %v551_v48, %v439_v10 }
 0x1cd   :  { %v552_v53 = vadd.f32 1.0, %v804_v50 }
 0x1ce   :  { %v806_v54 = vpop.eup %805  ;;  %584 = vst [vmem:[%s1040_s5 + $0x28] sm:$0xff] %v576_v51 }
 0x1cf   :  { %v568_v27 = vmul.f32 %v552_v53, %v440_v26  ;;  %v553_v55 = vadd.f32 1.0, %v806_v54 }
 0x1d1   :  { %v808_v60 = vpop.eup %807  ;;  %v577_v25 = vpack.c.bf16 %v568_v27, %v567_v52  ;;  %v569_v63 = vmul.f32 %v553_v55, %v441_v56 }
 0x1d2   :  { %v554_v17 = vadd.f32 1.0, %v808_v60 }
 0x1d3   :  { %585 = vst [vmem:[%s1040_s5 + $0x30] sm:$0xff] %v577_v25 }
 0x1d4   :  { %v570_v58 = vmul.f32 %v554_v17, %v442_v30 }
 0x1d6   :  { %v578_v0 = vpack.c.bf16 %v570_v58, %v569_v63 }
 0x1d8   :  { %586 = vst [vmem:[%s1040_s5 + $0x38] sm:$0xff] %v578_v0 }
 0x1d9   :  { %591 = vsyncpa [#allocation3], 1 }

// kernel: gpt_forward.12
= control target key start
LH: loop header
LB: loop body
LE: loop exit
PB: predicated region body
PF: predicated region fallthrough
CT: control target
= control target key end

     0   :  { %s1350_s12 = smov 0   ;;  %s1352_s13 = smov 0   ;;  %s1502_s0 = inlined_call_operand.vmem [shape: bf16[2,16,384], index: 0, kind: input, shape index: {}, may-alias: {0,1,2}]   ;;  %s1503_s1 = inlined_call_operand.vmem [shape: bf16[2,16,384], index: 1, kind: input, shape index: {}, may-alias: {0,1,2}]   ;;  %s1504_s2 = inlined_call_operand.vmem [shape: bf16[2,16,384], index: 2, kind: input, shape index: {}, may-alias: {0,1,2}]   ;;  %s1505_s3 = inlined_call_operand.vmem [shape: bf16[2,16,128], index: 3, kind: output, shape index: {}]  }
   0x1   :  { %s1354_s14 = smov 0   ;;  %s1356_s15 = smov 0  }
   0x2   :  { %s1358_s16 = smov 0  }
   0x3 LB: > { %s32_s17 = sadd.s32 1, %s1320_s15  ;;  %p48_p1 = scmp.ne.s32.totalorder %s1312_s13, %s1308_s12  ;;  %s1324_s16 = sphi %s1358_s16, %s13_s16   ;;  %s1320_s15 = sphi %s1356_s15, %s1510_s15   ;;  %s1316_s14 = sphi %s1354_s14, %s1509_s14   ;;  %s1312_s13 = sphi %s1352_s13, %s1508_s13   ;;  %s1308_s12 = sphi %s1350_s12, %s1507_s12  }
   0x4   : > { %p34_p0 = scmp.ge.s32.totalorder %s32_s17, 2  ;;  %p49_p2 = scmp.eq.s32.totalorder %s1324_s16, 0 }
   0x5   : > { %s41_s20 = sadd.s32 1, %s1312_s13  ;;  %p1156_p5 = scmp.ge.s32.totalorder %s1324_s16, 2 }
   0x6   : > { %s1512_s17 = smov (%p34_p0, %s32_s17), 0  ;;  %p1381_p3 = por %p49_p2, %p48_p1 }
   0x7   : > { %s36_s19 = ssub.s32 %s1320_s15, %s1512_s17  ;;  %166 = sbr.rel (%p1156_p5) target bundleno = 33 (0x21), region = 16 }
   0x8   : > { %p39_p4 = scmp.eq.s32.totalorder %s36_s19, 0 }
   0xa   : > { %s1389_s21 = scalar_select %p39_p4, %s1312_s13, %s41_s20  }
   0xc   : > { %169 = sbr.rel (!%p1381_p3) target bundleno = 19 (0x13), region = 20  ;;  %s171_s22 = sand.u32 (%p1381_p3), 1, %s1312_s13  }
   0xd   : > { %s1214_s23 = smul.u32 (%p1381_p3), 24, %s1320_s15  ;;  %s1157_s24 = sshll.u32 (%p1381_p3), %s171_s22, 3 }
   0xe   : > { %s173_s28 = scalar_lea.vmem (%p1381_p3), [#allocation5], %s1157_s24 }
   0xf   : > { %s179_s27 = scalar_lea.vmem (%p1381_p3), %s1502_s0, %s1214_s23 }
  0x10   : > { %v196_v0 = vld [vmem:[%s179_s27] sm:$0xf] (%p1381_p3)  ;;  %v198_v1 = vld [vmem:[%s179_s27 + $0xc] sm:$0xf] (%p1381_p3) }
  0x11   : > { %197 = vst [vmem:[%s173_s28] sm:$0xf] %v196_v0 }
  0x12   : > { %199 = vst [vmem:[%s173_s28 + $0x4] sm:$0xf] %v198_v1 }
  0x13 PF: > { %227 = sbr.rel (!%p1381_p3) target bundleno = 26 (0x1a), region = 61  ;;  %s229_s29 = sand.u32 (%p1381_p3), 1, %s1312_s13  }
  0x14   : > { %s1160_s30 = smul.u32 (%p1381_p3), 24, %s1320_s15  ;;  %s1159_s4 = sshll.u32 (%p1381_p3), %s229_s29, 3 }
  0x15   : > { %s231_s8 = scalar_lea.vmem (%p1381_p3), [#allocation6], %s1159_s4 }
  0x16   : > { %s1059_s7 = scalar_lea.vmem (%p1381_p3), %s1503_s1, %s1160_s30 }
  0x17   : > { %v1161_v2 = vld [vmem:[%s1059_s7 + $0x4] sm:$0xf] (%p1381_p3)  ;;  %v1162_v3 = vld [vmem:[%s1059_s7 + $0x10] sm:$0xf] (%p1381_p3) }
  0x18   : > { %258 = vst [vmem:[%s231_s8] sm:$0xf] %v1161_v2 }
  0x19   : > { %260 = vst [vmem:[%s231_s8 + $0x4] sm:$0xf] %v1162_v3 }
  0x1a PF: > { %288 = sbr.rel (!%p1381_p3) target bundleno = 33 (0x21), region = 102  ;;  %s290_s9 = sand.u32 (%p1381_p3), 1, %s1312_s13  }
  0x1b   : > { %s1164_s10 = smul.u32 (%p1381_p3), 24, %s1320_s15  ;;  %s1163_s11 = sshll.u32 (%p1381_p3), %s290_s9, 3 }
  0x1c   : > { %s292_s23 = scalar_lea.vmem (%p1381_p3), [#allocation7], %s1163_s11 }
  0x1d   : > { %s1067_s22 = scalar_lea.vmem (%p1381_p3), %s1504_s2, %s1164_s10 }
  0x1e   : > { %v1165_v4 = vld [vmem:[%s1067_s22 + $0x8] sm:$0xf] (%p1381_p3)  ;;  %v1166_v5 = vld [vmem:[%s1067_s22 + $0x14] sm:$0xf] (%p1381_p3) }
  0x1f   : > { %319 = vst [vmem:[%s292_s23] sm:$0xf] %v1165_v4 }
  0x20   : > { %321 = vst [vmem:[%s292_s23 + $0x4] sm:$0xf] %v1166_v5 }
  0x21 PF: > { %p1167_p6 = scmp.ge.s32.totalorder %s1324_s16, 1  ;;  %p348_p7 = scmp.lt.s32.totalorder %s1324_s16, 3 }
  0x23   : > { %p349_p8 = pnand %p1167_p6, %p348_p7 }
  0x24   : > { %s355_s18 = sand.u32 (!%p349_p8), 1, %s1308_s12   ;;  %s1326_s26 = smov (!%p349_p8), 64  }
  0x25   : > { %352 = sbr.rel (%p349_p8) target bundleno = 819 (0x333), region = 143  ;;  %s1416_s24 = sshll.u32 (!%p349_p8), %s355_s18, 3 }
  0x26   : > { %s364_s25 = scalar_lea.vmem (!%p349_p8), [#allocation6], %s1416_s24  ;;  %s357_s27 = scalar_lea.vmem (!%p349_p8), [#allocation5], %s1416_s24 }
  0x27   : > { %s371_s12 = scalar_lea.vmem (!%p349_p8), [#allocation7], %s1416_s24  ;;  %p412_p9 = scmp.lt.s32.totalorder (!%p349_p8), %s1316_s14, 1 }
  0x2a   : > { %v1212_v6 = vld [vmem:[%s364_s25] sm:$0xff]  ;;  %v1211_v7 = vld [vmem:[%s357_s27] sm:$0xff]  ;;  %vm723_vm0 = vcmask 523264   ;;  %v706_v12 = vlaneseq  ;;  %vm752_vm2 = vcmask 130048   ;;  %vm428_vm4 = vcmask 7168   ;;  %s1514_s14 = smov (!%p412_p9, %s1316_s14), 1 }
  0x2b   : > { %842 = vrot.lane.b32.xlu0 %v1212_v6, %s1326_s26  ;;  %v728_v8 = vsel %vm723_vm0, %v1212_v6, 0  ;;  %v1327_v24 = vmov -1e+30   ;;  %v1328_v33 = vmov 0   ;;  %v1329_v37 = vmov 0.0   ;;  %v1213_v42 = vld [vmem:[%s371_s12] sm:$0xff] }
  0x2c   : > { %737 = vmatpush.bf16.xpose.msra.mxu0 %v728_v8  ;;  %v707_v13 = vshrl.u32 %v706_v12, 7  ;;  %v710_v14 = vand.u32 127, %v706_v12  ;;  %431 = vst.msk [vmem:[#allocation3 + $0x10] sm:$0xff] %vm428_vm4, %v1327_v24  ;;  %1259 = vset.pattern.permute.xlu0 %v1328_v33  ;;  %vm963_vm5 = vcmask 1048064   ;;  %s1207_s28 = sshll.u32 %s1514_s14, 3  ;;  %vm989_vm6 = vcmask 519168  }
  0x2d   : > { %429 = vst.msk [vmem:[#allocation3] sm:$0xff] %vm428_vm4, %v1327_v24  ;;  %1260 = vset.pattern.permute.xlu1 %v1328_v33  ;;  %1261 = vset.pattern.permute.xlu2 %v1328_v33  ;;  %s419_s4 = scalar_lea.vmem %s1505_s3, %s1207_s28  ;;  %vm1013_vm7 = vcmask 1043968  }
  0x2e   : > { %vm711_vm1 = vcmp.le.s32.totalorder %v710_v14, %v707_v13  ;;  %v708_v19 = vadd.s32 8, %v707_v13  ;;  %430 = vst.msk [vmem:[#allocation3 + $0x8] sm:$0xff] %vm428_vm4, %v1327_v24  ;;  %829 = vmatpush.bf16.msra.mxu1 %v1213_v42 }
  0x2f   : > { %432 = vst.msk [vmem:[#allocation3 + $0x18] sm:$0xff] %vm428_vm4, %v1327_v24 }
  0x30   : > { %vm712_vm3 = vcmp.le.s32.totalorder %v710_v14, %v708_v19  ;;  %426 = vst [vmem:[#allocation2] sm:$0xff] %v1329_v37 }
  0x31   : > { %427 = vst [vmem:[#allocation2 + $0x8] sm:$0xff] %v1329_v37 }
  0x32   : > { %433 = vst.msk [vmem:[#allocation4] sm:$0xff] %vm428_vm4, %v1329_v37 }
  0x33   : > { %840 = vrot.lane.b32.xlu0 %v1211_v7, %s1326_s26  ;;  %1197 = vmatmul.msk.bf16.vlgmr.msra.gmra.mxu0 %vm723_vm0, %v1211_v7  ;;  %434 = vst.msk [vmem:[#allocation4 + $0x8] sm:$0xff] %vm428_vm4, %v1329_v37  ;;  %v869_v43 = vld [vmem:[#allocation3 + $0x10] sm:$0xff] }
  0x34   : > { %v748_v35 = vld [vmem:[#allocation3] sm:$0xff]  ;;  %435 = vst.msk [vmem:[#allocation4 + $0x10] sm:$0xff] %vm428_vm4, %v1329_v37 }
  0x35   : > { %v1445_v38 = vld [vmem:[#allocation3 + $0x8] sm:$0xff]  ;;  %436 = vst.msk [vmem:[#allocation4 + $0x18] sm:$0xff] %vm428_vm4, %v1329_v37 }
  0x36   : > { %v870_v49 = vld [vmem:[#allocation3 + $0x18] sm:$0xff] }
  0x3b   : > { %v872_v19 = vld [vmem:[#allocation4 + $0x10] sm:$0xff] }
  0x9d   : > { %v843_v9 = vpop.permute.xlu0 %842 }
  0x9e   : > { %v848_v10 = vsel %vm723_vm0, %v843_v9, 0 }
  0x9f   : > { %857 = vmatpush.bf16.xpose.msra.mxu2 %v848_v10 }
  0xa5   : > { %v841_v11 = vpop.permute.xlu0 %840 }
  0xa6   : > { %1203 = vmatmul.msk.bf16.vlgmr.msra.gmra.mxu2 %vm723_vm0, %v841_v11 }
  0xb0   : > { %v739_v15 = vpop.f32.mrf.mxu0 }
  0xb1   : > { %v744_v16 = vmul.f32 0.125, %v739_v15 }
  0xb3   : > { %v1427_v17 = vsel %vm711_vm1, %v744_v16, -1e+30 }
  0xb4   : > { %v753_v18 = vsel %vm752_vm2, %v1427_v17, -inf }
  0xb5   : > { %754 = vmax.xlane.f32.xlu2 %v753_v18 }
  0xb8   : > { %v741_v20 = vpop.f32.mrf.mxu0 }
  0xb9   : > { %v745_v21 = vmul.f32 0.125, %v741_v20 }
  0xbb   : > { %v1432_v22 = vsel %vm712_vm3, %v745_v21, -1e+30 }
  0xbc   : > { %v756_v23 = vsel %vm752_vm2, %v1432_v22, -inf }
  0xbd   : > { %757 = vmax.xlane.f32.xlu2 %v756_v23  ;;  %v750_v23 = vld [vmem:[#allocation4] sm:$0xff] }
  0xd5   : > { %933 = vrot.lane.b32.xlu2 %v1213_v42, %s1326_s26 }
 0x128   : > { %v755_v34 = vpop.xlane.xlu2 %754 }
 0x129   : > { %v859_v25 = vpop.f32.mrf.mxu2  ;;  %v759_v36 = vmax.f32 %v748_v35, %v755_v34 }
 0x12a   : > { %v864_v26 = vmul.f32 0.125, %v859_v25 }
 0x12b   : > { %796 = vst.msk [vmem:[#allocation3] sm:$0xff] %vm428_vm4, %v759_v36  ;;  %v761_v46 = vsub.f32 %v748_v35, %v759_v36 }
 0x12c   : > { %v866_v27 = vsel %vm711_vm1, %v864_v26, -1e+30 }
 0x12d   : > { %v874_v28 = vsel %vm752_vm2, %v866_v27, -inf  ;;  %v763_v48 = vmul.f32 1.442695, %v761_v46 }
 0x12e   : > { %875 = vmax.xlane.f32.xlu1 %v874_v28  ;;  %v751_v28 = vld [vmem:[#allocation4 + $0x8] sm:$0xff] }
 0x12f   : > { %1262 = vpow2.f32 %v763_v48 }
 0x130   : > { %v758_v39 = vpop.xlane.xlu2 %757 }
 0x131   : > { %v861_v29 = vpop.f32.mrf.mxu2  ;;  %v1449_v40 = vmax.f32 %v1445_v38, %v758_v39 }
 0x132   : > { %v865_v30 = vmul.f32 0.125, %v861_v29  ;;  %v873_v29 = vld [vmem:[#allocation4 + $0x18] sm:$0xff] }
 0x133   : > { %v762_v41 = vsub.f32 %v1445_v38, %v1449_v40  ;;  %797 = vst.msk [vmem:[#allocation3 + $0x8] sm:$0xff] %vm428_vm4, %v1449_v40 }
 0x134   : > { %v867_v31 = vsel %vm712_vm3, %v865_v30, -1e+30 }
 0x135   : > { %v877_v32 = vsel %vm752_vm2, %v867_v31, -inf  ;;  %v1263_v53 = vpop.eup %1262  ;;  %v765_v15 = vmul.f32 1.442695, %v762_v41 }
 0x136   : > { %878 = vmax.xlane.f32.xlu1 %v877_v32  ;;  %v783_v25 = vmul.f32 %v1263_v53, %v750_v23 }
 0x138   : > { %v934_v54 = vpop.permute.xlu2 %933 }
 0x139   : > { %946 = vmatpush.bf16.msra.mxu3 %v934_v54 }
 0x1a1   : > { %v876_v44 = vpop.xlane.xlu1 %875 }
 0x1a2   : > { %v880_v45 = vmax.f32 %v869_v43, %v876_v44 }
 0x1a4   : > { %v882_v47 = vsub.f32 %v869_v43, %v880_v45  ;;  %916 = vst.msk [vmem:[#allocation3 + $0x10] sm:$0xff] %vm428_vm4, %v880_v45  ;;  %890 = vperm.xlu0 %1259, %v880_v45  }
 0x1a6   : > { %v884_v9 = vmul.f32 1.442695, %v882_v47 }
 0x1a9   : > { %v879_v50 = vpop.xlane.xlu1 %878 }
 0x1aa   : > { %v881_v51 = vmax.f32 %v870_v49, %v879_v50 }
 0x1ac   : > { %v883_v52 = vsub.f32 %v870_v49, %v881_v51  ;;  %917 = vst.msk [vmem:[#allocation3 + $0x18] sm:$0xff] %vm428_vm4, %v881_v51  ;;  %895 = vperm.xlu1 %1260, %v881_v51   ;;  %769 = vperm.xlu0 %1259, %v759_v36  }
 0x1ae   : > { %v886_v16 = vmul.f32 1.442695, %v883_v52 }
 0x1b4   : > { %802 = vperm.xlu1 %1260, %v1263_v53   ;;  %774 = vperm.xlu0 %1259, %v1449_v40  }
 0x216   : > { %v891_v55 = vpop.permute.xlu0 %890 }
 0x217   : > { %v898_v56 = vsub.f32 %v866_v27, %v891_v55 }
 0x219   : > { %v900_v57 = vmul.f32 1.442695, %v898_v56 }
 0x21b   : > { %1264 = vpow2.f32 %v900_v57 }
 0x21e   : > { %v896_v58 = vpop.permute.xlu1 %895  ;;  %v770_v59 = vpop.permute.xlu0 %769 }
 0x21f   : > { %v899_v60 = vsub.f32 %v867_v31, %v896_v58  ;;  %v777_v61 = vsub.f32 %v1427_v17, %v770_v59 }
 0x221   : > { %v1265_v62 = vpop.eup %1264  ;;  %v902_v63 = vmul.f32 1.442695, %v899_v60  ;;  %v779_v0 = vmul.f32 1.442695, %v777_v61 }
 0x222   : > { %v906_v1 = vsel %vm752_vm2, %v1265_v62, 0.0 }
 0x223   : > { %1266 = vpow2.f32 %v902_v63  ;;  %907 = vadd.xlane.f32.xlu0 %v906_v1 }
 0x224   : > { %1268 = vpow2.f32 %v779_v0 }
 0x226   : > { %v775_v2 = vpop.permute.xlu0 %774  ;;  %v803_v24 = vpop.permute.xlu1 %802 }
 0x227   : > { %v778_v3 = vsub.f32 %v1432_v22, %v775_v2  ;;  %v810_v39 = vmul.f32 0.0, %v803_v24 }
 0x229   : > { %v1267_v4 = vpop.eup %1266  ;;  %v781_v5 = vmul.f32 1.442695, %v778_v3 }
 0x22a   : > { %v1269_v6 = vpop.eup %1268  ;;  %v932_v7 = vpack.c.bf16 %v1267_v4, %v1265_v62  ;;  %v909_v13 = vsel %vm752_vm2, %v1267_v4, 0.0 }
 0x22b   : > { %1270 = vpow2.f32 %v781_v5  ;;  %v785_v8 = vsel %vm752_vm2, %v1269_v6, 0.0 }
 0x22c   : > { %786 = vadd.xlane.f32.xlu2 %v785_v8  ;;  %1204 = vmatmul.msk.bf16.vlgmr.msra.gmra.mxu3 %vm752_vm2, %v932_v7  ;;  %1272 = vpow2.f32 %v884_v9 }
 0x22d   : > { %1274 = vpow2.f32 %v765_v15 }
 0x22e   : > { %1276 = vpow2.f32 %v886_v16 }
 0x231   : > { %v1271_v10 = vpop.eup %1270 }
 0x232   : > { %v788_v11 = vsel %vm752_vm2, %v1271_v10, 0.0  ;;  %v812_v12 = vpack.c.bf16 %v1271_v10, %v1269_v6  ;;  %v1273_v14 = vpop.eup %1272 }
 0x233   : > { %789 = vadd.xlane.f32.xlu1 %v788_v11  ;;  %v1275_v17 = vpop.eup %1274  ;;  %v904_v20 = vmul.f32 %v1273_v14, %v872_v19 }
 0x234   : > { %910 = vadd.xlane.f32.xlu2 %v909_v13  ;;  %1202 = vmatmul.msk.bf16.vlgmr.msra.gmra.mxu1 %vm752_vm2, %v812_v12  ;;  %v1277_v18 = vpop.eup %1276  ;;  %v784_v30 = vmul.f32 %v1275_v17, %v751_v28 }
 0x235   : > { %v905_v32 = vmul.f32 %v1277_v18, %v873_v29 }
 0x237   : > { %922 = vperm.xlu0 %1259, %v1273_v14  }
 0x24c   : > { %807 = vperm.xlu2 %1261, %v1275_v17   ;;  %927 = vperm.xlu1 %1260, %v1277_v18  }
 0x296   : > { %v908_v21 = vpop.xlane.xlu0 %907 }
 0x297   : > { %v912_v22 = vadd.f32 %v908_v21, %v904_v20 }
 0x299   : > { %914 = vst.msk [vmem:[#allocation4 + $0x10] sm:$0xff] %vm428_vm4, %v912_v22 }
 0x29f   : > { %v787_v26 = vpop.xlane.xlu2 %786 }
 0x2a0   : > { %v791_v27 = vadd.f32 %v787_v26, %v783_v25  ;;  %v993_v45 = vld [vmem:[#allocation4 + $0x10] sm:$0xff] }
 0x2a2   : > { %794 = vst.msk [vmem:[#allocation4] sm:$0xff] %vm428_vm4, %v791_v27 }
 0x2a6   : > { %v790_v31 = vpop.xlane.xlu1 %789 }
 0x2a7   : > { %v792_v33 = vadd.f32 %v790_v31, %v784_v30  ;;  %v911_v34 = vpop.xlane.xlu2 %910 }
 0x2a8   : > { %v913_v35 = vadd.f32 %v911_v34, %v905_v32 }
 0x2a9   : > { %795 = vst.msk [vmem:[#allocation4 + $0x8] sm:$0xff] %vm428_vm4, %v792_v33  ;;  %v969_v36 = vld [vmem:[#allocation4] sm:$0xff]  ;;  %v923_v58 = vpop.permute.xlu0 %922 }
 0x2aa   : > { %915 = vst.msk [vmem:[#allocation4 + $0x18] sm:$0xff] %vm428_vm4, %v913_v35  ;;  %1278 = vrcp.f32 %v969_v36 }
 0x2af   : > { %v948_v37 = vpop.f32.mrf.mxu3  ;;  %v808_v44 = vpop.permute.xlu2 %807 }
 0x2b0   : > { %v1279_v38 = vpop.eup %1278  ;;  %955 = vrot.lane.b32.xlu0 %v948_v37, %s1326_s26  ;;  %v970_v40 = vld [vmem:[#allocation4 + $0x8] sm:$0xff]  ;;  %v811_v49 = vmul.f32 0.0, %v808_v44 }
 0x2b1   : > { %977 = vperm.xlu1 %1260, %v1279_v38   ;;  %v831_v41 = vpop.f32.mrf.mxu1  ;;  %1280 = vrcp.f32 %v970_v40  ;;  %v994_v42 = vld [vmem:[#allocation4 + $0x18] sm:$0xff] }
 0x2b2   : > { %v836_v43 = vadd.f32 %v831_v41, %v810_v39  ;;  %1282 = vrcp.f32 %v994_v42 }
 0x2b3   : > { %1284 = vrcp.f32 %v993_v45 }
 0x2b4   : > { %838 = vst.msk [vmem:[#allocation2] sm:$0xff] %vm723_vm0, %v836_v43 }
 0x2b7   : > { %v1281_v46 = vpop.eup %1280  ;;  %v950_v47 = vpop.f32.mrf.mxu3 }
 0x2b8   : > { %v1283_v48 = vpop.eup %1282  ;;  %982 = vperm.xlu0 %1259, %v1281_v46   ;;  %957 = vrot.lane.b32.xlu2 %v950_v47, %s1326_s26 }
 0x2b9   : > { %1006 = vperm.xlu1 %1260, %v1283_v48   ;;  %v833_v50 = vpop.f32.mrf.mxu1  ;;  %v1285_v52 = vpop.eup %1284 }
 0x2ba   : > { %v837_v51 = vadd.f32 %v833_v50, %v811_v49 }
 0x2bb   : > { %v918_v59 = vld [vmem:[#allocation2] sm:$0xff] }
 0x2bc   : > { %839 = vst.msk [vmem:[#allocation2 + $0x8] sm:$0xff] %vm723_vm0, %v837_v51  ;;  %v930_v60 = vmul.f32 %v923_v58, %v918_v59 }
 0x2be   : > { %v928_v54 = vpop.permute.xlu1 %927 }
 0x2c0   : > { %1001 = vperm.xlu2 %1261, %v1285_v52  }
 0x2c3   : > { %v919_v53 = vld [vmem:[#allocation2 + $0x8] sm:$0xff] }
 0x2c4   : > { %v931_v55 = vmul.f32 %v928_v54, %v919_v53 }
 0x312   : > { %v958_v56 = vpop.permute.xlu2 %957 }
 0x313   : > { %v962_v57 = vadd.f32 %v958_v56, %v931_v55 }
 0x315   : > { %965 = vst.msk [vmem:[#allocation2 + $0x8] sm:$0xff] %vm963_vm5, %v962_v57 }
 0x31a   : > { %v1002_v4 = vpop.permute.xlu2 %1001 }
 0x31c   : > { %v974_v1 = vld [vmem:[#allocation2 + $0x8] sm:$0xff] }
 0x322   : > { %v956_v61 = vpop.permute.xlu0 %955 }
 0x323   : > { %v961_v62 = vadd.f32 %v956_v61, %v930_v60  ;;  %v978_v63 = vpop.permute.xlu1 %977 }
 0x325   : > { %964 = vst.msk [vmem:[#allocation2] sm:$0xff] %vm963_vm5, %v961_v62 }
 0x32a   : > { %v983_v0 = vpop.permute.xlu0 %982 }
 0x32b   : > { %v986_v2 = vmul.f32 %v983_v0, %v974_v1  ;;  %v1007_v3 = vpop.permute.xlu1 %1006 }
 0x32c   : > { %v973_v5 = vld [vmem:[#allocation2] sm:$0xff]  ;;  %v1010_v6 = vmul.f32 %v1007_v3, %v974_v1 }
 0x32d   : > { %v985_v7 = vmul.f32 %v978_v63, %v973_v5  ;;  %v1009_v8 = vmul.f32 %v1002_v4, %v973_v5  ;;  %v988_v9 = vpack.c.bf16 %v986_v2, %v986_v2 }
 0x32e   : > { %v1012_v10 = vpack.c.bf16 %v1010_v6, %v1010_v6 }
 0x32f   : > { %v987_v11 = vpack.c.bf16 %v985_v7, %v985_v7  ;;  %v1011_v12 = vpack.c.bf16 %v1009_v8, %v1009_v8  ;;  %991 = vst.msk [vmem:[%s419_s4 + $0x4] sm:$0xf] %vm989_vm6, %v988_v9 }
 0x330   : > { %1015 = vst.msk [vmem:[%s419_s4 + $0x4] sm:$0xf] %vm1013_vm7, %v1012_v10 }
 0x331   : > { %990 = vst.msk [vmem:[%s419_s4] sm:$0xf] %vm989_vm6, %v987_v11 }
 0x332   : > { %1014 = vst.msk [vmem:[%s419_s4] sm:$0xf] %vm1013_vm7, %v1011_v12 }
 0x333 PF: > { %s13_s16 = sadd.s32 1, %s1324_s16   ;;  %s1507_s12 = smov %s1312_s13 }
 0x334   : > { %p10_p10 = scmp.ge.s32.totalorder %s13_s16, 4   ;;  %s1508_s13 = smov %s1389_s21 }
 0x335   : > { %s1509_s14 = smov %s1320_s15  ;;  %s1510_s15 = smov %s1512_s17 }
 0x336   :  { %12 = sbr.rel (!%p10_p10) target bundleno = 3 (0x3), region = 227 }

// kernel: gpt_forward.21
= control target key start
LH: loop header
LB: loop body
LE: loop exit
PB: predicated region body
PF: predicated region fallthrough
CT: control target
= control target key end

     0   :  { %s592_s0 = inlined_call_operand.vmem [shape: bf16[32,128], index: 0, kind: input, shape index: {}]   ;;  %s593_s1 = inlined_call_operand.vmem [shape: bf16[256,128], index: 1, kind: input, shape index: {}]   ;;  %s594_s2 = inlined_call_operand.vmem [shape: f32[1,128], index: 2, kind: input, shape index: {}]   ;;  %s595_s3 = inlined_call_operand.vmem [shape: f32[1,128], index: 3, kind: input, shape index: {}]   ;;  %s596_s4 = inlined_call_operand.hbm [shape: bf16[32,256], index: 4, kind: output, shape index: {}]  }
   0x1   :  { %v411_v0 = vld [vmem:[%s592_s0 + $0x8] sm:$0xff]   ;;  %v404_v1 = vld [vmem:[%s592_s0] sm:$0xff]  }
   0x2   :  { %v409_v2 = vunpack.c.l.bf16 %v411_v0  ;;  %v405_v3 = vunpack.c.l.bf16 %v404_v1 }
   0x3   :  { %9 = vsyncpa [#allocation3], 0  ;;  %v410_v4 = vunpack.c.h.bf16 %v411_v0  ;;  %v406_v5 = vunpack.c.h.bf16 %v404_v1  ;;  %v470_v6 = vmov 128.0   ;;  %v394_v9 = vld [vmem:[%s593_s1 + $0x38] sm:$0xff]  ;;  %v393_v12 = vld [vmem:[%s593_s1 + $0x30] sm:$0xff]  ;;  %s311_s28 = sshll.u32 %s596_s4, 4  ;;  %s312_s28 = int_to_ptr.hbm [resolvable:$true] %s311_s28 }
   0x4   :  { %32 = vadd.xlane.f32.xlu0 %v409_v2  ;;  %28 = vadd.xlane.f32.xlu1 %v405_v3  ;;  %434 = vrcp.f32 %v470_v6  ;;  %v402_v10 = vld [vmem:[%s593_s1 + $0x78] sm:$0xff]  ;;  %v401_v14 = vld [vmem:[%s593_s1 + $0x70] sm:$0xff]  ;;  %v392_v16 = vld [vmem:[%s593_s1 + $0x28] sm:$0xff]  ;;  %s472_s29 = smov 128   ;;  %s473_s30 = smov 8  }
   0x5   :  { %259 = vmatpush.bf16.xpose.msra.mxu0 %v394_v9  ;;  %412 = vmatpush.bf16.xpose.msra.mxu2 %v394_v9  ;;  %v400_v18 = vld [vmem:[%s593_s1 + $0x68] sm:$0xff]  ;;  %v391_v27 = vld [vmem:[%s593_s1 + $0x20] sm:$0xff]  ;;  %v390_v37 = vld [vmem:[%s593_s1 + $0x18] sm:$0xff] }
   0x6   :  { %278 = vmatpush.bf16.xpose.msra.mxu1 %v402_v10  ;;  %420 = vmatpush.bf16.xpose.msra.mxu3 %v402_v10  ;;  %v399_v28 = vld [vmem:[%s593_s1 + $0x60] sm:$0xff]  ;;  %v398_v38 = vld [vmem:[%s593_s1 + $0x58] sm:$0xff]  ;;  %v389_v39 = vld [vmem:[%s593_s1 + $0x10] sm:$0xff] }
   0x7   :  { %v397_v40 = vld [vmem:[%s593_s1 + $0x50] sm:$0xff]  ;;  %v388_v41 = vld [vmem:[%s593_s1 + $0x8] sm:$0xff]  ;;  %v387_v43 = vld [vmem:[%s593_s1] sm:$0xff] }
   0x8   :  { %v396_v42 = vld [vmem:[%s593_s1 + $0x48] sm:$0xff]  ;;  %v395_v44 = vld [vmem:[%s593_s1 + $0x40] sm:$0xff] }
   0xa   :  { %v435_v7 = vpop.eup %434 }
   0xb   :  { %v37_v8 = vmul.f32 128.0, %v435_v7  ;;  %vm41_vm0 = vweird.f32 %v435_v7 }
   0xc   :  { %34 = vadd.xlane.f32.xlu0 %v410_v4  ;;  %30 = vadd.xlane.f32.xlu1 %v406_v5 }
   0xd   :  { %v38_v11 = vsub.f32 1.0, %v37_v8  ;;  %260 = vmatpush.bf16.xpose.msra.mxu0 %v393_v12  ;;  %413 = vmatpush.bf16.xpose.msra.mxu2 %v393_v12 }
   0xe   :  { %279 = vmatpush.bf16.xpose.msra.mxu1 %v401_v14  ;;  %421 = vmatpush.bf16.xpose.msra.mxu3 %v401_v14 }
   0xf   :  { %v39_v13 = vmul.f32 %v435_v7, %v38_v11 }
  0x11   :  { %v40_v15 = vadd.f32 %v435_v7, %v39_v13 }
  0x13   :  { %v520_v17 = vsel %vm41_vm0, %v435_v7, %v40_v15 }
  0x15   :  { %261 = vmatpush.bf16.xpose.msra.mxu0 %v392_v16  ;;  %414 = vmatpush.bf16.xpose.msra.mxu2 %v392_v16 }
  0x16   :  { %280 = vmatpush.bf16.xpose.msra.mxu1 %v400_v18  ;;  %422 = vmatpush.bf16.xpose.msra.mxu3 %v400_v18 }
  0x1d   :  { %262 = vmatpush.bf16.xpose.msra.mxu0 %v391_v27  ;;  %415 = vmatpush.bf16.xpose.msra.mxu2 %v391_v27 }
  0x1e   :  { %281 = vmatpush.bf16.xpose.msra.mxu1 %v399_v28  ;;  %423 = vmatpush.bf16.xpose.msra.mxu3 %v399_v28 }
  0x25   :  { %263 = vmatpush.bf16.xpose.msra.mxu0 %v390_v37  ;;  %416 = vmatpush.bf16.xpose.msra.mxu2 %v390_v37 }
  0x26   :  { %282 = vmatpush.bf16.xpose.msra.mxu1 %v398_v38  ;;  %424 = vmatpush.bf16.xpose.msra.mxu3 %v398_v38 }
  0x2d   :  { %264 = vmatpush.bf16.xpose.msra.mxu0 %v389_v39  ;;  %417 = vmatpush.bf16.xpose.msra.mxu2 %v389_v39 }
  0x2e   :  { %283 = vmatpush.bf16.xpose.msra.mxu1 %v397_v40  ;;  %425 = vmatpush.bf16.xpose.msra.mxu3 %v397_v40 }
  0x35   :  { %265 = vmatpush.bf16.xpose.msra.mxu0 %v388_v41  ;;  %418 = vmatpush.bf16.xpose.msra.mxu2 %v388_v41 }
  0x36   :  { %284 = vmatpush.bf16.xpose.msra.mxu1 %v396_v42  ;;  %426 = vmatpush.bf16.xpose.msra.mxu3 %v396_v42 }
  0x3d   :  { %266 = vmatpush.bf16.xpose.msra.mxu0 %v387_v43  ;;  %419 = vmatpush.bf16.xpose.msra.mxu2 %v387_v43 }
  0x3e   :  { %285 = vmatpush.bf16.xpose.msra.mxu1 %v395_v44  ;;  %427 = vmatpush.bf16.xpose.msra.mxu3 %v395_v44 }
  0x77   :  { %v33_v19 = vpop.xlane.xlu0 %32  ;;  %v29_v20 = vpop.xlane.xlu1 %28 }
  0x78   :  { %v45_v21 = vmul.f32 %v520_v17, %v33_v19  ;;  %v43_v22 = vmul.f32 %v520_v17, %v29_v20 }
  0x7a   :  { %v527_v23 = vsub.f32 %v405_v3, %v43_v22  ;;  %v529_v24 = vsub.f32 %v409_v2, %v45_v21 }
  0x7c   :  { %v53_v25 = vmul.f32 %v529_v24, %v529_v24  ;;  %v51_v26 = vmul.f32 %v527_v23, %v527_v23 }
  0x7e   :  { %59 = vadd.xlane.f32.xlu2 %v53_v25  ;;  %55 = vadd.xlane.f32.xlu0 %v51_v26  ;;  %v433_v26 = vld [vmem:[%s595_s3] ss:$0 sm:$0xff] }
  0x7f   :  { %v35_v29 = vpop.xlane.xlu0 %34  ;;  %v31_v30 = vpop.xlane.xlu1 %30 }
  0x80   :  { %v46_v31 = vmul.f32 %v520_v17, %v35_v29  ;;  %v44_v32 = vmul.f32 %v520_v17, %v31_v30 }
  0x82   :  { %v543_v33 = vsub.f32 %v410_v4, %v46_v31  ;;  %v545_v34 = vsub.f32 %v406_v5, %v44_v32 }
  0x84   :  { %v54_v35 = vmul.f32 %v543_v33, %v543_v33  ;;  %v52_v36 = vmul.f32 %v545_v34, %v545_v34 }
  0x86   :  { %61 = vadd.xlane.f32.xlu2 %v54_v35  ;;  %57 = vadd.xlane.f32.xlu1 %v52_v36 }
  0xf1   :  { %v60_v45 = vpop.xlane.xlu2 %59  ;;  %v56_v46 = vpop.xlane.xlu0 %55 }
  0xf2   :  { %v65_v47 = vmul.f32 %v60_v45, %v520_v17  ;;  %v63_v48 = vmul.f32 %v56_v46, %v520_v17 }
  0xf4   :  { %v69_v49 = vadd.f32 1e-05, %v65_v47  ;;  %v67_v50 = vadd.f32 1e-05, %v63_v48 }
  0xf6   :  { %436 = vrsqrt.f32 %v69_v49  ;;  %vm77_vm2 = vweird.f32 %v67_v50  ;;  %vm97_vm4 = vweird.f32 %v69_v49 }
  0xf7   :  { %438 = vrsqrt.f32 %v67_v50 }
  0xf9   :  { %v62_v51 = vpop.xlane.xlu2 %61  ;;  %v58_v52 = vpop.xlane.xlu1 %57 }
  0xfa   :  { %v66_v53 = vmul.f32 %v62_v51, %v520_v17  ;;  %v64_v54 = vmul.f32 %v58_v52, %v520_v17  ;;  %v432_v17 = vld [vmem:[%s594_s2] ss:$0 sm:$0xff]  ;;  %s471_s2 = smov [#allocation2]  }
  0xfb   :  { %s309_s3 = sshll.u32 %s471_s2, 4  ;;  %s310_s3 = int_to_ptr.vmem [resolvable:$true] %s309_s3 }
  0xfc   :  { %v437_v55 = vpop.eup %436  ;;  %v70_v56 = vadd.f32 1e-05, %v66_v53  ;;  %v68_v57 = vadd.f32 1e-05, %v64_v54 }
  0xfd   :  { %v439_v58 = vpop.eup %438  ;;  %v92_v59 = vmul.f32 %v437_v55, %v69_v49  ;;  %vm98_vm1 = vweird.f32 %v437_v55 }
  0xfe   :  { %v72_v60 = vmul.f32 %v439_v58, %v67_v50  ;;  %440 = vrsqrt.f32 %v70_v56  ;;  %vm78_vm3 = vweird.f32 %v439_v58  ;;  %vm99_vm5 = vmor %vm97_vm4, %vm98_vm1  ;;  %vm87_vm8 = vweird.f32 %v68_v57 }
  0xff   :  { %v93_v61 = vmul.f32 %v437_v55, %v92_v59  ;;  %442 = vrsqrt.f32 %v68_v57  ;;  %vm79_vm6 = vmor %vm77_vm2, %vm78_vm3  ;;  %vm107_vm10 = vweird.f32 %v70_v56 }
 0x100   :  { %v73_v62 = vmul.f32 %v439_v58, %v72_v60 }
 0x101   :  { %v94_v63 = vmul.f32 0.5, %v93_v61 }
 0x102   :  { %v74_v0 = vmul.f32 0.5, %v73_v62 }
 0x103   :  { %v95_v1 = vsub.f32 1.5, %v94_v63 }
 0x104   :  { %v441_v2 = vpop.eup %440  ;;  %v75_v3 = vsub.f32 1.5, %v74_v0 }
 0x105   :  { %v443_v4 = vpop.eup %442  ;;  %v96_v5 = vmul.f32 %v437_v55, %v95_v1  ;;  %v102_v6 = vmul.f32 %v441_v2, %v70_v56  ;;  %vm108_vm7 = vweird.f32 %v441_v2 }
 0x106   :  { %v76_v7 = vmul.f32 %v439_v58, %v75_v3  ;;  %v82_v8 = vmul.f32 %v443_v4, %v68_v57  ;;  %vm88_vm9 = vweird.f32 %v443_v4  ;;  %vm109_vm11 = vmor %vm107_vm10, %vm108_vm7 }
 0x107   :  { %v103_v9 = vmul.f32 %v441_v2, %v102_v6  ;;  %v100_v12 = vsel %vm99_vm5, %v437_v55, %v96_v5  ;;  %vm89_vm12 = vmor %vm87_vm8, %vm88_vm9 }
 0x108   :  { %v83_v10 = vmul.f32 %v443_v4, %v82_v8  ;;  %v80_v14 = vsel %vm79_vm6, %v439_v58, %v76_v7  ;;  %v113_v18 = vmul.f32 %v100_v12, %v529_v24 }
 0x109   :  { %v104_v11 = vmul.f32 0.5, %v103_v9  ;;  %v111_v20 = vmul.f32 %v80_v14, %v527_v23 }
 0x10a   :  { %v84_v13 = vmul.f32 0.5, %v83_v10  ;;  %v120_v28 = vmul.f32 %v432_v17, %v113_v18 }
 0x10b   :  { %v105_v15 = vsub.f32 1.5, %v104_v11  ;;  %v118_v30 = vmul.f32 %v432_v17, %v111_v20 }
 0x10c   :  { %v85_v16 = vsub.f32 1.5, %v84_v13  ;;  %v127_v32 = vadd.f32 %v433_v26, %v120_v28 }
 0x10d   :  { %v106_v19 = vmul.f32 %v441_v2, %v105_v15  ;;  %v125_v23 = vadd.f32 %v433_v26, %v118_v30 }
 0x10e   :  { %v86_v21 = vmul.f32 %v443_v4, %v85_v16 }
 0x10f   :  { %v110_v22 = vsel %vm109_vm11, %v441_v2, %v106_v19 }
 0x110   :  { %v90_v25 = vsel %vm89_vm12, %v443_v4, %v86_v21  ;;  %v114_v27 = vmul.f32 %v110_v22, %v543_v33 }
 0x111   :  { %v112_v29 = vmul.f32 %v90_v25, %v545_v34 }
 0x112   :  { %v121_v24 = vmul.f32 %v432_v17, %v114_v27 }
 0x113   :  { %v119_v31 = vmul.f32 %v432_v17, %v112_v29 }
 0x114   :  { %v128_v35 = vadd.f32 %v433_v26, %v121_v24 }
 0x115   :  { %v126_v36 = vadd.f32 %v433_v26, %v119_v31 }
 0x116   :  { %v130_v37 = vpack.c.bf16 %v128_v35, %v127_v32 }
 0x117   :  { %v129_v38 = vpack.c.bf16 %v126_v36, %v125_v23 }
 0x118   :  { %272 = vmatmul.bf16.vlgmr.msra.gmra.mxu2 %v130_v37  ;;  %291 = vmatmul.bf16.vlgmr.msra.gmra.mxu3 %v130_v37 }
 0x119   :  { %267 = vmatmul.bf16.vlgmr.msra.gmra.mxu0 %v129_v38  ;;  %286 = vmatmul.bf16.vlgmr.msra.gmra.mxu1 %v129_v38 }
 0x196   :  { %v268_v39 = vpop.f32.mrf.mxu0  ;;  %v287_v40 = vpop.f32.mrf.mxu1 }
 0x197   :  { %v297_v41 = vpack.c.bf16 %v287_v40, %v268_v39 }
 0x199   :  { %301 = vst [vmem:[#allocation2] sm:$0xff] %v297_v41 }
 0x19b   :  { %v273_v33 = vpop.f32.mrf.mxu2  ;;  %v292_v42 = vpop.f32.mrf.mxu3 }
 0x19c   :  { %v299_v34 = vpack.c.bf16 %v292_v42, %v273_v33 }
 0x19e   :  { %303 = vst [vmem:[#allocation2 + $0x10] sm:$0xff] %v299_v34  ;;  %v270_v43 = vpop.f32.mrf.mxu0  ;;  %v289_v44 = vpop.f32.mrf.mxu1 }
 0x19f   :  { %v298_v45 = vpack.c.bf16 %v289_v44, %v270_v43 }
 0x1a1   :  { %302 = vst [vmem:[#allocation2 + $0x8] sm:$0xff] %v298_v45 }
 0x1a3   :  { %v275_v46 = vpop.f32.mrf.mxu2  ;;  %v294_v47 = vpop.f32.mrf.mxu3 }
 0x1a4   :  { %v300_v48 = vpack.c.bf16 %v294_v47, %v275_v46 }
 0x1a6   :  { %304 = vst [vmem:[#allocation2 + $0x18] sm:$0xff] %v300_v48 }
 0x1a7   :  { %317 = dma.vmem_to_hbm [thread:$0]  %s310_s3, 512, %s312_s28, [#allocation3], %s472_s29, %s472_s29, %s473_s30  }
 0x1a8   :  { %468 = dma.done.wait [#allocation3], 512  }
 0x1a9   :  { %469 = vsyncadd [#allocation3], 4294966784 }
 0x1aa   :  { %322 = vsyncpa [#allocation3], 1 }

// kernel: gpt_forward.15
= control target key start
LH: loop header
LB: loop body
LE: loop exit
PB: predicated region body
PF: predicated region fallthrough
CT: control target
= control target key end

     0   :  { %11 = vsyncpa [#allocation3], 0  ;;  %s814_s24 = smov [#allocation2]   ;;  %s815_s26 = smov 64   ;;  %s996_s0 = inlined_call_operand.vmem [shape: bf16[32,512], index: 0, kind: input, shape index: {}]   ;;  %s997_s1 = inlined_call_operand.hbm [shape: bf16[512,128], index: 1, kind: input, shape index: {}]   ;;  %s998_s2 = inlined_call_operand.vmem [shape: f32[1,128], index: 2, kind: input, shape index: {}]   ;;  %s999_s3 = inlined_call_operand.vmem [shape: bf16[32,128], index: 3, kind: input, shape index: {}]   ;;  %s1000_s4 = inlined_call_operand.vmem [shape: f32[1,128], index: 4, kind: input, shape index: {}]   ;;  %s1001_s5 = inlined_call_operand.vmem [shape: f32[1,128], index: 5, kind: input, shape index: {}]   ;;  %s1002_s6 = inlined_call_operand.vmem [shape: bf16[32,128], index: 6, kind: output, shape index: {}]  }
   0x1   :  { %s18_s23 = sshll.u32 %s997_s1, 4  ;;  %s20_s25 = sshll.u32 %s814_s24, 4  ;;  %s19_s23 = int_to_ptr.hbm [resolvable:$true] %s18_s23  ;;  %s21_s25 = int_to_ptr.vmem [resolvable:$true] %s20_s25 }
   0x2   :  { %s816_s27 = smov 4  }
   0x3   :  { %26 = dma.hbm_to_vmem [thread:$0]  %s19_s23, 4096, %s21_s25, [#allocation3], %s815_s26, %s815_s26, %s816_s27  }
   0x4   :  { %812 = dma.done.wait [#allocation3], 4096  }
   0x5   :  { %813 = vsyncadd [#allocation3], 4294963200  ;;  %v859_v0 = vld [vmem:[%s999_s3 + $0x8] sm:$0xff]   ;;  %v864_v1 = vld [vmem:[%s999_s3] sm:$0xff]   ;;  %v817_v52 = vmov 128.0  }
   0x6   :  { %v742_v2 = vld [vmem:[#allocation2 + $0xb8] sm:$0xff]  ;;  %v757_v3 = vunpack.c.l.bf16 %v859_v0  ;;  %v753_v4 = vunpack.c.l.bf16 %v864_v1  ;;  %v741_v8 = vld [vmem:[#allocation2 + $0xb0] sm:$0xff]  ;;  %v740_v12 = vld [vmem:[#allocation2 + $0xa8] sm:$0xff]  ;;  %v758_v13 = vunpack.c.h.bf16 %v859_v0  ;;  %v754_v14 = vunpack.c.h.bf16 %v864_v1 }
   0x7   :  { %v726_v5 = vld [vmem:[#allocation2 + $0x38] sm:$0xff]  ;;  %385 = vmatpush.bf16.msra.mxu2 %v742_v2  ;;  %v725_v9 = vld [vmem:[#allocation2 + $0x30] sm:$0xff]  ;;  %v724_v15 = vld [vmem:[#allocation2 + $0x28] sm:$0xff]  ;;  %778 = vrcp.f32 %v817_v52 }
   0x8   :  { %v750_v6 = vld [vmem:[#allocation2 + $0xf8] sm:$0xff]  ;;  %437 = vadd.xlane.f32.xlu1 %v757_v3  ;;  %433 = vadd.xlane.f32.xlu0 %v753_v4  ;;  %v749_v10 = vld [vmem:[#allocation2 + $0xf0] sm:$0xff]  ;;  %v748_v16 = vld [vmem:[#allocation2 + $0xe8] sm:$0xff] }
   0x9   :  { %v734_v7 = vld [vmem:[#allocation2 + $0x78] sm:$0xff]  ;;  %347 = vmatpush.bf16.msra.mxu0 %v726_v5  ;;  %404 = vmatpush.bf16.msra.mxu3 %v750_v6  ;;  %v733_v11 = vld [vmem:[#allocation2 + $0x70] sm:$0xff]  ;;  %v732_v17 = vld [vmem:[#allocation2 + $0x68] sm:$0xff] }
   0xa   :  { %366 = vmatpush.bf16.msra.mxu1 %v734_v7  ;;  %v739_v18 = vld [vmem:[#allocation2 + $0xa0] sm:$0xff]  ;;  %v738_v22 = vld [vmem:[#allocation2 + $0x98] sm:$0xff]  ;;  %v737_v26 = vld [vmem:[#allocation2 + $0x90] sm:$0xff] }
   0xb   :  { %386 = vmatpush.bf16.msra.mxu2 %v741_v8  ;;  %v723_v19 = vld [vmem:[#allocation2 + $0x20] sm:$0xff]  ;;  %v722_v23 = vld [vmem:[#allocation2 + $0x18] sm:$0xff]  ;;  %v721_v27 = vld [vmem:[#allocation2 + $0x10] sm:$0xff] }
   0xc   :  { %v747_v20 = vld [vmem:[#allocation2 + $0xe0] sm:$0xff]  ;;  %v746_v24 = vld [vmem:[#allocation2 + $0xd8] sm:$0xff]  ;;  %v745_v28 = vld [vmem:[#allocation2 + $0xd0] sm:$0xff] }
   0xd   :  { %348 = vmatpush.bf16.msra.mxu0 %v725_v9  ;;  %405 = vmatpush.bf16.msra.mxu3 %v749_v10  ;;  %v731_v21 = vld [vmem:[#allocation2 + $0x60] sm:$0xff]  ;;  %v730_v25 = vld [vmem:[#allocation2 + $0x58] sm:$0xff]  ;;  %v729_v29 = vld [vmem:[#allocation2 + $0x50] sm:$0xff]  ;;  %v779_v63 = vpop.eup %778 }
   0xe   :  { %367 = vmatpush.bf16.msra.mxu1 %v733_v11  ;;  %v736_v30 = vld [vmem:[#allocation2 + $0x88] sm:$0xff]  ;;  %v735_v34 = vld [vmem:[#allocation2 + $0x80] sm:$0xff]  ;;  %v714_v36 = vld [vmem:[%s996_s0 + $0x14] sm:$0xf0]  ;;  %v442_v2 = vmul.f32 128.0, %v779_v63  ;;  %vm446_vm0 = vweird.f32 %v779_v63 }
   0xf   :  { %387 = vmatpush.bf16.msra.mxu2 %v740_v12  ;;  %v720_v31 = vld [vmem:[#allocation2 + $0x8] sm:$0xff]  ;;  %v719_v37 = vld [vmem:[#allocation2] sm:$0xff]  ;;  %v713_v40 = vld [vmem:[%s996_s0 + $0xc] sm:$0xf0] }
  0x10   :  { %439 = vadd.xlane.f32.xlu1 %v758_v13  ;;  %435 = vadd.xlane.f32.xlu0 %v754_v14  ;;  %v744_v32 = vld [vmem:[#allocation2 + $0xc8] sm:$0xff]  ;;  %v743_v38 = vld [vmem:[#allocation2 + $0xc0] sm:$0xff]  ;;  %v563_v42 = vld [vmem:[%s996_s0 + $0x18] sm:$0xf0]  ;;  %v443_v5 = vsub.f32 1.0, %v442_v2 }
  0x11   :  { %349 = vmatpush.bf16.msra.mxu0 %v724_v15  ;;  %406 = vmatpush.bf16.msra.mxu3 %v748_v16  ;;  %v728_v33 = vld [vmem:[#allocation2 + $0x48] sm:$0xff]  ;;  %v553_v39 = vld [vmem:[%s996_s0] sm:$0xf]  ;;  %v711_v45 = vld [vmem:[%s996_s0 + $0x4] sm:$0xf] }
  0x12   :  { %368 = vmatpush.bf16.msra.mxu1 %v732_v17  ;;  %v561_v35 = vld [vmem:[%s996_s0 + $0x8] sm:$0xf]  ;;  %v712_v41 = vld [vmem:[%s996_s0 + $0xc] sm:$0xf]  ;;  %v727_v44 = vld [vmem:[#allocation2 + $0x40] sm:$0xff]  ;;  %v554_v47 = vor.u32 %v713_v40, %v553_v39  ;;  %v444_v6 = vmul.f32 %v779_v63, %v443_v5 }
  0x13   :  { %388 = vmatpush.bf16.msra.mxu2 %v739_v18  ;;  %v562_v43 = vor.u32 %v714_v36, %v561_v35  ;;  %v555_v46 = vld [vmem:[%s996_s0 + $0x10] sm:$0xf0]  ;;  %v566_v48 = vor.u32 %v712_v41, %v563_v42  ;;  %v577_v50 = vld [vmem:[%s996_s0 + $0x28] sm:$0xf]  ;;  %v718_v51 = vld [vmem:[%s996_s0 + $0x34] sm:$0xf0] }
  0x14   :  { %v558_v49 = vor.u32 %v711_v45, %v555_v46  ;;  %v578_v53 = vor.u32 %v718_v51, %v577_v50  ;;  %v569_v54 = vld [vmem:[%s996_s0 + $0x20] sm:$0xf]  ;;  %v717_v55 = vld [vmem:[%s996_s0 + $0x2c] sm:$0xf0]  ;;  %v716_v56 = vld [vmem:[%s996_s0 + $0x2c] sm:$0xf]  ;;  %v445_v7 = vadd.f32 %v779_v63, %v444_v6 }
  0x15   :  { %350 = vmatpush.bf16.msra.mxu0 %v723_v19  ;;  %407 = vmatpush.bf16.msra.mxu3 %v747_v20  ;;  %v570_v57 = vor.u32 %v717_v55, %v569_v54  ;;  %v579_v58 = vld [vmem:[%s996_s0 + $0x38] sm:$0xf0]  ;;  %v715_v60 = vld [vmem:[%s996_s0 + $0x24] sm:$0xf]  ;;  %v571_v61 = vld [vmem:[%s996_s0 + $0x30] sm:$0xf0] }
  0x16   :  { %369 = vmatpush.bf16.msra.mxu1 %v731_v21  ;;  %v582_v59 = vor.u32 %v716_v56, %v579_v58  ;;  %v574_v62 = vor.u32 %v715_v60, %v571_v61  ;;  %v447_v8 = vsel %vm446_vm0, %v779_v63, %v445_v7  ;;  %v775_v54 = vld [vmem:[%s998_s2] ss:$0 sm:$0xff] }
  0x17   :  { %389 = vmatpush.bf16.msra.mxu2 %v738_v22 }
  0x19   :  { %351 = vmatpush.bf16.msra.mxu0 %v722_v23  ;;  %408 = vmatpush.bf16.msra.mxu3 %v746_v24 }
  0x1a   :  { %370 = vmatpush.bf16.msra.mxu1 %v730_v25 }
  0x1b   :  { %390 = vmatpush.bf16.msra.mxu2 %v737_v26 }
  0x1d   :  { %352 = vmatpush.bf16.msra.mxu0 %v721_v27  ;;  %409 = vmatpush.bf16.msra.mxu3 %v745_v28 }
  0x1e   :  { %371 = vmatpush.bf16.msra.mxu1 %v729_v29 }
  0x1f   :  { %391 = vmatpush.bf16.msra.mxu2 %v736_v30 }
  0x21   :  { %353 = vmatpush.bf16.msra.mxu0 %v720_v31  ;;  %410 = vmatpush.bf16.msra.mxu3 %v744_v32 }
  0x22   :  { %372 = vmatpush.bf16.msra.mxu1 %v728_v33 }
  0x23   :  { %392 = vmatpush.bf16.msra.mxu2 %v735_v34 }
  0x25   :  { %354 = vmatpush.bf16.msra.mxu0 %v719_v37  ;;  %411 = vmatpush.bf16.msra.mxu3 %v743_v38 }
  0x26   :  { %393 = vmatmul.bf16.vlgmr.msra.gmra.mxu2 %v562_v43  ;;  %373 = vmatpush.bf16.msra.mxu1 %v727_v44 }
  0x28   :  { %355 = vmatmul.bf16.vlgmr.msra.gmra.mxu0 %v554_v47  ;;  %412 = vmatmul.bf16.vlgmr.msra.gmra.mxu3 %v566_v48 }
  0x29   :  { %374 = vmatmul.bf16.vlgmr.msra.gmra.mxu1 %v558_v49 }
  0x36   :  { %398 = vmatmul.bf16.gmra.mxu2 %v578_v53 }
  0x38   :  { %360 = vmatmul.bf16.gmra.mxu0 %v570_v57  ;;  %417 = vmatmul.bf16.gmra.mxu3 %v582_v59 }
  0x39   :  { %379 = vmatmul.bf16.gmra.mxu1 %v574_v62 }
  0x7b   :  { %v438_v9 = vpop.xlane.xlu1 %437  ;;  %v434_v10 = vpop.xlane.xlu0 %433 }
  0x7c   :  { %v450_v11 = vmul.f32 %v447_v8, %v438_v9  ;;  %v448_v12 = vmul.f32 %v447_v8, %v434_v10 }
  0x7e   :  { %v928_v15 = vsub.f32 %v757_v3, %v450_v11  ;;  %v932_v16 = vsub.f32 %v753_v4, %v448_v12 }
  0x80   :  { %v458_v17 = vmul.f32 %v928_v15, %v928_v15  ;;  %v456_v18 = vmul.f32 %v932_v16, %v932_v16 }
  0x82   :  { %464 = vadd.xlane.f32.xlu0 %v458_v17  ;;  %460 = vadd.xlane.f32.xlu2 %v456_v18  ;;  %v776_v18 = vld [vmem:[%s1000_s4] ss:$0 sm:$0xff] }
  0x83   :  { %v440_v19 = vpop.xlane.xlu1 %439  ;;  %v436_v20 = vpop.xlane.xlu0 %435 }
  0x84   :  { %v451_v21 = vmul.f32 %v447_v8, %v440_v19  ;;  %v449_v22 = vmul.f32 %v447_v8, %v436_v20 }
  0x86   :  { %v940_v3 = vsub.f32 %v758_v13, %v451_v21  ;;  %v944_v4 = vsub.f32 %v754_v14, %v449_v22 }
  0x88   :  { %v459_v23 = vmul.f32 %v940_v3, %v940_v3  ;;  %v457_v24 = vmul.f32 %v944_v4, %v944_v4 }
  0x8a   :  { %466 = vadd.xlane.f32.xlu1 %v459_v23  ;;  %462 = vadd.xlane.f32.xlu2 %v457_v24 }
  0xa5   :  { %v356_v25 = vpop.f32.mrf.mxu0 }
  0xa6   :  { %v950_v26 = vpop.f32.mrf.mxu1  ;;  %v357_v10 = vadd.f32 %v775_v54, %v356_v25 }
  0xa8   :  { %v376_v25 = vadd.f32 %v950_v26, %v357_v10 }
  0xa9   :  { %v952_v27 = vpop.f32.mrf.mxu2 }
  0xab   :  { %v954_v14 = vpop.f32.mrf.mxu3 }
  0xad   :  { %v358_v0 = vpop.f32.mrf.mxu0 }
  0xae   :  { %v377_v32 = vpop.f32.mrf.mxu1  ;;  %v359_v11 = vadd.f32 %v775_v54, %v358_v0 }
  0xb0   :  { %v378_v0 = vadd.f32 %v377_v32, %v359_v11 }
  0xb1   :  { %v956_v33 = vpop.f32.mrf.mxu2 }
  0xb3   :  { %v960_v44 = vpop.f32.mrf.mxu3 }
  0xb5   :  { %v361_v38 = vpop.f32.mrf.mxu0 }
  0xb6   :  { %v380_v47 = vpop.f32.mrf.mxu1  ;;  %v362_v63 = vadd.f32 %v775_v54, %v361_v38 }
  0xb8   :  { %v381_v20 = vadd.f32 %v380_v47, %v362_v63 }
  0xb9   :  { %v399_v52 = vpop.f32.mrf.mxu2 }
  0xbb   :  { %v418_v5 = vpop.f32.mrf.mxu3 }
  0xbd   :  { %v363_v59 = vpop.f32.mrf.mxu0 }
  0xbe   :  { %v364_v9 = vadd.f32 %v775_v54, %v363_v59  ;;  %v382_v17 = vpop.f32.mrf.mxu1 }
  0xf5   :  { %v461_v13 = vpop.xlane.xlu2 %460  ;;  %v465_v28 = vpop.xlane.xlu0 %464 }
  0xf6   :  { %v468_v29 = vmul.f32 %v461_v13, %v447_v8  ;;  %v470_v1 = vmul.f32 %v465_v28, %v447_v8  ;;  %v383_v13 = vadd.f32 %v382_v17, %v364_v9 }
  0xf8   :  { %v472_v30 = vadd.f32 1e-05, %v468_v29  ;;  %v474_v31 = vadd.f32 1e-05, %v470_v1  ;;  %v401_v29 = vpop.f32.mrf.mxu2  ;;  %v777_v1 = vld [vmem:[%s1001_s5] ss:$0 sm:$0xff] }
  0xf9   :  { %v402_v26 = vadd.f32 %v401_v29, %v383_v13 }
  0xfa   :  { %780 = vrsqrt.f32 %v472_v30  ;;  %vm482_vm3 = vweird.f32 %v472_v30  ;;  %vm502_vm5 = vweird.f32 %v474_v31 }
  0xfb   :  { %782 = vrsqrt.f32 %v474_v31 }
  0xfd   :  { %v467_v34 = vpop.xlane.xlu1 %466  ;;  %v463_v35 = vpop.xlane.xlu2 %462 }
  0xfe   :  { %v471_v36 = vmul.f32 %v467_v34, %v447_v8  ;;  %v469_v37 = vmul.f32 %v463_v35, %v447_v8 }
 0x100   :  { %v781_v39 = vpop.eup %780  ;;  %v475_v40 = vadd.f32 1e-05, %v471_v36  ;;  %v958_v41 = vadd.f32 1e-05, %v469_v37  ;;  %v395_v36 = vadd.f32 %v952_v27, %v376_v25  ;;  %v397_v37 = vadd.f32 %v956_v33, %v378_v0 }
 0x101   :  { %v783_v42 = vpop.eup %782  ;;  %v477_v43 = vmul.f32 %v781_v39, %v472_v30  ;;  %vm483_vm1 = vweird.f32 %v781_v39 }
 0x102   :  { %v497_v45 = vmul.f32 %v783_v42, %v474_v31  ;;  %784 = vrsqrt.f32 %v475_v40  ;;  %vm503_vm2 = vweird.f32 %v783_v42  ;;  %vm966_vm4 = vmor %vm482_vm3, %vm483_vm1  ;;  %vm512_vm9 = vweird.f32 %v475_v40 }
 0x103   :  { %v478_v46 = vmul.f32 %v781_v39, %v477_v43  ;;  %786 = vrsqrt.f32 %v958_v41  ;;  %vm504_vm6 = vmor %vm502_vm5, %vm503_vm2  ;;  %vm492_vm11 = vweird.f32 %v958_v41 }
 0x104   :  { %v498_v48 = vmul.f32 %v783_v42, %v497_v45 }
 0x105   :  { %v479_v49 = vmul.f32 0.5, %v478_v46 }
 0x106   :  { %v499_v50 = vmul.f32 0.5, %v498_v48  ;;  %v414_v48 = vadd.f32 %v954_v14, %v395_v36 }
 0x107   :  { %v480_v51 = vsub.f32 1.5, %v479_v49  ;;  %v416_v49 = vadd.f32 %v960_v44, %v397_v37 }
 0x108   :  { %v785_v53 = vpop.eup %784  ;;  %v500_v55 = vsub.f32 1.5, %v499_v50 }
 0x109   :  { %v787_v56 = vpop.eup %786  ;;  %v481_v57 = vmul.f32 %v781_v39, %v480_v51  ;;  %v507_v58 = vmul.f32 %v785_v53, %v475_v40  ;;  %vm513_vm7 = vweird.f32 %v785_v53 }
 0x10a   :  { %v501_v61 = vmul.f32 %v783_v42, %v500_v55  ;;  %v487_v62 = vmul.f32 %v787_v56, %v958_v41  ;;  %vm493_vm8 = vweird.f32 %v787_v56  ;;  %vm514_vm10 = vmor %vm512_vm9, %vm513_vm7 }
 0x10b   :  { %v508_v2 = vmul.f32 %v785_v53, %v507_v58  ;;  %v485_v6 = vsel %vm966_vm4, %v781_v39, %v481_v57  ;;  %vm494_vm12 = vmor %vm492_vm11, %vm493_vm8  ;;  %v420_v39 = vpop.f32.mrf.mxu3 }
 0x10c   :  { %v505_v7 = vsel %vm504_vm6, %v783_v42, %v501_v61  ;;  %v488_v8 = vmul.f32 %v787_v56, %v487_v62  ;;  %v516_v22 = vmul.f32 %v485_v6, %v932_v16  ;;  %v421_v46 = vadd.f32 %v420_v39, %v402_v26 }
 0x10d   :  { %v509_v12 = vmul.f32 0.5, %v508_v2  ;;  %v518_v21 = vmul.f32 %v505_v7, %v928_v15  ;;  %v400_v15 = vadd.f32 %v399_v52, %v381_v20 }
 0x10e   :  { %v489_v19 = vmul.f32 0.5, %v488_v8  ;;  %v523_v31 = vmul.f32 %v776_v18, %v516_v22 }
 0x10f   :  { %v510_v23 = vsub.f32 1.5, %v509_v12  ;;  %v525_v16 = vmul.f32 %v776_v18, %v518_v21  ;;  %v419_v40 = vadd.f32 %v418_v5, %v400_v15 }
 0x110   :  { %v490_v24 = vsub.f32 1.5, %v489_v19  ;;  %v530_v43 = vadd.f32 %v777_v1, %v523_v31 }
 0x111   :  { %v511_v28 = vmul.f32 %v785_v53, %v510_v23  ;;  %v532_v42 = vadd.f32 %v777_v1, %v525_v16 }
 0x112   :  { %v491_v30 = vmul.f32 %v787_v56, %v490_v24  ;;  %v534_v27 = vadd.f32 %v530_v43, %v414_v48 }
 0x113   :  { %v515_v34 = vsel %vm514_vm10, %v785_v53, %v511_v28 }
 0x114   :  { %v495_v35 = vsel %vm494_vm12, %v787_v56, %v491_v30  ;;  %v519_v32 = vmul.f32 %v515_v34, %v940_v3  ;;  %v536_v3 = vadd.f32 %v532_v42, %v419_v40 }
 0x115   :  { %v517_v38 = vmul.f32 %v495_v35, %v944_v4 }
 0x116   :  { %v526_v41 = vmul.f32 %v776_v18, %v519_v32 }
 0x117   :  { %v524_v45 = vmul.f32 %v776_v18, %v517_v38 }
 0x118   :  { %v533_v47 = vadd.f32 %v777_v1, %v526_v41 }
 0x119   :  { %v531_v50 = vadd.f32 %v777_v1, %v524_v45 }
 0x11a   :  { %v537_v51 = vadd.f32 %v533_v47, %v421_v46 }
 0x11b   :  { %v535_v52 = vadd.f32 %v531_v50, %v416_v49 }
 0x11c   :  { %v767_v33 = vpack.c.bf16 %v537_v51, %v536_v3 }
 0x11d   :  { %v762_v53 = vpack.c.bf16 %v535_v52, %v534_v27 }
 0x11e   :  { %770 = vst [vmem:[%s1002_s6 + $0x8] sm:$0xff] %v767_v33  }
 0x11f   :  { %763 = vst [vmem:[%s1002_s6] sm:$0xff] %v762_v53  }
 0x120   :  { %550 = vsyncpa [#allocation3], 1 }

</bundles_post_ra>
